<compile_context>
chip_gen: v6e
topology: v6e:2x2x1
jax: 0.10.0
libtpu: 0.0.40
codegen_flags: <defaults>
</compile_context>

<pallas_src>
import functools

import jax
import jax.numpy as jnp
from jax import lax
from jax.experimental import pallas as pl
from jax.experimental.pallas import tpu as pltpu

# Deterministic stand-in for `(random.random() > 0.5) * 2 - 1`.
SHIFT_DIRECTION = 1


@functools.lru_cache(maxsize=1)
def _num_tensorcores() -> int:
    """Best-effort TensorCores-per-chip detection (2 on v7x, else 1)."""
    try:
        kind = jax.devices()[0].device_kind.lower()
    except Exception:
        return 1
    return 2 if ("v7" in kind or "7x" in kind) else 1


# ----------------------------- Pallas kernel --------------------------------
def _make_fused_kernel(shift, j_axis):
    """Fused im2col + contraction kernel for a static shift of +/-1.

    Grid axis `j_axis` is the second-unfold (H) tap: a reduction axis.  The
    output block index is constant across it, so o_ref stays resident in VMEM
    and is used directly as the f32 accumulator.
    """
    s = int(shift)
    assert s in (1, -1), "shift_direction must be +1 or -1"

    def kernel(a_ref, w_ref, o_ref, ap_ref, t2p_ref):
        j = pl.program_id(j_axis)

        @pl.when(j == 0)
        def _build_glue():
            # AP[h, wp, c] = roll_W(a, s)[h, wp - 1, c] for wp in [1, 8),
            # zero at wp in {0, 8} (pad=1 of the first unfold).  The roll is
            # folded into the copy offsets, so `a_ref` is the UN-rolled NHWC
            # activation.
            ap_ref[...] = jnp.zeros_like(ap_ref)
            if s == 1:
                ap_ref[:, 2:8, :] = a_ref[:, 0:6, :]
                ap_ref[:, 1:2, :] = a_ref[:, 6:7, :]
            else:
                ap_ref[:, 1:7, :] = a_ref[:, 1:7, :]
                ap_ref[:, 7:8, :] = a_ref[:, 0:1, :]

            # T2P[1 + h, o, l*256 + k] = t2[h, l, o, k] with
            #   t2[h, l, w', k] = u_l[h, w', k] + u_l[h, (w'-1)%7, 256+k]  (s=+1)
            #   t2[h, l, w', k] = u_l[h, (w'+1)%7, k] + u_l[h, w', 256+k]  (s=-1)
            #   u_l[h, w, c]    = AP[h, w + l, c]          (first-unfold tap l)
            # Rows 0/8 (H pad of the second unfold) and column o == 7 (49 -> 56
            # output-row padding, discarded outside) stay zero.  Putting
            # K = l*256 + k in the lane dim matches the (j, l*256+k, i) weight
            # layout so a single K=768 dot per grid step suffices.
            t2p_ref[...] = jnp.zeros_like(t2p_ref)
            for l in range(3):
                main = (ap_ref[:, l + 1:l + 7, 0:256]
                        + ap_ref[:, l:l + 6, 256:512])        # (7, 6, 256)
                wrap = (ap_ref[:, l:l + 1, 0:256]
                        + ap_ref[:, l + 6:l + 7, 256:512])    # (7, 1, 256)
                lo = l * 256
                if s == 1:
                    t2p_ref[1:8, 1:7, lo:lo + 256] = main
                    t2p_ref[1:8, 0:1, lo:lo + 256] = wrap
                else:
                    t2p_ref[1:8, 0:6, lo:lo + 256] = main
                    t2p_ref[1:8, 6:7, lo:lo + 256] = wrap

            # Accumulator init (per output block).
            o_ref[...] = jnp.zeros_like(o_ref)

        # One MXU dot per grid step: rows = (n, o_pad), K = l*256 + k (= 768).
        w_mat = w_ref[0]                                       # (768, n_blk)
        slab = t2p_ref[pl.ds(j, 7)].reshape(56, 768)           # (56, 768) f32
        o_ref[...] += jnp.dot(slab.astype(w_mat.dtype), w_mat,
                              preferred_element_type=jnp.float32)

    return kernel


def _fused_conv(a_nhwc, w_r, shift, split_n):
    """a_nhwc: (7, 7, 512) f32 (un-rolled NHWC); w_r: (3, 768, 512) f32/bf16.

    Returns (56, 512) f32 where rows are (n, o_pad) with o_pad in [0, 8).
    """
    n_cols = w_r.shape[-1]                       # 512 output channels (i)
    n_split = 2 if split_n else 1
    n_blk = n_cols // n_split

    if n_split == 1:
        grid = (3,)
        j_axis = 0
        a_spec = pl.BlockSpec((7, 7, 512), lambda j: (0, 0, 0))
        w_spec = pl.BlockSpec((1, 768, n_blk), lambda j: (j, 0, 0))
        o_spec = pl.BlockSpec((56, n_blk), lambda j: (0, 0))
        semantics = ("arbitrary",)
    else:
        # v7x: shard the output channels across the two TensorCores.
        grid = (2, 3)
        j_axis = 1
        a_spec = pl.BlockSpec((7, 7, 512), lambda n, j: (0, 0, 0))
        w_spec = pl.BlockSpec((1, 768, n_blk), lambda n, j: (j, 0, n))
        o_spec = pl.BlockSpec((56, n_blk), lambda n, j: (0, n))
        semantics = ("parallel", "arbitrary")

    kernel = _make_fused_kernel(shift, j_axis)
    w_bytes = int(w_r.size) * jnp.dtype(w_r.dtype).itemsize
    return pl.pallas_call(
        kernel,
        out_shape=jax.ShapeDtypeStruct((56, 512), jnp.float32),
        grid_spec=pltpu.PrefetchScalarGridSpec(
            num_scalar_prefetch=0,
            grid=grid,
            in_specs=[a_spec, w_spec],
            out_specs=o_spec,
            scratch_shapes=[
                pltpu.VMEM((7, 9, 512), jnp.float32),   # AP  (W-padded rolled act)
                pltpu.VMEM((9, 8, 768), jnp.float32),   # T2P (H-padded t2, K=768)
            ],
        ),
        compiler_params=pltpu.CompilerParams(dimension_semantics=semantics),
        cost_estimate=pl.CostEstimate(
            flops=2 * 56 * 768 * 512 * 3,
            transcendentals=0,
            bytes_accessed=w_bytes + 4 * (7 * 7 * 512 + 56 * 512),
        ),
    )(a_nhwc, w_r)


# ----------------------------- Forward pass ----------------------------------
def prepare_weight(w, dtype=jnp.bfloat16):
    """One-time weight re-layout (i, j, l, k) -> (j, l*256 + k, i) [+ cast].

    The weight is a static module parameter, so this transpose/cast is paid
    once at setup time instead of on every forward call.  dtype=bfloat16 halves
    the per-call weight DMA (the kernel is weight-DMA bound); dtype=float32
    keeps the original module numerics exactly.
    """
    i, j, l, k = w.shape                          # (512, 3, 3, 256)
    w_r = jnp.transpose(w, (1, 2, 3, 0)).reshape(j, l * k, i)
    return w_r.astype(dtype)


@functools.partial(jax.jit, static_argnames=("shift", "split_n"))
def kernel_generated_6_forward(x, w_r, *, shift=SHIFT_DIRECTION, split_n=False):
    """x: (1, 512, 7, 7) f32 NCHW; w_r: prepare_weight(weight). -> (1, 512, 7, 7)."""
    # einsum('ilkj -> ikjl'): one small XLA transpose (~100 KB); the W-roll is
    # folded into the kernel's AP build.
    a = jnp.transpose(x, (0, 2, 3, 1))[0]          # (7, 7, 512) NHWC, un-rolled
    y56 = _fused_conv(a, w_r, shift, split_n)      # (56, 512), rows = (n, o_pad)
    y = y56.reshape(7, 8, 512)[:, :7, :]           # drop o padding -> (n, o, i)
    return jnp.transpose(y, (2, 0, 1))[None]       # (1, 512, 7, 7)


def forward(x, w_r, *, shift=SHIFT_DIRECTION):
    """Convenience wrapper: picks the dual-TensorCore split automatically."""
    return kernel_generated_6_forward(
        x, w_r, shift=shift, split_n=(_num_tensorcores() >= 2))


# ----------------------------- Reference -------------------------------------
def _reference_forward(x, w, shift=SHIFT_DIRECTION, quantize_dtype=None):
    """Pure-JAX mirror of the PyTorch module, for validation.

    If `quantize_dtype` is given, the contraction inputs are rounded through
    that dtype (mirroring the kernel's low-precision-weight fast path) and the
    einsum itself is done exactly in f32.
    """
    a = jnp.transpose(x, (0, 2, 3, 1))
    a = jnp.roll(a, shift, axis=2)
    ap = jnp.pad(a, ((0, 0), (0, 0), (1, 1), (0, 0)))
    u = jnp.stack([ap[:, :, r:r + 7, :] for r in range(3)], axis=2)  # (1,7,3,7,512)
    u = u.reshape(1, 7, 3, 7, 2, 256)
    u = u.reshape(1, 7, 3, 14, 256)
    u = jnp.roll(u, shift, axis=3)
    u = u.reshape(1, 7, 3, 7, 2, 256)
    t2 = jnp.sum(u, axis=4)                                          # (1,7,3,7,256)
    tp = jnp.pad(t2, ((0, 0), (1, 1), (0, 0), (0, 0), (0, 0)))
    t3 = jnp.stack([tp[:, r2:r2 + 7] for r2 in range(3)], axis=1)    # (1,3,7,3,7,256)
    wq = w
    if quantize_dtype is not None:
        t3 = t3.astype(quantize_dtype).astype(jnp.float32)
        wq = w.astype(quantize_dtype).astype(jnp.float32)
    return jnp.einsum('mjnlok,ijlk->mino', t3, wq,
                      precision=lax.Precision.HIGHEST)


if __name__ == "__main__":
    key = jax.random.PRNGKey(0)
    kx, kw = jax.random.split(key)
    # Shapes implied by the module: x (1, 512, 7, 7), weight (512, 3, 3, 256).
    x = jax.random.normal(kx, (1, 512, 7, 7), dtype=jnp.float32)
    w = jax.random.normal(kw, (512, 3, 3, 256), dtype=jnp.float32)

    # One-time weight re-layouts (outside the per-call forward path).
    w_f32 = jax.block_until_ready(prepare_weight(w, dtype=jnp.float32))
    w_bf16 = jax.block_until_ready(prepare_weight(w, dtype=jnp.bfloat16))

    auto_split = _num_tensorcores() >= 2

    # Validate both shift directions, both weight-precision paths on the
    # auto-selected grid, plus one run on the non-default grid layout so both
    # code paths (single-axis and dual-core split) are exercised.
    cases = [(sh, dt, auto_split) for sh in (1, -1)
             for dt in (jnp.float32, jnp.bfloat16)]
    cases.append((1, jnp.bfloat16, not auto_split))

    for shift, dt, split_n in cases:
        w_r = w_f32 if dt == jnp.float32 else w_bf16
        y = jax.block_until_ready(
            kernel_generated_6_forward(x, w_r, shift=shift, split_n=split_n))
        assert y.shape == (1, 512, 7, 7), y.shape
        if dt == jnp.float32:
            # Exact path: must match the original module numerics.
            y_ref = jax.block_until_ready(_reference_forward(x, w, shift))
            assert jnp.allclose(y, y_ref, atol=1e-3, rtol=1e-3), (
                f"f32 mismatch vs reference (shift={shift}, split={split_n})")
        else:
            # bf16-weight fast path: compare against the same rounding applied
            # to the reference (isolates kernel bugs from the deliberate
            # weight quantization).
            y_ref = jax.block_until_ready(
                _reference_forward(x, w, shift, quantize_dtype=jnp.bfloat16))
            assert jnp.allclose(y, y_ref, atol=1e-2, rtol=1e-2), (
                f"bf16 mismatch vs quantized reference "
                f"(shift={shift}, split={split_n})")

    print("KERNEL_OK")
</pallas_src>

<mosaic_0001>
module attributes {stable_mosaic.version = 11 : i64} {
  func.func @kernel(%arg0: i32, %arg1: memref<7x7x512xf32, #tpu.memory_space<vmem>>, %arg2: memref<1x768x512xf32, #tpu.memory_space<vmem>>, %arg3: memref<56x512xf32, #tpu.memory_space<vmem>>, %arg4: memref<7x9x512xf32, #tpu.memory_space<vmem>>, %arg5: memref<9x8x768xf32, #tpu.memory_space<vmem>>) attributes {dimension_semantics = [#tpu.dimension_semantics<arbitrary>], iteration_bounds = array<i64: 3>, scalar_prefetch = 0 : i64, scratch_operands = 2 : i64, tpu.core_type = #tpu.core_type<tc>, window_params = [{pipeline_mode = #tpu.pipeline_mode<synchronous>, transform_indices = @transform_0, window_bounds = array<i64: 7, 7, 512>}, {transform_indices = @transform_1, window_bounds = array<i64: 1, 768, 512>}, {pipeline_mode = #tpu.pipeline_mode<synchronous>, transform_indices = @transform_2, window_bounds = array<i64: 56, 512>}]} {
    %c0_i32 = arith.constant 0 : i32
    %0 = arith.cmpi eq, %arg0, %c0_i32 : i32
    %1 = arith.extui %0 : i1 to i32
    %c0_i32_0 = arith.constant 0 : i32
    %2 = arith.cmpi ne, %1, %c0_i32_0 : i32
    scf.if %2 {
      %cst_9 = arith.constant 0.000000e+00 : f32
      %12 = vector.broadcast %cst_9 : f32 to vector<7x9x512xf32>
      %c0_10 = arith.constant 0 : index
      %c0_11 = arith.constant 0 : index
      %c0_12 = arith.constant 0 : index
      %13 = vector.load %arg4[%c0_10, %c0_11, %c0_12] : memref<7x9x512xf32, #tpu.memory_space<vmem>>, vector<7x9x512xf32>
      tpu.vector_store %arg4[%c0_10, %c0_11, %c0_12], %12 {strides = array<i32>} : memref<7x9x512xf32, #tpu.memory_space<vmem>>, vector<7x9x512xf32>,
      %c0_13 = arith.constant 0 : index
      %c0_14 = arith.constant 0 : index
      %c0_15 = arith.constant 0 : index
      %14 = vector.load %arg1[%c0_13, %c0_14, %c0_15] : memref<7x7x512xf32, #tpu.memory_space<vmem>>, vector<7x6x512xf32>
      %c0_16 = arith.constant 0 : index
      %c2 = arith.constant 2 : index
      %c0_17 = arith.constant 0 : index
      %15 = vector.load %arg4[%c0_16, %c2, %c0_17] : memref<7x9x512xf32, #tpu.memory_space<vmem>>, vector<7x6x512xf32>
      tpu.vector_store %arg4[%c0_16, %c2, %c0_17], %14 {strides = array<i32>} : memref<7x9x512xf32, #tpu.memory_space<vmem>>, vector<7x6x512xf32>,
      %c0_18 = arith.constant 0 : index
      %c6 = arith.constant 6 : index
      %c0_19 = arith.constant 0 : index
      %16 = vector.load %arg1[%c0_18, %c6, %c0_19] : memref<7x7x512xf32, #tpu.memory_space<vmem>>, vector<7x1x512xf32>
      %c0_20 = arith.constant 0 : index
      %c1 = arith.constant 1 : index
      %c0_21 = arith.constant 0 : index
      %17 = vector.load %arg4[%c0_20, %c1, %c0_21] : memref<7x9x512xf32, #tpu.memory_space<vmem>>, vector<7x1x512xf32>
      tpu.vector_store %arg4[%c0_20, %c1, %c0_21], %16 {strides = array<i32>} : memref<7x9x512xf32, #tpu.memory_space<vmem>>, vector<7x1x512xf32>,
      %cst_22 = arith.constant 0.000000e+00 : f32
      %18 = vector.broadcast %cst_22 : f32 to vector<9x8x768xf32>
      %c0_23 = arith.constant 0 : index
      %c0_24 = arith.constant 0 : index
      %c0_25 = arith.constant 0 : index
      %19 = vector.load %arg5[%c0_23, %c0_24, %c0_25] : memref<9x8x768xf32, #tpu.memory_space<vmem>>, vector<9x8x768xf32>
      tpu.vector_store %arg5[%c0_23, %c0_24, %c0_25], %18 {strides = array<i32>} : memref<9x8x768xf32, #tpu.memory_space<vmem>>, vector<9x8x768xf32>,
      %c0_26 = arith.constant 0 : index
      %c1_27 = arith.constant 1 : index
      %c0_28 = arith.constant 0 : index
      %20 = vector.load %arg4[%c0_26, %c1_27, %c0_28] : memref<7x9x512xf32, #tpu.memory_space<vmem>>, vector<7x6x256xf32>
      %c0_29 = arith.constant 0 : index
      %c0_30 = arith.constant 0 : index
      %c256 = arith.constant 256 : index
      %21 = vector.load %arg4[%c0_29, %c0_30, %c256] : memref<7x9x512xf32, #tpu.memory_space<vmem>>, vector<7x6x256xf32>
      %22 = arith.addf %20, %21 : vector<7x6x256xf32>
      %c0_31 = arith.constant 0 : index
      %c0_32 = arith.constant 0 : index
      %c0_33 = arith.constant 0 : index
      %23 = vector.load %arg4[%c0_31, %c0_32, %c0_33] : memref<7x9x512xf32, #tpu.memory_space<vmem>>, vector<7x1x256xf32>
      %c0_34 = arith.constant 0 : index
      %c6_35 = arith.constant 6 : index
      %c256_36 = arith.constant 256 : index
      %24 = vector.load %arg4[%c0_34, %c6_35, %c256_36] : memref<7x9x512xf32, #tpu.memory_space<vmem>>, vector<7x1x256xf32>
      %25 = arith.addf %23, %24 : vector<7x1x256xf32>
      %c1_37 = arith.constant 1 : index
      %c1_38 = arith.constant 1 : index
      %c0_39 = arith.constant 0 : index
      %26 = vector.load %arg5[%c1_37, %c1_38, %c0_39] : memref<9x8x768xf32, #tpu.memory_space<vmem>>, vector<7x6x256xf32>
      tpu.vector_store %arg5[%c1_37, %c1_38, %c0_39], %22 {strides = array<i32>} : memref<9x8x768xf32, #tpu.memory_space<vmem>>, vector<7x6x256xf32>,
      %c1_40 = arith.constant 1 : index
      %c0_41 = arith.constant 0 : index
      %c0_42 = arith.constant 0 : index
      %27 = vector.load %arg5[%c1_40, %c0_41, %c0_42] : memref<9x8x768xf32, #tpu.memory_space<vmem>>, vector<7x1x256xf32>
      tpu.vector_store %arg5[%c1_40, %c0_41, %c0_42], %25 {strides = array<i32>} : memref<9x8x768xf32, #tpu.memory_space<vmem>>, vector<7x1x256xf32>,
      %c0_43 = arith.constant 0 : index
      %c2_44 = arith.constant 2 : index
      %c0_45 = arith.constant 0 : index
      %28 = vector.load %arg4[%c0_43, %c2_44, %c0_45] : memref<7x9x512xf32, #tpu.memory_space<vmem>>, vector<7x6x256xf32>
      %c0_46 = arith.constant 0 : index
      %c1_47 = arith.constant 1 : index
      %c256_48 = arith.constant 256 : index
      %29 = vector.load %arg4[%c0_46, %c1_47, %c256_48] : memref<7x9x512xf32, #tpu.memory_space<vmem>>, vector<7x6x256xf32>
      %30 = arith.addf %28, %29 : vector<7x6x256xf32>
      %c0_49 = arith.constant 0 : index
      %c1_50 = arith.constant 1 : index
      %c0_51 = arith.constant 0 : index
      %31 = vector.load %arg4[%c0_49, %c1_50, %c0_51] : memref<7x9x512xf32, #tpu.memory_space<vmem>>, vector<7x1x256xf32>
      %c0_52 = arith.constant 0 : index
      %c7 = arith.constant 7 : index
      %c256_53 = arith.constant 256 : index
      %32 = vector.load %arg4[%c0_52, %c7, %c256_53] : memref<7x9x512xf32, #tpu.memory_space<vmem>>, vector<7x1x256xf32>
      %33 = arith.addf %31, %32 : vector<7x1x256xf32>
      %c1_54 = arith.constant 1 : index
      %c1_55 = arith.constant 1 : index
      %c256_56 = arith.constant 256 : index
      %34 = vector.load %arg5[%c1_54, %c1_55, %c256_56] : memref<9x8x768xf32, #tpu.memory_space<vmem>>, vector<7x6x256xf32>
      tpu.vector_store %arg5[%c1_54, %c1_55, %c256_56], %30 {strides = array<i32>} : memref<9x8x768xf32, #tpu.memory_space<vmem>>, vector<7x6x256xf32>,
      %c1_57 = arith.constant 1 : index
      %c0_58 = arith.constant 0 : index
      %c256_59 = arith.constant 256 : index
      %35 = vector.load %arg5[%c1_57, %c0_58, %c256_59] : memref<9x8x768xf32, #tpu.memory_space<vmem>>, vector<7x1x256xf32>
      tpu.vector_store %arg5[%c1_57, %c0_58, %c256_59], %33 {strides = array<i32>} : memref<9x8x768xf32, #tpu.memory_space<vmem>>, vector<7x1x256xf32>,
      %c0_60 = arith.constant 0 : index
      %c3 = arith.constant 3 : index
      %c0_61 = arith.constant 0 : index
      %36 = vector.load %arg4[%c0_60, %c3, %c0_61] : memref<7x9x512xf32, #tpu.memory_space<vmem>>, vector<7x6x256xf32>
      %c0_62 = arith.constant 0 : index
      %c2_63 = arith.constant 2 : index
      %c256_64 = arith.constant 256 : index
      %37 = vector.load %arg4[%c0_62, %c2_63, %c256_64] : memref<7x9x512xf32, #tpu.memory_space<vmem>>, vector<7x6x256xf32>
      %38 = arith.addf %36, %37 : vector<7x6x256xf32>
      %c0_65 = arith.constant 0 : index
      %c2_66 = arith.constant 2 : index
      %c0_67 = arith.constant 0 : index
      %39 = vector.load %arg4[%c0_65, %c2_66, %c0_67] : memref<7x9x512xf32, #tpu.memory_space<vmem>>, vector<7x1x256xf32>
      %c0_68 = arith.constant 0 : index
      %c8 = arith.constant 8 : index
      %c256_69 = arith.constant 256 : index
      %40 = vector.load %arg4[%c0_68, %c8, %c256_69] : memref<7x9x512xf32, #tpu.memory_space<vmem>>, vector<7x1x256xf32>
      %41 = arith.addf %39, %40 : vector<7x1x256xf32>
      %c1_70 = arith.constant 1 : index
      %c1_71 = arith.constant 1 : index
      %c512 = arith.constant 512 : index
      %42 = vector.load %arg5[%c1_70, %c1_71, %c512] : memref<9x8x768xf32, #tpu.memory_space<vmem>>, vector<7x6x256xf32>
      tpu.vector_store %arg5[%c1_70, %c1_71, %c512], %38 {strides = array<i32>} : memref<9x8x768xf32, #tpu.memory_space<vmem>>, vector<7x6x256xf32>,
      %c1_72 = arith.constant 1 : index
      %c0_73 = arith.constant 0 : index
      %c512_74 = arith.constant 512 : index
      %43 = vector.load %arg5[%c1_72, %c0_73, %c512_74] : memref<9x8x768xf32, #tpu.memory_space<vmem>>, vector<7x1x256xf32>
      tpu.vector_store %arg5[%c1_72, %c0_73, %c512_74], %41 {strides = array<i32>} : memref<9x8x768xf32, #tpu.memory_space<vmem>>, vector<7x1x256xf32>,
      %cst_75 = arith.constant 0.000000e+00 : f32
      %44 = vector.broadcast %cst_75 : f32 to vector<56x512xf32>
      %c0_76 = arith.constant 0 : index
      %c0_77 = arith.constant 0 : index
      %45 = vector.load %arg3[%c0_76, %c0_77] : memref<56x512xf32, #tpu.memory_space<vmem>>, vector<56x512xf32>
      tpu.vector_store %arg3[%c0_76, %c0_77], %44 {strides = array<i32>} : memref<56x512xf32, #tpu.memory_space<vmem>>, vector<56x512xf32>,
    } else {
    }
    %c0 = arith.constant 0 : index
    %c0_1 = arith.constant 0 : index
    %c0_2 = arith.constant 0 : index
    %3 = vector.load %arg2[%c0, %c0_1, %c0_2] : memref<1x768x512xf32, #tpu.memory_space<vmem>>, vector<1x768x512xf32>
    %4 = vector.shape_cast %3 : vector<1x768x512xf32> to vector<768x512xf32>
    %5 = arith.index_cast %arg0 : i32 to index
    %c0_3 = arith.constant 0 : index
    %c0_4 = arith.constant 0 : index
    %6 = vector.load %arg5[%5, %c0_3, %c0_4] : memref<9x8x768xf32, #tpu.memory_space<vmem>>, vector<7x8x768xf32>
    %7 = vector.shape_cast %6 : vector<7x8x768xf32> to vector<56x768xf32>
    %c0_5 = arith.constant 0 : index
    %c0_6 = arith.constant 0 : index
    %8 = vector.load %arg3[%c0_5, %c0_6] : memref<56x512xf32, #tpu.memory_space<vmem>>, vector<56x512xf32>
    %cst = arith.constant dense<0.000000e+00> : vector<56x512xf32>
    %9 = tpu.matmul %7, %4, %cst {dimension_numbers = #tpu.dot_dimension_numbers<[1], [0], [0], [1], [0, 0, 1, 1], [], []>} : vector<56x768xf32>, vector<768x512xf32>, vector<56x512xf32> -> vector<56x512xf32>
    %10 = arith.addf %8, %9 : vector<56x512xf32>
    %c0_7 = arith.constant 0 : index
    %c0_8 = arith.constant 0 : index
    %11 = vector.load %arg3[%c0_7, %c0_8] : memref<56x512xf32, #tpu.memory_space<vmem>>, vector<56x512xf32>
    tpu.vector_store %arg3[%c0_7, %c0_8], %10 {strides = array<i32>} : memref<56x512xf32, #tpu.memory_space<vmem>>, vector<56x512xf32>,
    return
  }
  func.func @transform_0(%arg0: i32) -> (i32, i32, i32) {
    %c0_i32 = arith.constant 0 : i32
    %c0_i32_0 = arith.constant 0 : i32
    %c0_i32_1 = arith.constant 0 : i32
    %c0_i32_2 = arith.constant 0 : i32
    return %c0_i32, %c0_i32_0, %c0_i32_1 : i32, i32, i32
  }
  func.func @transform_1(%arg0: i32) -> (i32, i32, i32) {
    %c0_i32 = arith.constant 0 : i32
    %c0_i32_0 = arith.constant 0 : i32
    %c0_i32_1 = arith.constant 0 : i32
    return %arg0, %c0_i32, %c0_i32_0 : i32, i32, i32
  }
  func.func @transform_2(%arg0: i32) -> (i32, i32) {
    %c0_i32 = arith.constant 0 : i32
    %c0_i32_0 = arith.constant 0 : i32
    %c0_i32_1 = arith.constant 0 : i32
    return %c0_i32, %c0_i32_0 : i32, i32
  }
}

</mosaic_0001>

<bundles_post_ra>
// kernel: kernel_generated_6_forward.1
= control target key start
LH: loop header
LB: loop body
LE: loop exit
PB: predicated region body
PF: predicated region fallthrough
CT: control target
= control target key end

     0   :  { %7 = vsyncpa [#allocation5], 0  ;;  %s3745_s0 = inlined_call_operand.vmem [shape: f32[7,7,512], index: 0, kind: input, shape index: {}]   ;;  %s3746_s1 = inlined_call_operand.hbm [shape: f32[3,768,512], index: 1, kind: input, shape index: {}]   ;;  %s3747_s2 = inlined_call_operand.vmem [shape: f32[56,512], index: 2, kind: output, shape index: {}]  }
   0x1   :  { %9 = vsyncpa [#allocation5 + $0x1], 0  ;;  %s2444_s9 = smov 0   ;;  %s2446_s10 = smov 0  }
   0x2   :  { %s2448_s11 = smov 0   ;;  %s2450_s12 = smov 0  }
   0x3 LB: > { %s2463_s13 = sadd.s32 4294967295, %s2423_s12   ;;  %s2466_s14 = sadd.s32 1, %s2423_s12   ;;  %s2423_s12 = sphi %s2450_s12, %s3760_s12   ;;  %s2419_s11 = sphi %s2448_s11, %s3759_s11   ;;  %s2415_s10 = sphi %s2446_s10, %s3758_s10   ;;  %s2411_s9 = sphi %s2444_s9, %s3757_s9  }
   0x4   : > { %s40_s15 = ssub.s32 %s2423_s12, %s2466_s14  ;;  %s43_s16 = sadd.s32 1, %s2419_s11 }
   0x5   : > { %p41_p0 = scmp.eq.s32.totalorder %s40_s15, 0  ;;  %p50_p1 = scmp.ne.s32.totalorder %s2419_s11, %s2415_s10 }
   0x6   : > { %p51_p2 = scmp.eq.s32.totalorder %s2423_s12, 0  ;;  %p56_p3 = scmp.ne.s32.totalorder %s2415_s10, %s2411_s9 }
   0x7   : > { %s2476_s17 = scalar_select %p41_p0, %s2419_s11, %s43_s16  }
   0x8   : > { %p52_p4 = por %p51_p2, %p50_p1  ;;  %p57_p5 = scmp.eq.s32.totalorder %s2463_s13, 0 }
   0x9   : > { %p2323_p6 = scmp.lt.s32.totalorder %s2423_s12, 3  ;;  %s104_s19 = sand.u32 1, %s2419_s11  }
   0xa   : > { %p2480_p7 = por %p57_p5, %p56_p3  ;;  %s2314_s20 = smul.u32 3072, %s104_s19 }
   0xb   : > { %s2315_s21 = smul.u32 49152, %s2423_s12  ;;  %p2486_p8 = pnand %p2323_p6, %p52_p4 }
   0xc   : > { %s3749_s18 = scalar_select %p2480_p7, 1, 0 }
   0xd   : > { %s2493_s25 = scalar_lea.hbm %s3746_s1, %s2315_s21  ;;  %s108_s26 = scalar_lea.vmem [#allocation4], %s2314_s20 }
   0xe   : > { %s115_s27 = sshll.u32 %s108_s26, 4  ;;  %s2498_s28 = scalar_lea.sflag [#allocation5], %s104_s19  ;;  %s2495_s27 = int_to_ptr.vmem [resolvable:$true] %s115_s27 }
   0xf   : > { %s2361_s29 = scalar_lea.hbm %s2493_s25, 49152  ;;  %p2363_p11 = pneg %p2486_p8 }
  0x10   : > { %p2362_p10 = scmp.ne.s32.totalorder %s2493_s25, %s2361_s29  ;;  %s2366_s4 = scalar_lea.hbm %s3746_s1, 147456 }
  0x11   : > { %p2367_p0 = scmp.lt.s32.totalorder %s2493_s25, %s3746_s1  ;;  %p2368_p1 = scmp.lt.s32.totalorder %s2366_s4, %s2361_s29 }
  0x12   : > { %p2364_p12 = pnand %p2363_p11, %p2362_p10 }
  0x13   : > { %p2369_p2 = por %p2368_p1, %p2367_p0 }
  0x14   : > { %p2365_p13 = pneg %p2364_p12 }
  0x16   : > { %p2370_p3 = pnand %p2369_p2, %p2365_p13 }
  0x18   : > { %2373 = shalt.err (!%p2370_p3)
}
  0x19   : > { %s2374_s7 = scalar_lea.vmem %s2495_s27, 49152  ;;  %s2425_s8 = smov [#allocation4]  }
  0x1a   : > { %p2375_p4 = scmp.ne.s32.totalorder %s2495_s27, %s2374_s7  ;;  %s2379_s9 = sshll.u32 %s2425_s8, 4  ;;  %s2380_s9 = int_to_ptr.vmem [resolvable:$false] %s2379_s9 }
  0x1b   : > { %s2381_s15 = scalar_lea.vmem %s2380_s9, 98304  ;;  %p2382_p10 = scmp.lt.s32.totalorder %s2495_s27, %s2380_s9 }
  0x1c   : > { %p2377_p5 = pnand %p2375_p4, %p2363_p11  ;;  %p2383_p12 = scmp.lt.s32.totalorder %s2381_s15, %s2374_s7 }
  0x1e   : > { %p2378_p6 = pneg %p2377_p5  ;;  %p2384_p9 = por %p2383_p12, %p2382_p10 }
  0x20   : > { %p2385_p7 = pnand %p2384_p9, %p2378_p6 }
  0x22   : > { %2388 = shalt.err (!%p2385_p7)
}
  0x23   : > { %s2426_s16 = smov 512   ;;  %s2427_s19 = smov 32  }
  0x24   : > { %2322 = dma.hbm_to_vmem [thread:$0]  (!%p2486_p8), %s2493_s25, 49152, %s2495_s27, %s2498_s28, %s2426_s16, %s2426_s16, %s2427_s19  }
  0x25   : > { %p123_p11 = scmp.lt.s32.totalorder %s2423_s12, 4  ;;  %p3751_p13 = scmp.ge.s32.totalorder %s2423_s12, 1 }
  0x27   : > { %p124_p0 = pnand %p3751_p13, %p123_p11 }
  0x28   : > { %s129_s20 = sand.u32 (!%p124_p0), 1, %s2415_s10   ;;  %p3752_p7 = scmp.ne.s32.totalorder (!%p124_p0), %s3749_s18, 0 }
  0x29   : > { %127 = sbr.rel (%p124_p0) target bundleno = 690 (0x2b2), region = 28  ;;  %s130_s23 = scalar_lea.sflag (!%p124_p0), [#allocation5], %s129_s20 }
  0x2a   : > { %s2316_s21 = smul.u32 (!%p124_p0), 3072, %s129_s20 }
  0x2c   : > { %s2523_s24 = scalar_lea.vmem (!%p124_p0), [#allocation4], %s2316_s21 }
  0x2e   : > { %2406 = dma.done.wait (%p3752_p7), %s130_s23, 49152  }
  0x2f   : > { %2408 = vsyncadd (%p3752_p7), %s130_s23, 4294918144  ;;  %p2302_p9 = scmp.ne.s32.totalorder %s2463_s13, 0 }
  0x31   : > { %152 = sbr.rel (%p2302_p9) target bundleno = 242 (0xf2), region = 36 }
  0x36   : > { %v2533_v0 = vld [vmem:[%s3745_s0 + $0x10] sm:$0x3f]  ;;  %v2538_v1 = vld [vmem:[%s3745_s0 + $0x18] sm:$0x3f]  ;;  %v2428_v2 = vmov 0.0   ;;  %v363_v15 = vlaneseq  ;;  %vm961_vm2 = vcmask 1045504  }
  0x37   : > { %153 = vst [vmem:[#allocation2] sm:$0xff] %v2428_v2  ;;  %154 = vst [vmem:[#allocation2 + $0x8] sm:$0xff] %v2428_v2  ;;  %v267_v3 = vrot.slane %v2533_v0, 6  ;;  %v268_v4 = vrot.slane %v2538_v1, 6  ;;  %v215_v5 = vld [vmem:[%s3745_s0 + $0x30] sm:$0x3f] }
  0x38   : > { %155 = vst [vmem:[#allocation2 + $0x10] sm:$0xff] %v2428_v2  ;;  %156 = vst [vmem:[#allocation2 + $0x18] sm:$0xff] %v2428_v2  ;;  %v216_v6 = vld [vmem:[%s3745_s0 + $0x38] sm:$0x3f]  ;;  %v271_v7 = vrot.slane %v215_v5, 6  ;;  %vm2804_vm0 = vcmp.lt.s32.totalorder %v363_v15, 512 }
  0x39   : > { %157 = vst [vmem:[#allocation2 + $0x20] sm:$0x1] %v2428_v2  ;;  %158 = vst [vmem:[#allocation2 + $0x28] sm:$0x1] %v2428_v2  ;;  %v272_v8 = vrot.slane %v216_v6, 6  ;;  %vm2883_vm1 = vcmp.lt.s32.totalorder %v363_v15, 256 }
  0x3a   : > { %159 = vst [vmem:[#allocation2 + $0x30] sm:$0x1] %v2428_v2  ;;  %160 = vst [vmem:[#allocation2 + $0x38] sm:$0x1] %v2428_v2  ;;  %v219_v9 = vld [vmem:[%s3745_s0 + $0x50] sm:$0x3f] }
  0x3b   : > { %161 = vst [vmem:[#allocation2 + $0x40] sm:$0xff] %v2428_v2  ;;  %162 = vst [vmem:[#allocation2 + $0x48] sm:$0xff] %v2428_v2  ;;  %v220_v10 = vld [vmem:[%s3745_s0 + $0x58] sm:$0x3f]  ;;  %v275_v11 = vrot.slane %v219_v9, 6 }
  0x3c   : > { %163 = vst [vmem:[#allocation2 + $0x50] sm:$0xff] %v2428_v2  ;;  %164 = vst [vmem:[#allocation2 + $0x58] sm:$0xff] %v2428_v2  ;;  %v276_v12 = vrot.slane %v220_v10, 6  ;;  %v223_v13 = vld [vmem:[%s3745_s0 + $0x70] sm:$0x3f] }
  0x3d   : > { %165 = vst [vmem:[#allocation2 + $0x60] sm:$0x1] %v2428_v2  ;;  %166 = vst [vmem:[#allocation2 + $0x68] sm:$0x1] %v2428_v2  ;;  %v224_v14 = vld [vmem:[%s3745_s0 + $0x78] sm:$0x3f] }
  0x3e   : > { %167 = vst [vmem:[#allocation2 + $0x70] sm:$0x1] %v2428_v2  ;;  %168 = vst [vmem:[#allocation2 + $0x78] sm:$0x1] %v2428_v2  ;;  %v279_v16 = vrot.slane %v223_v13, 6  ;;  %v280_v17 = vrot.slane %v224_v14, 6 }
  0x3f   : > { %169 = vst [vmem:[#allocation2 + $0x80] sm:$0xff] %v2428_v2  ;;  %170 = vst [vmem:[#allocation2 + $0x88] sm:$0xff] %v2428_v2  ;;  %v227_v18 = vld [vmem:[%s3745_s0 + $0x90] sm:$0x3f]  ;;  %v228_v19 = vld [vmem:[%s3745_s0 + $0x98] sm:$0x3f] }
  0x40   : > { %171 = vst [vmem:[#allocation2 + $0x90] sm:$0xff] %v2428_v2  ;;  %172 = vst [vmem:[#allocation2 + $0x98] sm:$0xff] %v2428_v2  ;;  %v283_v20 = vrot.slane %v227_v18, 6  ;;  %v284_v21 = vrot.slane %v228_v19, 6  ;;  %v231_v22 = vld [vmem:[%s3745_s0 + $0xb0] sm:$0x3f] }
  0x41   : > { %173 = vst [vmem:[#allocation2 + $0xa0] sm:$0x1] %v2428_v2  ;;  %174 = vst [vmem:[#allocation2 + $0xa8] sm:$0x1] %v2428_v2  ;;  %v232_v23 = vld [vmem:[%s3745_s0 + $0xb8] sm:$0x3f] }
  0x42   : > { %175 = vst [vmem:[#allocation2 + $0xb0] sm:$0x1] %v2428_v2  ;;  %176 = vst [vmem:[#allocation2 + $0xb8] sm:$0x1] %v2428_v2  ;;  %v287_v24 = vrot.slane %v231_v22, 6  ;;  %v288_v25 = vrot.slane %v232_v23, 6 }
  0x43   : > { %177 = vst [vmem:[#allocation2 + $0xc0] sm:$0xff] %v2428_v2  ;;  %178 = vst [vmem:[#allocation2 + $0xc8] sm:$0xff] %v2428_v2  ;;  %v235_v26 = vld [vmem:[%s3745_s0 + $0xd0] sm:$0x3f]  ;;  %v236_v27 = vld [vmem:[%s3745_s0 + $0xd8] sm:$0x3f] }
  0x44   : > { %179 = vst [vmem:[#allocation2 + $0xd0] sm:$0xff] %v2428_v2  ;;  %180 = vst [vmem:[#allocation2 + $0xd8] sm:$0xff] %v2428_v2  ;;  %v291_v28 = vrot.slane %v235_v26, 6  ;;  %v292_v29 = vrot.slane %v236_v27, 6  ;;  %v209_v33 = vld [vmem:[%s3745_s0] sm:$0x3f] }
  0x45   : > { %181 = vst [vmem:[#allocation2 + $0xe0] sm:$0x1] %v2428_v2  ;;  %182 = vst [vmem:[#allocation2 + $0xe8] sm:$0x1] %v2428_v2  ;;  %v265_v39 = vrot.slane %v209_v33, 6 }
  0x46   : > { %183 = vst [vmem:[#allocation2 + $0xf0] sm:$0x1] %v2428_v2  ;;  %184 = vst [vmem:[#allocation2 + $0xf8] sm:$0x1] %v2428_v2  ;;  %v210_v40 = vld [vmem:[%s3745_s0 + $0x8] sm:$0x3f] }
  0x47   : > { %185 = vst [vmem:[#allocation2 + $0x100] sm:$0xff] %v2428_v2  ;;  %186 = vst [vmem:[#allocation2 + $0x108] sm:$0xff] %v2428_v2  ;;  %v2303_v30 = vld [vmem:[%s3745_s0 + $0x6] ss:$8 sm:$0xf]  ;;  %v266_v41 = vrot.slane %v210_v40, 6 }
  0x48   : > { %187 = vst [vmem:[#allocation2 + $0x110] sm:$0xff] %v2428_v2  ;;  %188 = vst [vmem:[#allocation2 + $0x118] sm:$0xff] %v2428_v2  ;;  %v2304_v32 = vld [vmem:[%s3745_s0 + $0x26] ss:$8 sm:$0xf] }
  0x49   : > { %189 = vst [vmem:[#allocation2 + $0x120] sm:$0x1] %v2428_v2  ;;  %190 = vst [vmem:[#allocation2 + $0x128] sm:$0x1] %v2428_v2  ;;  %v213_v42 = vld [vmem:[%s3745_s0 + $0x20] sm:$0x3f] }
  0x4a   : > { %191 = vst [vmem:[#allocation2 + $0x130] sm:$0x1] %v2428_v2  ;;  %192 = vst [vmem:[#allocation2 + $0x138] sm:$0x1] %v2428_v2  ;;  %v214_v43 = vld [vmem:[%s3745_s0 + $0x28] sm:$0x3f] }
  0x4b   : > { %193 = vst [vmem:[#allocation2 + $0x140] sm:$0xff] %v2428_v2  ;;  %194 = vst [vmem:[#allocation2 + $0x148] sm:$0xff] %v2428_v2  ;;  %v2305_v34 = vld [vmem:[%s3745_s0 + $0x46] ss:$8 sm:$0xf]  ;;  %v269_v44 = vrot.slane %v213_v42, 6 }
  0x4c   : > { %195 = vst [vmem:[#allocation2 + $0x150] sm:$0xff] %v2428_v2  ;;  %196 = vst [vmem:[#allocation2 + $0x158] sm:$0xff] %v2428_v2  ;;  %v2306_v35 = vld [vmem:[%s3745_s0 + $0x66] ss:$8 sm:$0xf]  ;;  %v270_v45 = vrot.slane %v214_v43, 6 }
  0x4d   : > { %197 = vst [vmem:[#allocation2 + $0x160] sm:$0x1] %v2428_v2  ;;  %198 = vst [vmem:[#allocation2 + $0x168] sm:$0x1] %v2428_v2  ;;  %v217_v46 = vld [vmem:[%s3745_s0 + $0x40] sm:$0x3f] }
  0x4e   : > { %199 = vst [vmem:[#allocation2 + $0x170] sm:$0x1] %v2428_v2  ;;  %200 = vst [vmem:[#allocation2 + $0x178] sm:$0x1] %v2428_v2  ;;  %v218_v47 = vld [vmem:[%s3745_s0 + $0x48] sm:$0x3f] }
  0x4f   : > { %201 = vst [vmem:[#allocation2 + $0x180] sm:$0xff] %v2428_v2  ;;  %202 = vst [vmem:[#allocation2 + $0x188] sm:$0xff] %v2428_v2  ;;  %v2307_v36 = vld [vmem:[%s3745_s0 + $0x86] ss:$8 sm:$0xf]  ;;  %v273_v48 = vrot.slane %v217_v46, 6 }
  0x50   : > { %203 = vst [vmem:[#allocation2 + $0x190] sm:$0xff] %v2428_v2  ;;  %204 = vst [vmem:[#allocation2 + $0x198] sm:$0xff] %v2428_v2  ;;  %v2308_v37 = vld [vmem:[%s3745_s0 + $0xa6] ss:$8 sm:$0xf]  ;;  %v274_v49 = vrot.slane %v218_v47, 6 }
  0x51   : > { %205 = vst [vmem:[#allocation2 + $0x1a0] sm:$0x1] %v2428_v2  ;;  %206 = vst [vmem:[#allocation2 + $0x1a8] sm:$0x1] %v2428_v2  ;;  %v221_v50 = vld [vmem:[%s3745_s0 + $0x60] sm:$0x3f] }
  0x52   : > { %207 = vst [vmem:[#allocation2 + $0x1b0] sm:$0x1] %v2428_v2  ;;  %208 = vst [vmem:[#allocation2 + $0x1b8] sm:$0x1] %v2428_v2  ;;  %v222_v51 = vld [vmem:[%s3745_s0 + $0x68] sm:$0x3f] }
  0x53   : > { %388 = vst [vmem:[#allocation3] sm:$0xff] %v2428_v2  ;;  %389 = vst [vmem:[#allocation3 + $0x8] sm:$0xff] %v2428_v2  ;;  %v2309_v38 = vld [vmem:[%s3745_s0 + $0xc6] ss:$8 sm:$0xf]  ;;  %v277_v52 = vrot.slane %v221_v50, 6 }
  0x54   : > { %390 = vst [vmem:[#allocation3 + $0x10] sm:$0xff] %v2428_v2  ;;  %391 = vst [vmem:[#allocation3 + $0x18] sm:$0xff] %v2428_v2  ;;  %v278_v53 = vrot.slane %v222_v51, 6  ;;  %v225_v54 = vld [vmem:[%s3745_s0 + $0x80] sm:$0x3f] }
  0x55   : > { %392 = vst [vmem:[#allocation3 + $0x20] sm:$0xff] %v2428_v2  ;;  %393 = vst [vmem:[#allocation3 + $0x28] sm:$0xff] %v2428_v2  ;;  %v226_v55 = vld [vmem:[%s3745_s0 + $0x88] sm:$0x3f]  ;;  %v281_v56 = vrot.slane %v225_v54, 6 }
  0x56   : > { %394 = vst [vmem:[#allocation3 + $0x30] sm:$0xff] %v2428_v2  ;;  %395 = vst [vmem:[#allocation3 + $0x38] sm:$0xff] %v2428_v2  ;;  %v282_v57 = vrot.slane %v226_v55, 6  ;;  %v229_v58 = vld [vmem:[%s3745_s0 + $0xa0] sm:$0x3f] }
  0x57   : > { %396 = vst [vmem:[#allocation3 + $0x40] sm:$0xff] %v2428_v2  ;;  %397 = vst [vmem:[#allocation3 + $0x48] sm:$0xff] %v2428_v2  ;;  %v230_v59 = vld [vmem:[%s3745_s0 + $0xa8] sm:$0x3f]  ;;  %v285_v60 = vrot.slane %v229_v58, 6 }
  0x58   : > { %398 = vst [vmem:[#allocation3 + $0x50] sm:$0xff] %v2428_v2  ;;  %399 = vst [vmem:[#allocation3 + $0x58] sm:$0xff] %v2428_v2  ;;  %v286_v61 = vrot.slane %v230_v59, 6  ;;  %v233_v62 = vld [vmem:[%s3745_s0 + $0xc0] sm:$0x3f] }
  0x59   : > { %400 = vst [vmem:[#allocation3 + $0x60] sm:$0xff] %v2428_v2  ;;  %401 = vst [vmem:[#allocation3 + $0x68] sm:$0xff] %v2428_v2  ;;  %v234_v63 = vld [vmem:[%s3745_s0 + $0xc8] sm:$0x3f]  ;;  %v289_v1 = vrot.slane %v233_v62, 6 }
  0x5a   : > { %402 = vst [vmem:[#allocation3 + $0x70] sm:$0xff] %v2428_v2  ;;  %403 = vst [vmem:[#allocation3 + $0x78] sm:$0xff] %v2428_v2  ;;  %v528_v5 = vld [vmem:[#allocation2 + $0x40] ss:$8 sm:$0x3] }
  0x5b   : > { %404 = vst [vmem:[#allocation3 + $0x80] sm:$0xff] %v2428_v2  ;;  %405 = vst [vmem:[#allocation3 + $0x88] sm:$0xff] %v2428_v2  ;;  %v534_v14 = vld [vmem:[#allocation2 + $0x100] ss:$8 sm:$0x3] }
  0x5c   : > { %406 = vst [vmem:[#allocation3 + $0x90] sm:$0xff] %v2428_v2  ;;  %407 = vst [vmem:[#allocation3 + $0x98] sm:$0xff] %v2428_v2 }
  0x5d   : > { %408 = vst [vmem:[#allocation3 + $0xa0] sm:$0xff] %v2428_v2  ;;  %409 = vst [vmem:[#allocation3 + $0xa8] sm:$0xff] %v2428_v2 }
  0x5e   : > { %410 = vst [vmem:[#allocation3 + $0xb0] sm:$0xff] %v2428_v2  ;;  %411 = vst [vmem:[#allocation3 + $0xb8] sm:$0xff] %v2428_v2 }
  0x5f   : > { %412 = vst [vmem:[#allocation3 + $0xc0] sm:$0xff] %v2428_v2  ;;  %413 = vst [vmem:[#allocation3 + $0xc8] sm:$0xff] %v2428_v2 }
  0x60   : > { %414 = vst [vmem:[#allocation3 + $0xd0] sm:$0xff] %v2428_v2  ;;  %415 = vst [vmem:[#allocation3 + $0xd8] sm:$0xff] %v2428_v2 }
  0x61   : > { %416 = vst [vmem:[#allocation3 + $0xe0] sm:$0xff] %v2428_v2  ;;  %417 = vst [vmem:[#allocation3 + $0xe8] sm:$0xff] %v2428_v2 }
  0x62   : > { %418 = vst [vmem:[#allocation3 + $0xf0] sm:$0xff] %v2428_v2  ;;  %419 = vst [vmem:[#allocation3 + $0xf8] sm:$0xff] %v2428_v2 }
  0x63   : > { %420 = vst [vmem:[#allocation3 + $0x100] sm:$0xff] %v2428_v2  ;;  %421 = vst [vmem:[#allocation3 + $0x108] sm:$0xff] %v2428_v2 }
  0x64   : > { %422 = vst [vmem:[#allocation3 + $0x110] sm:$0xff] %v2428_v2  ;;  %423 = vst [vmem:[#allocation3 + $0x118] sm:$0xff] %v2428_v2 }
  0x65   : > { %424 = vst [vmem:[#allocation3 + $0x120] sm:$0xff] %v2428_v2  ;;  %425 = vst [vmem:[#allocation3 + $0x128] sm:$0xff] %v2428_v2 }
  0x66   : > { %426 = vst [vmem:[#allocation3 + $0x130] sm:$0xff] %v2428_v2  ;;  %427 = vst [vmem:[#allocation3 + $0x138] sm:$0xff] %v2428_v2 }
  0x67   : > { %428 = vst [vmem:[#allocation3 + $0x140] sm:$0xff] %v2428_v2  ;;  %429 = vst [vmem:[#allocation3 + $0x148] sm:$0xff] %v2428_v2 }
  0x68   : > { %430 = vst [vmem:[#allocation3 + $0x150] sm:$0xff] %v2428_v2  ;;  %431 = vst [vmem:[#allocation3 + $0x158] sm:$0xff] %v2428_v2 }
  0x69   : > { %432 = vst [vmem:[#allocation3 + $0x160] sm:$0xff] %v2428_v2  ;;  %433 = vst [vmem:[#allocation3 + $0x168] sm:$0xff] %v2428_v2 }
  0x6a   : > { %434 = vst [vmem:[#allocation3 + $0x170] sm:$0xff] %v2428_v2  ;;  %435 = vst [vmem:[#allocation3 + $0x178] sm:$0xff] %v2428_v2 }
  0x6b   : > { %436 = vst [vmem:[#allocation3 + $0x180] sm:$0xff] %v2428_v2  ;;  %437 = vst [vmem:[#allocation3 + $0x188] sm:$0xff] %v2428_v2 }
  0x6c   : > { %438 = vst [vmem:[#allocation3 + $0x190] sm:$0xff] %v2428_v2  ;;  %439 = vst [vmem:[#allocation3 + $0x198] sm:$0xff] %v2428_v2 }
  0x6d   : > { %440 = vst [vmem:[#allocation3 + $0x1a0] sm:$0xff] %v2428_v2  ;;  %441 = vst [vmem:[#allocation3 + $0x1a8] sm:$0xff] %v2428_v2 }
  0x6e   : > { %1053 = vst [vmem:[%s3747_s2] sm:$0xff] %v2428_v2  ;;  %1054 = vst [vmem:[%s3747_s2 + $0x8] sm:$0xff] %v2428_v2 }
  0x6f   : > { %1055 = vst [vmem:[%s3747_s2 + $0x10] sm:$0xff] %v2428_v2  ;;  %1056 = vst [vmem:[%s3747_s2 + $0x18] sm:$0xff] %v2428_v2 }
  0x70   : > { %1057 = vst [vmem:[%s3747_s2 + $0x20] sm:$0xff] %v2428_v2  ;;  %1058 = vst [vmem:[%s3747_s2 + $0x28] sm:$0xff] %v2428_v2 }
  0x71   : > { %1059 = vst [vmem:[%s3747_s2 + $0x30] sm:$0xff] %v2428_v2  ;;  %1060 = vst [vmem:[%s3747_s2 + $0x38] sm:$0xff] %v2428_v2 }
  0x72   : > { %1061 = vst [vmem:[%s3747_s2 + $0x40] sm:$0xff] %v2428_v2  ;;  %1062 = vst [vmem:[%s3747_s2 + $0x48] sm:$0xff] %v2428_v2 }
  0x73   : > { %1063 = vst [vmem:[%s3747_s2 + $0x50] sm:$0xff] %v2428_v2  ;;  %1064 = vst [vmem:[%s3747_s2 + $0x58] sm:$0xff] %v2428_v2 }
  0x74   : > { %1065 = vst [vmem:[%s3747_s2 + $0x60] sm:$0xff] %v2428_v2  ;;  %1066 = vst [vmem:[%s3747_s2 + $0x68] sm:$0xff] %v2428_v2 }
  0x75   : > { %1067 = vst [vmem:[%s3747_s2 + $0x70] sm:$0xff] %v2428_v2  ;;  %1068 = vst [vmem:[%s3747_s2 + $0x78] sm:$0xff] %v2428_v2 }
  0x76   : > { %1069 = vst [vmem:[%s3747_s2 + $0x80] sm:$0xff] %v2428_v2  ;;  %1070 = vst [vmem:[%s3747_s2 + $0x88] sm:$0xff] %v2428_v2 }
  0x77   : > { %1071 = vst [vmem:[%s3747_s2 + $0x90] sm:$0xff] %v2428_v2  ;;  %1072 = vst [vmem:[%s3747_s2 + $0x98] sm:$0xff] %v2428_v2 }
  0x78   : > { %1073 = vst [vmem:[%s3747_s2 + $0xa0] sm:$0xff] %v2428_v2  ;;  %1074 = vst [vmem:[%s3747_s2 + $0xa8] sm:$0xff] %v2428_v2 }
  0x79   : > { %1075 = vst [vmem:[%s3747_s2 + $0xb0] sm:$0xff] %v2428_v2  ;;  %1076 = vst [vmem:[%s3747_s2 + $0xb8] sm:$0xff] %v2428_v2 }
  0x7a   : > { %1077 = vst [vmem:[%s3747_s2 + $0xc0] sm:$0xff] %v2428_v2  ;;  %1078 = vst [vmem:[%s3747_s2 + $0xc8] sm:$0xff] %v2428_v2 }
  0x7b   : > { %1079 = vst [vmem:[%s3747_s2 + $0xd0] sm:$0xff] %v2428_v2  ;;  %1080 = vst [vmem:[%s3747_s2 + $0xd8] sm:$0xff] %v2428_v2  ;;  %v290_v2 = vrot.slane %v234_v63, 6 }
  0x7c   : > { %323 = vst [vmem:[#allocation2 + $0x10] sm:$0xfc] %v267_v3  ;;  %324 = vst [vmem:[#allocation2 + $0x18] sm:$0xfc] %v268_v4 }
  0x7d   : > { %327 = vst [vmem:[#allocation2 + $0x50] sm:$0xfc] %v271_v7  ;;  %328 = vst [vmem:[#allocation2 + $0x58] sm:$0xfc] %v272_v8 }
  0x7e   : > { %331 = vst [vmem:[#allocation2 + $0x90] sm:$0xfc] %v275_v11  ;;  %332 = vst [vmem:[#allocation2 + $0x98] sm:$0xfc] %v276_v12 }
  0x7f   : > { %335 = vst [vmem:[#allocation2 + $0xd0] sm:$0xfc] %v279_v16  ;;  %336 = vst [vmem:[#allocation2 + $0xd8] sm:$0xfc] %v280_v17 }
  0x80   : > { %339 = vst [vmem:[#allocation2 + $0x110] sm:$0xfc] %v283_v20  ;;  %340 = vst [vmem:[#allocation2 + $0x118] sm:$0xfc] %v284_v21 }
  0x81   : > { %343 = vst [vmem:[#allocation2 + $0x150] sm:$0xfc] %v287_v24  ;;  %344 = vst [vmem:[#allocation2 + $0x158] sm:$0xfc] %v288_v25 }
  0x82   : > { %368 = vst.msk [vmem:[#allocation2 + $0x1] ss:$8 sm:$0xf] %vm2804_vm0, %v2303_v30  ;;  %347 = vst [vmem:[#allocation2 + $0x190] sm:$0xfc] %v291_v28 }
  0x83   : > { %348 = vst [vmem:[#allocation2 + $0x198] sm:$0xfc] %v292_v29  ;;  %371 = vst.msk [vmem:[#allocation2 + $0x41] ss:$8 sm:$0xf] %vm2804_vm0, %v2304_v32 }
  0x84   : > { %374 = vst.msk [vmem:[#allocation2 + $0x81] ss:$8 sm:$0xf] %vm2804_vm0, %v2305_v34  ;;  %377 = vst.msk [vmem:[#allocation2 + $0xc1] ss:$8 sm:$0xf] %vm2804_vm0, %v2306_v35 }
  0x85   : > { %380 = vst.msk [vmem:[#allocation2 + $0x101] ss:$8 sm:$0xf] %vm2804_vm0, %v2307_v36  ;;  %383 = vst.msk [vmem:[#allocation2 + $0x141] ss:$8 sm:$0xf] %vm2804_vm0, %v2308_v37 }
  0x86   : > { %386 = vst.msk [vmem:[#allocation2 + $0x181] ss:$8 sm:$0xf] %vm2804_vm0, %v2309_v38  ;;  %321 = vst [vmem:[#allocation2] sm:$0xfc] %v265_v39 }
  0x87   : > { %322 = vst [vmem:[#allocation2 + $0x8] sm:$0xfc] %v266_v41  ;;  %325 = vst [vmem:[#allocation2 + $0x40] sm:$0xfc] %v269_v44 }
  0x88   : > { %326 = vst [vmem:[#allocation2 + $0x48] sm:$0xfc] %v270_v45  ;;  %329 = vst [vmem:[#allocation2 + $0x80] sm:$0xfc] %v273_v48 }
  0x89   : > { %330 = vst [vmem:[#allocation2 + $0x88] sm:$0xfc] %v274_v49  ;;  %333 = vst [vmem:[#allocation2 + $0xc0] sm:$0xfc] %v277_v52  ;;  %v456_v46 = vld [vmem:[#allocation2 + $0x10] sm:$0x3f] }
  0x8a   : > { %334 = vst [vmem:[#allocation2 + $0xc8] sm:$0xfc] %v278_v53  ;;  %337 = vst [vmem:[#allocation2 + $0x100] sm:$0xfc] %v281_v56  ;;  %v457_v48 = vld [vmem:[#allocation2 + $0x18] sm:$0x3f] }
  0x8b   : > { %338 = vst [vmem:[#allocation2 + $0x108] sm:$0xfc] %v282_v57  ;;  %v526_v3 = vld [vmem:[#allocation2] ss:$8 sm:$0x3]  ;;  %v484_v49 = vrot.slane %v456_v46, 7 }
  0x8c   : > { %341 = vst [vmem:[#allocation2 + $0x140] sm:$0xfc] %v285_v60  ;;  %342 = vst [vmem:[#allocation2 + $0x148] sm:$0xfc] %v286_v61  ;;  %v485_v50 = vrot.slane %v457_v48, 7 }
  0x8d   : > { %v540_v4 = vld [vmem:[#allocation2 + $0x16] ss:$8 sm:$0x3]  ;;  %345 = vst [vmem:[#allocation2 + $0x180] sm:$0xfc] %v289_v1 }
  0x8e   : > { %346 = vst [vmem:[#allocation2 + $0x188] sm:$0xfc] %v290_v2  ;;  %v553_v6 = vadd.f32 %v540_v4, %v526_v3  ;;  %v542_v7 = vld [vmem:[#allocation2 + $0x56] ss:$8 sm:$0x3] }
  0x8f   : > { %v530_v8 = vld [vmem:[#allocation2 + $0x80] ss:$8 sm:$0x3]  ;;  %v554_v9 = vadd.f32 %v542_v7, %v528_v5  ;;  %v544_v10 = vld [vmem:[#allocation2 + $0x96] ss:$8 sm:$0x3] }
  0x90   : > { %v532_v11 = vld [vmem:[#allocation2 + $0xc0] ss:$8 sm:$0x3]  ;;  %577 = vst.msk [vmem:[#allocation3 + $0x30] ss:$8 sm:$0x3] %vm2883_vm1, %v553_v6  ;;  %v555_v12 = vadd.f32 %v544_v10, %v530_v8 }
  0x91   : > { %v546_v13 = vld [vmem:[#allocation2 + $0xd6] ss:$8 sm:$0x3]  ;;  %580 = vst.msk [vmem:[#allocation3 + $0x60] ss:$8 sm:$0x3] %vm2883_vm1, %v554_v9 }
  0x92   : > { %v556_v15 = vadd.f32 %v546_v13, %v532_v11  ;;  %v548_v16 = vld [vmem:[#allocation2 + $0x116] ss:$8 sm:$0x3]  ;;  %v536_v17 = vld [vmem:[#allocation2 + $0x140] ss:$8 sm:$0x3] }
  0x93   : > { %583 = vst.msk [vmem:[#allocation3 + $0x90] ss:$8 sm:$0x3] %vm2883_vm1, %v555_v12  ;;  %v557_v18 = vadd.f32 %v548_v16, %v534_v14  ;;  %v550_v19 = vld [vmem:[#allocation2 + $0x156] ss:$8 sm:$0x3] }
  0x94   : > { %v538_v20 = vld [vmem:[#allocation2 + $0x180] ss:$8 sm:$0x3]  ;;  %586 = vst.msk [vmem:[#allocation3 + $0xc0] ss:$8 sm:$0x3] %vm2883_vm1, %v556_v15  ;;  %v558_v21 = vadd.f32 %v550_v19, %v536_v17 }
  0x95   : > { %v552_v22 = vld [vmem:[#allocation2 + $0x196] ss:$8 sm:$0x3]  ;;  %v681_v23 = vld [vmem:[#allocation2 + $0x1] ss:$8 sm:$0x3] }
  0x96   : > { %589 = vst.msk [vmem:[#allocation3 + $0xf0] ss:$8 sm:$0x3] %vm2883_vm1, %v557_v18  ;;  %v559_v24 = vadd.f32 %v552_v22, %v538_v20  ;;  %v689_v25 = vld [vmem:[#allocation2 + $0x17] ss:$8 sm:$0x3] }
  0x97   : > { %v682_v26 = vld [vmem:[#allocation2 + $0x41] ss:$8 sm:$0x3]  ;;  %592 = vst.msk [vmem:[#allocation3 + $0x120] ss:$8 sm:$0x3] %vm2883_vm1, %v558_v21  ;;  %v702_v27 = vadd.f32 %v689_v25, %v681_v23 }
  0x98   : > { %v691_v28 = vld [vmem:[#allocation2 + $0x57] ss:$8 sm:$0x3]  ;;  %v683_v29 = vld [vmem:[#allocation2 + $0x81] ss:$8 sm:$0x3] }
  0x99   : > { %595 = vst.msk [vmem:[#allocation3 + $0x150] ss:$8 sm:$0x3] %vm2883_vm1, %v559_v24  ;;  %v703_v30 = vadd.f32 %v691_v28, %v682_v26  ;;  %v693_v31 = vld [vmem:[#allocation2 + $0x97] ss:$8 sm:$0x3] }
  0x9a   : > { %v684_v32 = vld [vmem:[#allocation2 + $0xc1] ss:$8 sm:$0x3]  ;;  %766 = vst.msk [vmem:[#allocation3 + $0x40] ss:$8 sm:$0x3] %vm2883_vm1, %v702_v27  ;;  %v704_v33 = vadd.f32 %v693_v31, %v683_v29 }
  0x9b   : > { %v695_v34 = vld [vmem:[#allocation2 + $0xd7] ss:$8 sm:$0x3]  ;;  %v685_v35 = vld [vmem:[#allocation2 + $0x101] ss:$8 sm:$0x3] }
  0x9c   : > { %769 = vst.msk [vmem:[#allocation3 + $0x70] ss:$8 sm:$0x3] %vm2883_vm1, %v703_v30  ;;  %v705_v36 = vadd.f32 %v695_v34, %v684_v32  ;;  %v697_v37 = vld [vmem:[#allocation2 + $0x117] ss:$8 sm:$0x3] }
  0x9d   : > { %v686_v38 = vld [vmem:[#allocation2 + $0x141] ss:$8 sm:$0x3]  ;;  %772 = vst.msk [vmem:[#allocation3 + $0xa0] ss:$8 sm:$0x3] %vm2883_vm1, %v704_v33  ;;  %v706_v39 = vadd.f32 %v697_v37, %v685_v35 }
  0x9e   : > { %v699_v40 = vld [vmem:[#allocation2 + $0x157] ss:$8 sm:$0x3]  ;;  %v687_v41 = vld [vmem:[#allocation2 + $0x181] ss:$8 sm:$0x3] }
  0x9f   : > { %775 = vst.msk [vmem:[#allocation3 + $0xd0] ss:$8 sm:$0x3] %vm2883_vm1, %v705_v36  ;;  %v707_v42 = vadd.f32 %v699_v40, %v686_v38  ;;  %v701_v43 = vld [vmem:[#allocation2 + $0x197] ss:$8 sm:$0x3] }
  0xa0   : > { %v442_v44 = vld [vmem:[#allocation2] sm:$0x7e]  ;;  %778 = vst.msk [vmem:[#allocation3 + $0x100] ss:$8 sm:$0x3] %vm2883_vm1, %v706_v39  ;;  %v708_v45 = vadd.f32 %v701_v43, %v687_v41 }
  0xa1   : > { %v443_v47 = vld [vmem:[#allocation2 + $0x8] sm:$0x7e]  ;;  %781 = vst.msk [vmem:[#allocation3 + $0x130] ss:$8 sm:$0x3] %vm2883_vm1, %v707_v42  ;;  %v512_v56 = vadd.f32 %v484_v49, %v442_v44 }
  0xa2   : > { %v444_v51 = vld [vmem:[#allocation2 + $0x40] sm:$0x7e]  ;;  %v458_v52 = vld [vmem:[#allocation2 + $0x50] sm:$0x3f]  ;;  %v445_v54 = vld [vmem:[#allocation2 + $0x48] sm:$0x7e]  ;;  %v513_v57 = vadd.f32 %v485_v50, %v443_v47 }
  0xa3   : > { %784 = vst.msk [vmem:[#allocation3 + $0x160] ss:$8 sm:$0x3] %vm2883_vm1, %v708_v45  ;;  %v486_v53 = vrot.slane %v458_v52, 7  ;;  %v459_v55 = vld [vmem:[#allocation2 + $0x58] sm:$0x3f] }
  0xa4   : > { %v487_v58 = vrot.slane %v459_v55, 7  ;;  %v446_v59 = vld [vmem:[#allocation2 + $0x80] sm:$0x7e]  ;;  %v460_v60 = vld [vmem:[#allocation2 + $0x90] sm:$0x3f] }
  0xa5   : > { %v514_v61 = vadd.f32 %v486_v53, %v444_v51  ;;  %v488_v62 = vrot.slane %v460_v60, 7  ;;  %v447_v63 = vld [vmem:[#allocation2 + $0x88] sm:$0x7e]  ;;  %v461_v1 = vld [vmem:[#allocation2 + $0x98] sm:$0x3f] }
  0xa6   : > { %561 = vst [vmem:[#allocation3 + $0x30] sm:$0x7e] %v512_v56  ;;  %562 = vst [vmem:[#allocation3 + $0x38] sm:$0x7e] %v513_v57  ;;  %v515_v2 = vadd.f32 %v487_v58, %v445_v54  ;;  %v489_v3 = vrot.slane %v461_v1, 7 }
  0xa7   : > { %v448_v4 = vld [vmem:[#allocation2 + $0xc0] sm:$0x7e]  ;;  %v462_v5 = vld [vmem:[#allocation2 + $0xd0] sm:$0x3f]  ;;  %563 = vst [vmem:[#allocation3 + $0x60] sm:$0x7e] %v514_v61  ;;  %v516_v6 = vadd.f32 %v488_v62, %v446_v59 }
  0xa8   : > { %v490_v7 = vrot.slane %v462_v5, 7  ;;  %v449_v8 = vld [vmem:[#allocation2 + $0xc8] sm:$0x7e]  ;;  %v463_v9 = vld [vmem:[#allocation2 + $0xd8] sm:$0x3f]  ;;  %v517_v10 = vadd.f32 %v489_v3, %v447_v63 }
  0xa9   : > { %564 = vst [vmem:[#allocation3 + $0x68] sm:$0x7e] %v515_v2  ;;  %v491_v11 = vrot.slane %v463_v9, 7  ;;  %v450_v12 = vld [vmem:[#allocation2 + $0x100] sm:$0x7e] }
  0xaa   : > { %v464_v13 = vld [vmem:[#allocation2 + $0x110] sm:$0x3f]  ;;  %565 = vst [vmem:[#allocation3 + $0x90] sm:$0x7e] %v516_v6  ;;  %v518_v14 = vadd.f32 %v490_v7, %v448_v4  ;;  %v451_v16 = vld [vmem:[#allocation2 + $0x108] sm:$0x7e] }
  0xab   : > { %v492_v15 = vrot.slane %v464_v13, 7  ;;  %v465_v17 = vld [vmem:[#allocation2 + $0x118] sm:$0x3f]  ;;  %566 = vst [vmem:[#allocation3 + $0x98] sm:$0x7e] %v517_v10  ;;  %v519_v18 = vadd.f32 %v491_v11, %v449_v8 }
  0xac   : > { %v493_v19 = vrot.slane %v465_v17, 7  ;;  %v452_v20 = vld [vmem:[#allocation2 + $0x140] sm:$0x7e]  ;;  %v466_v21 = vld [vmem:[#allocation2 + $0x150] sm:$0x3f] }
  0xad   : > { %567 = vst [vmem:[#allocation3 + $0xc0] sm:$0x7e] %v518_v14  ;;  %v520_v22 = vadd.f32 %v492_v15, %v450_v12  ;;  %v494_v23 = vrot.slane %v466_v21, 7  ;;  %v453_v24 = vld [vmem:[#allocation2 + $0x148] sm:$0x7e] }
  0xae   : > { %v467_v25 = vld [vmem:[#allocation2 + $0x158] sm:$0x3f]  ;;  %568 = vst [vmem:[#allocation3 + $0xc8] sm:$0x7e] %v519_v18  ;;  %v521_v26 = vadd.f32 %v493_v19, %v451_v16  ;;  %v454_v28 = vld [vmem:[#allocation2 + $0x180] sm:$0x7e] }
  0xaf   : > { %v495_v27 = vrot.slane %v467_v25, 7  ;;  %v468_v29 = vld [vmem:[#allocation2 + $0x190] sm:$0x3f]  ;;  %569 = vst [vmem:[#allocation3 + $0xf0] sm:$0x7e] %v520_v22  ;;  %v522_v30 = vadd.f32 %v494_v23, %v452_v20 }
  0xb0   : > { %v496_v31 = vrot.slane %v468_v29, 7  ;;  %v455_v32 = vld [vmem:[#allocation2 + $0x188] sm:$0x7e]  ;;  %v469_v33 = vld [vmem:[#allocation2 + $0x198] sm:$0x3f] }
  0xb1   : > { %570 = vst [vmem:[#allocation3 + $0xf8] sm:$0x7e] %v521_v26  ;;  %v523_v34 = vadd.f32 %v495_v27, %v453_v24  ;;  %v497_v35 = vrot.slane %v469_v33, 7  ;;  %v899_v36 = vld [vmem:[#allocation2 + $0x2] ss:$8 sm:$0x3] }
  0xb2   : > { %571 = vst [vmem:[#allocation3 + $0x120] sm:$0x7e] %v522_v30  ;;  %v524_v37 = vadd.f32 %v496_v31, %v454_v28  ;;  %v913_v38 = vld [vmem:[#allocation2 + $0x30] ss:$8 sm:$0x3] }
  0xb3   : > { %v901_v39 = vld [vmem:[#allocation2 + $0x42] ss:$8 sm:$0x3]  ;;  %572 = vst [vmem:[#allocation3 + $0x128] sm:$0x7e] %v523_v34  ;;  %v525_v40 = vadd.f32 %v497_v35, %v455_v32  ;;  %v926_v41 = vadd.f32 %v913_v38, %v899_v36 }
  0xb4   : > { %v915_v42 = vld [vmem:[#allocation2 + $0x70] ss:$8 sm:$0x3]  ;;  %v903_v43 = vld [vmem:[#allocation2 + $0x82] ss:$8 sm:$0x3] }
  0xb5   : > { %573 = vst [vmem:[#allocation3 + $0x150] sm:$0x7e] %v524_v37  ;;  %v927_v44 = vadd.f32 %v915_v42, %v901_v39  ;;  %v917_v45 = vld [vmem:[#allocation2 + $0xb0] ss:$8 sm:$0x3] }
  0xb6   : > { %v905_v46 = vld [vmem:[#allocation2 + $0xc2] ss:$8 sm:$0x3]  ;;  %574 = vst [vmem:[#allocation3 + $0x158] sm:$0x7e] %v525_v40  ;;  %v928_v47 = vadd.f32 %v917_v45, %v903_v43 }
  0xb7   : > { %1033 = vst.msk [vmem:[#allocation3 + $0x50] ss:$8 sm:$0x3] %vm2883_vm1, %v926_v41  ;;  %v919_v48 = vld [vmem:[#allocation2 + $0xf0] ss:$8 sm:$0x3] }
  0xb8   : > { %v907_v49 = vld [vmem:[#allocation2 + $0x102] ss:$8 sm:$0x3]  ;;  %1036 = vst.msk [vmem:[#allocation3 + $0x80] ss:$8 sm:$0x3] %vm2883_vm1, %v927_v44  ;;  %v929_v50 = vadd.f32 %v919_v48, %v905_v46 }
  0xb9   : > { %v921_v51 = vld [vmem:[#allocation2 + $0x130] ss:$8 sm:$0x3]  ;;  %v909_v52 = vld [vmem:[#allocation2 + $0x142] ss:$8 sm:$0x3] }
  0xba   : > { %v597_v53 = vld [vmem:[#allocation2] sm:$0xfc]  ;;  %1039 = vst.msk [vmem:[#allocation3 + $0xb0] ss:$8 sm:$0x3] %vm2883_vm1, %v928_v47  ;;  %v930_v54 = vadd.f32 %v921_v51, %v907_v49 }
  0xbb   : > { %v923_v55 = vld [vmem:[#allocation2 + $0x170] ss:$8 sm:$0x3]  ;;  %v911_v56 = vld [vmem:[#allocation2 + $0x182] ss:$8 sm:$0x3] }
  0xbc   : > { %1042 = vst.msk [vmem:[#allocation3 + $0xe0] ss:$8 sm:$0x3] %vm2883_vm1, %v929_v50  ;;  %v931_v57 = vadd.f32 %v923_v55, %v909_v52  ;;  %v925_v58 = vld [vmem:[#allocation2 + $0x1b0] ss:$8 sm:$0x3] }
  0xbd   : > { %v611_v59 = vld [vmem:[#allocation2 + $0x10] sm:$0x7e]  ;;  %1045 = vst.msk [vmem:[#allocation3 + $0x110] ss:$8 sm:$0x3] %vm2883_vm1, %v930_v54  ;;  %v932_v60 = vadd.f32 %v925_v58, %v911_v56 }
  0xbe   : > { %v639_v61 = vrot.slane %v611_v59, 7  ;;  %v598_v62 = vld [vmem:[#allocation2 + $0x8] sm:$0xfc]  ;;  %v612_v63 = vld [vmem:[#allocation2 + $0x18] sm:$0x7e] }
  0xbf   : > { %1048 = vst.msk [vmem:[#allocation3 + $0x140] ss:$8 sm:$0x3] %vm2883_vm1, %v931_v57  ;;  %v640_v1 = vrot.slane %v612_v63, 7  ;;  %v599_v2 = vld [vmem:[#allocation2 + $0x40] sm:$0xfc] }
  0xc0   : > { %v613_v3 = vld [vmem:[#allocation2 + $0x50] sm:$0x7e]  ;;  %1051 = vst.msk [vmem:[#allocation3 + $0x170] ss:$8 sm:$0x3] %vm2883_vm1, %v932_v60  ;;  %v667_v4 = vadd.f32 %v639_v61, %v597_v53 }
  0xc1   : > { %v641_v5 = vrot.slane %v613_v3, 7  ;;  %v600_v6 = vld [vmem:[#allocation2 + $0x48] sm:$0xfc]  ;;  %v614_v7 = vld [vmem:[#allocation2 + $0x58] sm:$0x7e]  ;;  %v668_v8 = vadd.f32 %v640_v1, %v598_v62 }
  0xc2   : > { %v642_v9 = vrot.slane %v614_v7, 7  ;;  %v601_v10 = vld [vmem:[#allocation2 + $0x80] sm:$0xfc]  ;;  %v615_v11 = vld [vmem:[#allocation2 + $0x90] sm:$0x7e]  ;;  %v723_v12 = vrot.slane %v667_v4, 1 }
  0xc3   : > { %v669_v13 = vadd.f32 %v641_v5, %v599_v2  ;;  %v643_v14 = vrot.slane %v615_v11, 7  ;;  %v602_v15 = vld [vmem:[#allocation2 + $0x88] sm:$0xfc]  ;;  %v616_v16 = vld [vmem:[#allocation2 + $0x98] sm:$0x7e]  ;;  %v724_v17 = vrot.slane %v668_v8, 1 }
  0xc4   : > { %v670_v18 = vadd.f32 %v642_v9, %v600_v6  ;;  %v644_v19 = vrot.slane %v616_v16, 7  ;;  %v603_v20 = vld [vmem:[#allocation2 + $0xc0] sm:$0xfc]  ;;  %v617_v21 = vld [vmem:[#allocation2 + $0xd0] sm:$0x7e] }
  0xc5   : > { %751 = vst [vmem:[#allocation3 + $0x40] sm:$0x7e] %v723_v12  ;;  %v725_v0 = vrot.slane %v669_v13, 1  ;;  %v671_v22 = vadd.f32 %v643_v14, %v601_v10  ;;  %v645_v23 = vrot.slane %v617_v21, 7  ;;  %v604_v24 = vld [vmem:[#allocation2 + $0xc8] sm:$0xfc] }
  0xc6   : > { %v618_v25 = vld [vmem:[#allocation2 + $0xd8] sm:$0x7e]  ;;  %752 = vst [vmem:[#allocation3 + $0x48] sm:$0x7e] %v724_v17  ;;  %v726_v26 = vrot.slane %v670_v18, 1  ;;  %v672_v27 = vadd.f32 %v644_v19, %v602_v15 }
  0xc7   : > { %v646_v28 = vrot.slane %v618_v25, 7  ;;  %v605_v29 = vld [vmem:[#allocation2 + $0x100] sm:$0xfc]  ;;  %v619_v30 = vld [vmem:[#allocation2 + $0x110] sm:$0x7e]  ;;  %v727_v31 = vrot.slane %v671_v22, 1  ;;  %v673_v32 = vadd.f32 %v645_v23, %v603_v20 }
  0xc8   : > { %753 = vst [vmem:[#allocation3 + $0x70] sm:$0x7e] %v725_v0  ;;  %v647_v33 = vrot.slane %v619_v30, 7  ;;  %v606_v34 = vld [vmem:[#allocation2 + $0x108] sm:$0xfc]  ;;  %v728_v36 = vrot.slane %v672_v27, 1 }
  0xc9   : > { %v620_v35 = vld [vmem:[#allocation2 + $0x118] sm:$0x7e]  ;;  %754 = vst [vmem:[#allocation3 + $0x78] sm:$0x7e] %v726_v26  ;;  %v674_v37 = vadd.f32 %v646_v28, %v604_v24  ;;  %v607_v39 = vld [vmem:[#allocation2 + $0x140] sm:$0xfc] }
  0xca   : > { %v648_v38 = vrot.slane %v620_v35, 7  ;;  %v621_v40 = vld [vmem:[#allocation2 + $0x150] sm:$0x7e]  ;;  %755 = vst [vmem:[#allocation3 + $0xa0] sm:$0x7e] %v727_v31  ;;  %v729_v41 = vrot.slane %v673_v32, 1  ;;  %v675_v42 = vadd.f32 %v647_v33, %v605_v29 }
  0xcb   : > { %v649_v43 = vrot.slane %v621_v40, 7  ;;  %v608_v44 = vld [vmem:[#allocation2 + $0x148] sm:$0xfc]  ;;  %v622_v45 = vld [vmem:[#allocation2 + $0x158] sm:$0x7e]  ;;  %v730_v46 = vrot.slane %v674_v37, 1 }
  0xcc   : > { %756 = vst [vmem:[#allocation3 + $0xa8] sm:$0x7e] %v728_v36  ;;  %v676_v47 = vadd.f32 %v648_v38, %v606_v34  ;;  %v650_v48 = vrot.slane %v622_v45, 7  ;;  %v609_v49 = vld [vmem:[#allocation2 + $0x180] sm:$0xfc]  ;;  %v731_v51 = vrot.slane %v675_v42, 1 }
  0xcd   : > { %v623_v50 = vld [vmem:[#allocation2 + $0x190] sm:$0x7e]  ;;  %757 = vst [vmem:[#allocation3 + $0xd0] sm:$0x7e] %v729_v41  ;;  %v677_v52 = vadd.f32 %v649_v43, %v607_v39  ;;  %v610_v54 = vld [vmem:[#allocation2 + $0x188] sm:$0xfc] }
  0xce   : > { %v651_v53 = vrot.slane %v623_v50, 7  ;;  %v624_v55 = vld [vmem:[#allocation2 + $0x198] sm:$0x7e]  ;;  %758 = vst [vmem:[#allocation3 + $0xd8] sm:$0x7e] %v730_v46  ;;  %v732_v56 = vrot.slane %v676_v47, 1  ;;  %v678_v57 = vadd.f32 %v650_v48, %v608_v44 }
  0xcf   : > { %v652_v58 = vrot.slane %v624_v55, 7  ;;  %v786_v59 = vld [vmem:[#allocation2] sm:$0xf8]  ;;  %v788_v60 = vld [vmem:[#allocation2 + $0x20] sm:$0x1]  ;;  %v733_v61 = vrot.slane %v677_v52, 1 }
  0xd0   : > { %759 = vst [vmem:[#allocation3 + $0x100] sm:$0x7e] %v731_v51  ;;  %v679_v62 = vadd.f32 %v651_v53, %v609_v49  ;;  %v814_v63 = vld [vmem:[#allocation2 + $0x10] sm:$0xfc]  ;;  %v787_v1 = vld [vmem:[#allocation2 + $0x8] sm:$0xf8] }
  0xd1   : > { %760 = vst [vmem:[#allocation3 + $0x108] sm:$0x7e] %v732_v56  ;;  %v734_v2 = vrot.slane %v678_v57, 1  ;;  %v680_v3 = vadd.f32 %v652_v58, %v610_v54  ;;  %v842_v4 = vrot.slane %v814_v63, 7  ;;  %v789_v5 = vld [vmem:[#allocation2 + $0x28] sm:$0x1] }
  0xd2   : > { %v815_v6 = vld [vmem:[#allocation2 + $0x18] sm:$0xfc]  ;;  %761 = vst [vmem:[#allocation3 + $0x130] sm:$0x7e] %v733_v61  ;;  %v735_v7 = vrot.slane %v679_v62, 1 }
  0xd3   : > { %v843_v8 = vrot.slane %v815_v6, 7  ;;  %v790_v9 = vld [vmem:[#allocation2 + $0x40] sm:$0xf8]  ;;  %v792_v10 = vld [vmem:[#allocation2 + $0x60] sm:$0x1]  ;;  %v736_v11 = vrot.slane %v680_v3, 1  ;;  %v870_v12 = vadd.f32 %v842_v4, %v786_v59  ;;  %v872_v13 = vadd.f32 %v842_v4, %v788_v60 }
  0xd4   : > { %762 = vst [vmem:[#allocation3 + $0x138] sm:$0x7e] %v734_v2  ;;  %v816_v14 = vld [vmem:[#allocation2 + $0x50] sm:$0xfc]  ;;  %v791_v15 = vld [vmem:[#allocation2 + $0x48] sm:$0xf8] }
  0xd5   : > { %763 = vst [vmem:[#allocation3 + $0x160] sm:$0x7e] %v735_v7  ;;  %v871_v16 = vadd.f32 %v843_v8, %v787_v1  ;;  %v873_v17 = vadd.f32 %v843_v8, %v789_v5  ;;  %v844_v18 = vrot.slane %v816_v14, 7  ;;  %v793_v19 = vld [vmem:[#allocation2 + $0x68] sm:$0x1]  ;;  %v962_v21 = vrot.slane %v870_v12, 2 }
  0xd6   : > { %v817_v20 = vld [vmem:[#allocation2 + $0x58] sm:$0xfc]  ;;  %764 = vst [vmem:[#allocation3 + $0x168] sm:$0x7e] %v736_v11  ;;  %v963_v0 = vrot.slane %v872_v13, 2 }
  0xd7   : > { %v845_v22 = vrot.slane %v817_v20, 7  ;;  %v794_v23 = vld [vmem:[#allocation2 + $0x80] sm:$0xf8]  ;;  %v965_v24 = vrot.slane %v871_v16, 2  ;;  %v966_v25 = vrot.slane %v873_v17, 2  ;;  %v874_v26 = vadd.f32 %v844_v18, %v790_v9 }
  0xd8   : > { %v876_v27 = vadd.f32 %v844_v18, %v792_v10  ;;  %v796_v28 = vld [vmem:[#allocation2 + $0xa0] sm:$0x1]  ;;  %v818_v29 = vld [vmem:[#allocation2 + $0x90] sm:$0xfc]  ;;  %v964_v30 = vsel %vm961_vm2, %v962_v21, %v963_v0  ;;  %v795_v34 = vld [vmem:[#allocation2 + $0x88] sm:$0xf8] }
  0xd9   : > { %v875_v31 = vadd.f32 %v845_v22, %v791_v15  ;;  %v877_v32 = vadd.f32 %v845_v22, %v793_v19  ;;  %v846_v33 = vrot.slane %v818_v29, 7  ;;  %v797_v35 = vld [vmem:[#allocation2 + $0xa8] sm:$0x1]  ;;  %1018 = vst [vmem:[#allocation3 + $0x50] sm:$0x7e] %v964_v30  ;;  %v967_v36 = vsel %vm961_vm2, %v965_v24, %v966_v25 }
  0xda   : > { %v968_v37 = vrot.slane %v874_v26, 2  ;;  %v969_v38 = vrot.slane %v876_v27, 2  ;;  %v819_v39 = vld [vmem:[#allocation2 + $0x98] sm:$0xfc]  ;;  %v798_v40 = vld [vmem:[#allocation2 + $0xc0] sm:$0xf8] }
  0xdb   : > { %1019 = vst [vmem:[#allocation3 + $0x58] sm:$0x7e] %v967_v36  ;;  %v971_v41 = vrot.slane %v875_v31, 2  ;;  %v972_v42 = vrot.slane %v877_v32, 2  ;;  %v878_v43 = vadd.f32 %v846_v33, %v794_v23  ;;  %v880_v44 = vadd.f32 %v846_v33, %v796_v28  ;;  %v800_v45 = vld [vmem:[#allocation2 + $0xe0] sm:$0x1] }
  0xdc   : > { %v820_v46 = vld [vmem:[#allocation2 + $0xd0] sm:$0xfc]  ;;  %v970_v47 = vsel %vm961_vm2, %v968_v37, %v969_v38  ;;  %v847_v48 = vrot.slane %v819_v39, 7  ;;  %v799_v50 = vld [vmem:[#allocation2 + $0xc8] sm:$0xf8] }
  0xdd   : > { %v848_v49 = vrot.slane %v820_v46, 7  ;;  %1020 = vst [vmem:[#allocation3 + $0x80] sm:$0x7e] %v970_v47  ;;  %v973_v51 = vsel %vm961_vm2, %v971_v41, %v972_v42  ;;  %v974_v52 = vrot.slane %v878_v43, 2  ;;  %v975_v53 = vrot.slane %v880_v44, 2 }
  0xde   : > { %v801_v54 = vld [vmem:[#allocation2 + $0xe8] sm:$0x1]  ;;  %v821_v55 = vld [vmem:[#allocation2 + $0xd8] sm:$0xfc]  ;;  %1021 = vst [vmem:[#allocation3 + $0x88] sm:$0x7e] %v973_v51  ;;  %v879_v56 = vadd.f32 %v847_v48, %v795_v34  ;;  %v881_v57 = vadd.f32 %v847_v48, %v797_v35 }
  0xdf   : > { %v882_v58 = vadd.f32 %v848_v49, %v798_v40  ;;  %v884_v59 = vadd.f32 %v848_v49, %v800_v45  ;;  %v802_v60 = vld [vmem:[#allocation2 + $0x100] sm:$0xf8]  ;;  %v804_v61 = vld [vmem:[#allocation2 + $0x120] sm:$0x1]  ;;  %v822_v62 = vld [vmem:[#allocation2 + $0x110] sm:$0xfc]  ;;  %v976_v63 = vsel %vm961_vm2, %v974_v52, %v975_v53 }
  0xe0   : > { %v849_v1 = vrot.slane %v821_v55, 7  ;;  %v850_v2 = vrot.slane %v822_v62, 7  ;;  %v803_v3 = vld [vmem:[#allocation2 + $0x108] sm:$0xf8]  ;;  %v823_v4 = vld [vmem:[#allocation2 + $0x118] sm:$0xfc] }
  0xe1   : > { %1022 = vst [vmem:[#allocation3 + $0xb0] sm:$0x7e] %v976_v63  ;;  %v977_v5 = vrot.slane %v879_v56, 2  ;;  %v978_v6 = vrot.slane %v881_v57, 2  ;;  %v980_v7 = vrot.slane %v882_v58, 2  ;;  %v981_v8 = vrot.slane %v884_v59, 2 }
  0xe2   : > { %v805_v9 = vld [vmem:[#allocation2 + $0x128] sm:$0x1]  ;;  %v883_v10 = vadd.f32 %v849_v1, %v799_v50  ;;  %v885_v11 = vadd.f32 %v849_v1, %v801_v54  ;;  %v886_v12 = vadd.f32 %v850_v2, %v802_v60  ;;  %v888_v13 = vadd.f32 %v850_v2, %v804_v61  ;;  %v806_v14 = vld [vmem:[#allocation2 + $0x140] sm:$0xf8]  ;;  %v808_v15 = vld [vmem:[#allocation2 + $0x160] sm:$0x1] }
  0xe3   : > { %v824_v16 = vld [vmem:[#allocation2 + $0x150] sm:$0xfc]  ;;  %v979_v17 = vsel %vm961_vm2, %v977_v5, %v978_v6  ;;  %v982_v18 = vsel %vm961_vm2, %v980_v7, %v981_v8  ;;  %v851_v19 = vrot.slane %v823_v4, 7  ;;  %v807_v21 = vld [vmem:[#allocation2 + $0x148] sm:$0xf8] }
  0xe4   : > { %v852_v20 = vrot.slane %v824_v16, 7  ;;  %v825_v0 = vld [vmem:[#allocation2 + $0x158] sm:$0xfc]  ;;  %1023 = vst [vmem:[#allocation3 + $0xb8] sm:$0x7e] %v979_v17  ;;  %v983_v22 = vrot.slane %v883_v10, 2 }
  0xe5   : > { %1024 = vst [vmem:[#allocation3 + $0xe0] sm:$0x7e] %v982_v18  ;;  %v984_v23 = vrot.slane %v885_v11, 2  ;;  %v986_v24 = vrot.slane %v886_v12, 2  ;;  %v987_v25 = vrot.slane %v888_v13, 2  ;;  %v887_v27 = vadd.f32 %v851_v19, %v803_v3 }
  0xe6   : > { %v809_v26 = vld [vmem:[#allocation2 + $0x168] sm:$0x1]  ;;  %v889_v28 = vadd.f32 %v851_v19, %v805_v9  ;;  %v890_v29 = vadd.f32 %v852_v20, %v806_v14  ;;  %v892_v30 = vadd.f32 %v852_v20, %v808_v15  ;;  %v810_v31 = vld [vmem:[#allocation2 + $0x180] sm:$0xf8]  ;;  %v812_v32 = vld [vmem:[#allocation2 + $0x1a0] sm:$0x1] }
  0xe7   : > { %v826_v33 = vld [vmem:[#allocation2 + $0x190] sm:$0xfc]  ;;  %v985_v34 = vsel %vm961_vm2, %v983_v22, %v984_v23  ;;  %v988_v35 = vsel %vm961_vm2, %v986_v24, %v987_v25  ;;  %v853_v36 = vrot.slane %v825_v0, 7  ;;  %v827_v38 = vld [vmem:[#allocation2 + $0x198] sm:$0xfc]  ;;  %v989_v39 = vrot.slane %v887_v27, 2 }
  0xe8   : > { %v854_v37 = vrot.slane %v826_v33, 7  ;;  %1025 = vst [vmem:[#allocation3 + $0xe8] sm:$0x7e] %v985_v34  ;;  %1026 = vst [vmem:[#allocation3 + $0x110] sm:$0x7e] %v988_v35  ;;  %v990_v40 = vrot.slane %v889_v28, 2 }
  0xe9   : > { %v992_v41 = vrot.slane %v890_v29, 2  ;;  %v993_v42 = vrot.slane %v892_v30, 2  ;;  %v891_v43 = vadd.f32 %v853_v36, %v807_v21  ;;  %v893_v44 = vadd.f32 %v853_v36, %v809_v26  ;;  %v811_v47 = vld [vmem:[#allocation2 + $0x188] sm:$0xf8]  ;;  %v813_v48 = vld [vmem:[#allocation2 + $0x1a8] sm:$0x1] }
  0xea   : > { %v894_v45 = vadd.f32 %v854_v37, %v810_v31  ;;  %v896_v46 = vadd.f32 %v854_v37, %v812_v32  ;;  %v991_v49 = vsel %vm961_vm2, %v989_v39, %v990_v40  ;;  %v855_v51 = vrot.slane %v827_v38, 7 }
  0xeb   : > { %v994_v50 = vsel %vm961_vm2, %v992_v41, %v993_v42  ;;  %1027 = vst [vmem:[#allocation3 + $0x118] sm:$0x7e] %v991_v49  ;;  %v995_v52 = vrot.slane %v891_v43, 2  ;;  %v996_v53 = vrot.slane %v893_v44, 2 }
  0xec   : > { %1028 = vst [vmem:[#allocation3 + $0x140] sm:$0x7e] %v994_v50  ;;  %v998_v54 = vrot.slane %v894_v45, 2  ;;  %v999_v55 = vrot.slane %v896_v46, 2  ;;  %v895_v56 = vadd.f32 %v855_v51, %v811_v47  ;;  %v897_v57 = vadd.f32 %v855_v51, %v813_v48 }
  0xed   : > { %v997_v58 = vsel %vm961_vm2, %v995_v52, %v996_v53 }
  0xee   : > { %v1000_v59 = vsel %vm961_vm2, %v998_v54, %v999_v55  ;;  %1029 = vst [vmem:[#allocation3 + $0x148] sm:$0x7e] %v997_v58  ;;  %v1001_v60 = vrot.slane %v895_v56, 2  ;;  %v1002_v61 = vrot.slane %v897_v57, 2 }
  0xef   : > { %1030 = vst [vmem:[#allocation3 + $0x170] sm:$0x7e] %v1000_v59 }
  0xf0   : > { %v1003_v62 = vsel %vm961_vm2, %v1001_v60, %v1002_v61 }
  0xf1   : > { %1031 = vst [vmem:[#allocation3 + $0x178] sm:$0x7e] %v1003_v62 }
  0xf2 PF: > { %v1142_v63 = vld [vmem:[%s2523_s24 + $0x1e8] sm:$0xff]  ;;  %v1141_v2 = vld [vmem:[%s2523_s24 + $0x1e0] sm:$0xff]  ;;  %s2313_s15 = smul.u32 48, %s2463_s13 }
  0xf3   : > { %v1270_v1 = vld [vmem:[%s2523_s24 + $0x5e8] sm:$0xff]  ;;  %1538 = vmatprep.subr.mxu0 %v1142_v63  ;;  %v1269_v3 = vld [vmem:[%s2523_s24 + $0x5e0] sm:$0xff] }
  0xf4   : > { %1645 = vmatprep.subr.mxu1 %v1270_v1  ;;  %v1138_v4 = vld [vmem:[%s2523_s24 + $0x1c8] sm:$0xff]  ;;  %1539 = vmatpush1.msra.mxu0 %v1141_v2  ;;  %v1137_v6 = vld [vmem:[%s2523_s24 + $0x1c0] sm:$0xff]  ;;  %s3071_s13 = scalar_lea.vmem [#allocation3], %s2313_s15 }
  0xf5   : > { %v1266_v5 = vld [vmem:[%s2523_s24 + $0x5c8] sm:$0xff]  ;;  %1646 = vmatpush1.msra.mxu1 %v1269_v3  ;;  %v1265_v7 = vld [vmem:[%s2523_s24 + $0x5c0] sm:$0xff]  ;;  %1540 = vmatprep.subr.mxu0 %v1138_v4 }
  0xf6   : > { %v1134_v8 = vld [vmem:[%s2523_s24 + $0x1a8] sm:$0xff]  ;;  %1647 = vmatprep.subr.mxu1 %v1266_v5  ;;  %v1133_v10 = vld [vmem:[%s2523_s24 + $0x1a0] sm:$0xff]  ;;  %1541 = vmatpush1.msra.mxu0 %v1137_v6 }
  0xf7   : > { %v1262_v9 = vld [vmem:[%s2523_s24 + $0x5a8] sm:$0xff]  ;;  %v1261_v11 = vld [vmem:[%s2523_s24 + $0x5a0] sm:$0xff]  ;;  %1648 = vmatpush1.msra.mxu1 %v1265_v7  ;;  %1542 = vmatprep.subr.mxu0 %v1134_v8 }
  0xf8   : > { %v1130_v12 = vld [vmem:[%s2523_s24 + $0x188] sm:$0xff]  ;;  %1649 = vmatprep.subr.mxu1 %v1262_v9  ;;  %v1129_v14 = vld [vmem:[%s2523_s24 + $0x180] sm:$0xff]  ;;  %1543 = vmatpush1.msra.mxu0 %v1133_v10 }
  0xf9   : > { %v1258_v13 = vld [vmem:[%s2523_s24 + $0x588] sm:$0xff]  ;;  %v1257_v15 = vld [vmem:[%s2523_s24 + $0x580] sm:$0xff]  ;;  %1650 = vmatpush1.msra.mxu1 %v1261_v11  ;;  %1544 = vmatprep.subr.mxu0 %v1130_v12 }
  0xfa   : > { %v1126_v16 = vld [vmem:[%s2523_s24 + $0x168] sm:$0xff]  ;;  %1651 = vmatprep.subr.mxu1 %v1258_v13  ;;  %v1125_v18 = vld [vmem:[%s2523_s24 + $0x160] sm:$0xff]  ;;  %1545 = vmatpush1.msra.mxu0 %v1129_v14 }
  0xfb   : > { %v1254_v17 = vld [vmem:[%s2523_s24 + $0x568] sm:$0xff]  ;;  %v1253_v19 = vld [vmem:[%s2523_s24 + $0x560] sm:$0xff]  ;;  %1652 = vmatpush1.msra.mxu1 %v1257_v15  ;;  %1546 = vmatprep.subr.mxu0 %v1126_v16 }
  0xfc   : > { %v1122_v20 = vld [vmem:[%s2523_s24 + $0x148] sm:$0xff]  ;;  %1653 = vmatprep.subr.mxu1 %v1254_v17  ;;  %v1121_v0 = vld [vmem:[%s2523_s24 + $0x140] sm:$0xff]  ;;  %1547 = vmatpush1.msra.mxu0 %v1125_v18 }
  0xfd   : > { %v1250_v21 = vld [vmem:[%s2523_s24 + $0x548] sm:$0xff]  ;;  %v1249_v22 = vld [vmem:[%s2523_s24 + $0x540] sm:$0xff]  ;;  %1654 = vmatpush1.msra.mxu1 %v1253_v19  ;;  %1548 = vmatprep.subr.mxu0 %v1122_v20 }
  0xfe   : > { %v1118_v23 = vld [vmem:[%s2523_s24 + $0x128] sm:$0xff]  ;;  %1655 = vmatprep.subr.mxu1 %v1250_v21  ;;  %v1117_v25 = vld [vmem:[%s2523_s24 + $0x120] sm:$0xff]  ;;  %1549 = vmatpush1.msra.mxu0 %v1121_v0 }
  0xff   : > { %v1246_v24 = vld [vmem:[%s2523_s24 + $0x528] sm:$0xff]  ;;  %v1245_v26 = vld [vmem:[%s2523_s24 + $0x520] sm:$0xff]  ;;  %1656 = vmatpush1.msra.mxu1 %v1249_v22  ;;  %1550 = vmatprep.subr.mxu0 %v1118_v23 }
 0x100   : > { %v1114_v27 = vld [vmem:[%s2523_s24 + $0x108] sm:$0xff]  ;;  %1657 = vmatprep.subr.mxu1 %v1246_v24  ;;  %v1113_v29 = vld [vmem:[%s2523_s24 + $0x100] sm:$0xff]  ;;  %1551 = vmatpush1.msra.mxu0 %v1117_v25 }
 0x101   : > { %v1242_v28 = vld [vmem:[%s2523_s24 + $0x508] sm:$0xff]  ;;  %v1241_v30 = vld [vmem:[%s2523_s24 + $0x500] sm:$0xff]  ;;  %1658 = vmatpush1.msra.mxu1 %v1245_v26  ;;  %1552 = vmatprep.subr.mxu0 %v1114_v27 }
 0x102   : > { %v1110_v31 = vld [vmem:[%s2523_s24 + $0xe8] sm:$0xff]  ;;  %1659 = vmatprep.subr.mxu1 %v1242_v28  ;;  %v1109_v33 = vld [vmem:[%s2523_s24 + $0xe0] sm:$0xff]  ;;  %1553 = vmatpush1.msra.mxu0 %v1113_v29 }
 0x103   : > { %v1238_v32 = vld [vmem:[%s2523_s24 + $0x4e8] sm:$0xff]  ;;  %v1237_v34 = vld [vmem:[%s2523_s24 + $0x4e0] sm:$0xff]  ;;  %1660 = vmatpush1.msra.mxu1 %v1241_v30  ;;  %1554 = vmatprep.subr.mxu0 %v1110_v31 }
 0x104   : > { %v1106_v35 = vld [vmem:[%s2523_s24 + $0xc8] sm:$0xff]  ;;  %1661 = vmatprep.subr.mxu1 %v1238_v32  ;;  %v1105_v37 = vld [vmem:[%s2523_s24 + $0xc0] sm:$0xff]  ;;  %1555 = vmatpush1.msra.mxu0 %v1109_v33 }
 0x105   : > { %v1234_v36 = vld [vmem:[%s2523_s24 + $0x4c8] sm:$0xff]  ;;  %v1233_v38 = vld [vmem:[%s2523_s24 + $0x4c0] sm:$0xff]  ;;  %1662 = vmatpush1.msra.mxu1 %v1237_v34  ;;  %1556 = vmatprep.subr.mxu0 %v1106_v35 }
 0x106   : > { %v1102_v39 = vld [vmem:[%s2523_s24 + $0xa8] sm:$0xff]  ;;  %1663 = vmatprep.subr.mxu1 %v1234_v36  ;;  %v1101_v41 = vld [vmem:[%s2523_s24 + $0xa0] sm:$0xff]  ;;  %1557 = vmatpush1.msra.mxu0 %v1105_v37 }
 0x107   : > { %v1230_v40 = vld [vmem:[%s2523_s24 + $0x4a8] sm:$0xff]  ;;  %v1229_v42 = vld [vmem:[%s2523_s24 + $0x4a0] sm:$0xff]  ;;  %1664 = vmatpush1.msra.mxu1 %v1233_v38  ;;  %1558 = vmatprep.subr.mxu0 %v1102_v39 }
 0x108   : > { %v1098_v43 = vld [vmem:[%s2523_s24 + $0x88] sm:$0xff]  ;;  %1665 = vmatprep.subr.mxu1 %v1230_v40  ;;  %v1097_v45 = vld [vmem:[%s2523_s24 + $0x80] sm:$0xff]  ;;  %1559 = vmatpush1.msra.mxu0 %v1101_v41 }
 0x109   : > { %v1226_v44 = vld [vmem:[%s2523_s24 + $0x488] sm:$0xff]  ;;  %v1225_v46 = vld [vmem:[%s2523_s24 + $0x480] sm:$0xff]  ;;  %1666 = vmatpush1.msra.mxu1 %v1229_v42  ;;  %1560 = vmatprep.subr.mxu0 %v1098_v43 }
 0x10a   : > { %v1094_v47 = vld [vmem:[%s2523_s24 + $0x68] sm:$0xff]  ;;  %1667 = vmatprep.subr.mxu1 %v1226_v44  ;;  %v1093_v49 = vld [vmem:[%s2523_s24 + $0x60] sm:$0xff]  ;;  %1561 = vmatpush1.msra.mxu0 %v1097_v45 }
 0x10b   : > { %v1222_v48 = vld [vmem:[%s2523_s24 + $0x468] sm:$0xff]  ;;  %v1221_v50 = vld [vmem:[%s2523_s24 + $0x460] sm:$0xff]  ;;  %1668 = vmatpush1.msra.mxu1 %v1225_v46  ;;  %1562 = vmatprep.subr.mxu0 %v1094_v47 }
 0x10c   : > { %v1090_v51 = vld [vmem:[%s2523_s24 + $0x48] sm:$0xff]  ;;  %1669 = vmatprep.subr.mxu1 %v1222_v48  ;;  %v1089_v53 = vld [vmem:[%s2523_s24 + $0x40] sm:$0xff]  ;;  %1563 = vmatpush1.msra.mxu0 %v1093_v49 }
 0x10d   : > { %v1218_v52 = vld [vmem:[%s2523_s24 + $0x448] sm:$0xff]  ;;  %v1217_v54 = vld [vmem:[%s2523_s24 + $0x440] sm:$0xff]  ;;  %1670 = vmatpush1.msra.mxu1 %v1221_v50  ;;  %1564 = vmatprep.subr.mxu0 %v1090_v51 }
 0x10e   : > { %v1086_v55 = vld [vmem:[%s2523_s24 + $0x28] sm:$0xff]  ;;  %1671 = vmatprep.subr.mxu1 %v1218_v52  ;;  %v1085_v57 = vld [vmem:[%s2523_s24 + $0x20] sm:$0xff]  ;;  %1565 = vmatpush1.msra.mxu0 %v1089_v53 }
 0x10f   : > { %v1214_v56 = vld [vmem:[%s2523_s24 + $0x428] sm:$0xff]  ;;  %v1213_v58 = vld [vmem:[%s2523_s24 + $0x420] sm:$0xff]  ;;  %1672 = vmatpush1.msra.mxu1 %v1217_v54  ;;  %1566 = vmatprep.subr.mxu0 %v1086_v55 }
 0x110   : > { %v1082_v59 = vld [vmem:[%s2523_s24 + $0x8] sm:$0xff]  ;;  %1673 = vmatprep.subr.mxu1 %v1214_v56  ;;  %v1081_v61 = vld [vmem:[%s2523_s24] sm:$0xff]  ;;  %1567 = vmatpush1.msra.mxu0 %v1085_v57 }
 0x111   : > { %v1210_v60 = vld [vmem:[%s2523_s24 + $0x408] sm:$0xff]  ;;  %v1209_v62 = vld [vmem:[%s2523_s24 + $0x400] sm:$0xff]  ;;  %1674 = vmatpush1.msra.mxu1 %v1213_v58  ;;  %1568 = vmatprep.subr.mxu0 %v1082_v59 }
 0x112   : > { %v1206_v63 = vld [vmem:[%s2523_s24 + $0x3e8] sm:$0xff]  ;;  %1675 = vmatprep.subr.mxu1 %v1210_v60  ;;  %v1205_v2 = vld [vmem:[%s2523_s24 + $0x3e0] sm:$0xff]  ;;  %1569 = vmatpush1.msra.mxu0 %v1081_v61 }
 0x113   : > { %v1334_v1 = vld [vmem:[%s2523_s24 + $0x7e8] sm:$0xff]  ;;  %v1333_v3 = vld [vmem:[%s2523_s24 + $0x7e0] sm:$0xff]  ;;  %1676 = vmatpush1.msra.mxu1 %v1209_v62  ;;  %1570 = vmatprep.subr.mxu0 %v1206_v63  ;;  %v3074_v62 = vld [vmem:[%s3071_s13 + $0x8] sm:$0xff] }
 0x114   : > { %v1202_v4 = vld [vmem:[%s2523_s24 + $0x3c8] sm:$0xff]  ;;  %1677 = vmatprep.subr.mxu1 %v1334_v1  ;;  %v1201_v6 = vld [vmem:[%s2523_s24 + $0x3c0] sm:$0xff]  ;;  %1571 = vmatpush2.msra.mxu0 %v1205_v2  ;;  %v3079_v2 = vld [vmem:[%s3071_s13] sm:$0xff] }
 0x115   : > { %v1330_v5 = vld [vmem:[%s2523_s24 + $0x7c8] sm:$0xff]  ;;  %v1329_v7 = vld [vmem:[%s2523_s24 + $0x7c0] sm:$0xff]  ;;  %1678 = vmatpush2.msra.mxu1 %v1333_v3  ;;  %1572 = vmatprep.subr.mxu0 %v1202_v4 }
 0x116   : > { %v1198_v8 = vld [vmem:[%s2523_s24 + $0x3a8] sm:$0xff]  ;;  %1679 = vmatprep.subr.mxu1 %v1330_v5  ;;  %v1197_v10 = vld [vmem:[%s2523_s24 + $0x3a0] sm:$0xff]  ;;  %1573 = vmatpush2.msra.mxu0 %v1201_v6  ;;  %v1144_v5 = vld [vmem:[%s2523_s24 + $0x1f8] sm:$0xff] }
 0x117   : > { %v1326_v9 = vld [vmem:[%s2523_s24 + $0x7a8] sm:$0xff]  ;;  %v1325_v11 = vld [vmem:[%s2523_s24 + $0x7a0] sm:$0xff]  ;;  %1680 = vmatpush2.msra.mxu1 %v1329_v7  ;;  %1574 = vmatprep.subr.mxu0 %v1198_v8  ;;  %v1143_v7 = vld [vmem:[%s2523_s24 + $0x1f0] sm:$0xff] }
 0x118   : > { %v1194_v12 = vld [vmem:[%s2523_s24 + $0x388] sm:$0xff]  ;;  %1681 = vmatprep.subr.mxu1 %v1326_v9  ;;  %v1193_v14 = vld [vmem:[%s2523_s24 + $0x380] sm:$0xff]  ;;  %1575 = vmatpush2.msra.mxu0 %v1197_v10  ;;  %v1140_v9 = vld [vmem:[%s2523_s24 + $0x1d8] sm:$0xff] }
 0x119   : > { %v1322_v13 = vld [vmem:[%s2523_s24 + $0x788] sm:$0xff]  ;;  %v1321_v15 = vld [vmem:[%s2523_s24 + $0x780] sm:$0xff]  ;;  %1682 = vmatpush2.msra.mxu1 %v1325_v11  ;;  %1576 = vmatprep.subr.mxu0 %v1194_v12  ;;  %v1139_v11 = vld [vmem:[%s2523_s24 + $0x1d0] sm:$0xff] }
 0x11a   : > { %v1190_v16 = vld [vmem:[%s2523_s24 + $0x368] sm:$0xff]  ;;  %1683 = vmatprep.subr.mxu1 %v1322_v13  ;;  %v1189_v18 = vld [vmem:[%s2523_s24 + $0x360] sm:$0xff]  ;;  %1577 = vmatpush2.msra.mxu0 %v1193_v14  ;;  %v1136_v13 = vld [vmem:[%s2523_s24 + $0x1b8] sm:$0xff] }
 0x11b   : > { %v1318_v17 = vld [vmem:[%s2523_s24 + $0x768] sm:$0xff]  ;;  %v1317_v19 = vld [vmem:[%s2523_s24 + $0x760] sm:$0xff]  ;;  %1684 = vmatpush2.msra.mxu1 %v1321_v15  ;;  %1578 = vmatprep.subr.mxu0 %v1190_v16  ;;  %v1135_v15 = vld [vmem:[%s2523_s24 + $0x1b0] sm:$0xff] }
 0x11c   : > { %v1186_v20 = vld [vmem:[%s2523_s24 + $0x348] sm:$0xff]  ;;  %1685 = vmatprep.subr.mxu1 %v1318_v17  ;;  %v1185_v0 = vld [vmem:[%s2523_s24 + $0x340] sm:$0xff]  ;;  %1579 = vmatpush2.msra.mxu0 %v1189_v18  ;;  %v1132_v17 = vld [vmem:[%s2523_s24 + $0x198] sm:$0xff] }
 0x11d   : > { %v1314_v21 = vld [vmem:[%s2523_s24 + $0x748] sm:$0xff]  ;;  %v1313_v22 = vld [vmem:[%s2523_s24 + $0x740] sm:$0xff]  ;;  %1686 = vmatpush2.msra.mxu1 %v1317_v19  ;;  %1580 = vmatprep.subr.mxu0 %v1186_v20  ;;  %v1131_v19 = vld [vmem:[%s2523_s24 + $0x190] sm:$0xff] }
 0x11e   : > { %v1182_v23 = vld [vmem:[%s2523_s24 + $0x328] sm:$0xff]  ;;  %1687 = vmatprep.subr.mxu1 %v1314_v21  ;;  %v1181_v25 = vld [vmem:[%s2523_s24 + $0x320] sm:$0xff]  ;;  %1581 = vmatpush2.msra.mxu0 %v1185_v0  ;;  %v1128_v21 = vld [vmem:[%s2523_s24 + $0x178] sm:$0xff] }
 0x11f   : > { %v1310_v24 = vld [vmem:[%s2523_s24 + $0x728] sm:$0xff]  ;;  %v1309_v26 = vld [vmem:[%s2523_s24 + $0x720] sm:$0xff]  ;;  %1688 = vmatpush2.msra.mxu1 %v1313_v22  ;;  %1582 = vmatprep.subr.mxu0 %v1182_v23  ;;  %v1127_v22 = vld [vmem:[%s2523_s24 + $0x170] sm:$0xff] }
 0x120   : > { %v1178_v27 = vld [vmem:[%s2523_s24 + $0x308] sm:$0xff]  ;;  %1689 = vmatprep.subr.mxu1 %v1310_v24  ;;  %v1177_v29 = vld [vmem:[%s2523_s24 + $0x300] sm:$0xff]  ;;  %1583 = vmatpush2.msra.mxu0 %v1181_v25  ;;  %v1124_v24 = vld [vmem:[%s2523_s24 + $0x158] sm:$0xff] }
 0x121   : > { %v1306_v28 = vld [vmem:[%s2523_s24 + $0x708] sm:$0xff]  ;;  %v1305_v30 = vld [vmem:[%s2523_s24 + $0x700] sm:$0xff]  ;;  %1690 = vmatpush2.msra.mxu1 %v1309_v26  ;;  %1584 = vmatprep.subr.mxu0 %v1178_v27  ;;  %v1123_v26 = vld [vmem:[%s2523_s24 + $0x150] sm:$0xff] }
 0x122   : > { %v1174_v31 = vld [vmem:[%s2523_s24 + $0x2e8] sm:$0xff]  ;;  %1691 = vmatprep.subr.mxu1 %v1306_v28  ;;  %v1173_v33 = vld [vmem:[%s2523_s24 + $0x2e0] sm:$0xff]  ;;  %1585 = vmatpush2.msra.mxu0 %v1177_v29  ;;  %v1120_v28 = vld [vmem:[%s2523_s24 + $0x138] sm:$0xff] }
 0x123   : > { %v1302_v32 = vld [vmem:[%s2523_s24 + $0x6e8] sm:$0xff]  ;;  %v1301_v34 = vld [vmem:[%s2523_s24 + $0x6e0] sm:$0xff]  ;;  %1692 = vmatpush2.msra.mxu1 %v1305_v30  ;;  %1586 = vmatprep.subr.mxu0 %v1174_v31  ;;  %v1119_v30 = vld [vmem:[%s2523_s24 + $0x130] sm:$0xff] }
 0x124   : > { %v1170_v35 = vld [vmem:[%s2523_s24 + $0x2c8] sm:$0xff]  ;;  %1693 = vmatprep.subr.mxu1 %v1302_v32  ;;  %v1169_v37 = vld [vmem:[%s2523_s24 + $0x2c0] sm:$0xff]  ;;  %1587 = vmatpush2.msra.mxu0 %v1173_v33  ;;  %v1116_v32 = vld [vmem:[%s2523_s24 + $0x118] sm:$0xff] }
 0x125   : > { %v1298_v36 = vld [vmem:[%s2523_s24 + $0x6c8] sm:$0xff]  ;;  %v1297_v38 = vld [vmem:[%s2523_s24 + $0x6c0] sm:$0xff]  ;;  %1694 = vmatpush2.msra.mxu1 %v1301_v34  ;;  %1588 = vmatprep.subr.mxu0 %v1170_v35  ;;  %v1115_v34 = vld [vmem:[%s2523_s24 + $0x110] sm:$0xff] }
 0x126   : > { %v1166_v39 = vld [vmem:[%s2523_s24 + $0x2a8] sm:$0xff]  ;;  %1695 = vmatprep.subr.mxu1 %v1298_v36  ;;  %v1165_v41 = vld [vmem:[%s2523_s24 + $0x2a0] sm:$0xff]  ;;  %1589 = vmatpush2.msra.mxu0 %v1169_v37  ;;  %v1112_v36 = vld [vmem:[%s2523_s24 + $0xf8] sm:$0xff] }
 0x127   : > { %v1294_v40 = vld [vmem:[%s2523_s24 + $0x6a8] sm:$0xff]  ;;  %v1293_v42 = vld [vmem:[%s2523_s24 + $0x6a0] sm:$0xff]  ;;  %1696 = vmatpush2.msra.mxu1 %v1297_v38  ;;  %1590 = vmatprep.subr.mxu0 %v1166_v39  ;;  %v1111_v38 = vld [vmem:[%s2523_s24 + $0xf0] sm:$0xff] }
 0x128   : > { %v1162_v43 = vld [vmem:[%s2523_s24 + $0x288] sm:$0xff]  ;;  %1697 = vmatprep.subr.mxu1 %v1294_v40  ;;  %v1161_v45 = vld [vmem:[%s2523_s24 + $0x280] sm:$0xff]  ;;  %1591 = vmatpush2.msra.mxu0 %v1165_v41  ;;  %v1108_v40 = vld [vmem:[%s2523_s24 + $0xd8] sm:$0xff] }
 0x129   : > { %v1290_v44 = vld [vmem:[%s2523_s24 + $0x688] sm:$0xff]  ;;  %v1289_v46 = vld [vmem:[%s2523_s24 + $0x680] sm:$0xff]  ;;  %1698 = vmatpush2.msra.mxu1 %v1293_v42  ;;  %1592 = vmatprep.subr.mxu0 %v1162_v43  ;;  %v1107_v42 = vld [vmem:[%s2523_s24 + $0xd0] sm:$0xff] }
 0x12a   : > { %v1158_v47 = vld [vmem:[%s2523_s24 + $0x268] sm:$0xff]  ;;  %1699 = vmatprep.subr.mxu1 %v1290_v44  ;;  %v1157_v49 = vld [vmem:[%s2523_s24 + $0x260] sm:$0xff]  ;;  %1593 = vmatpush2.msra.mxu0 %v1161_v45  ;;  %v1104_v44 = vld [vmem:[%s2523_s24 + $0xb8] sm:$0xff] }
 0x12b   : > { %v1286_v48 = vld [vmem:[%s2523_s24 + $0x668] sm:$0xff]  ;;  %v1285_v50 = vld [vmem:[%s2523_s24 + $0x660] sm:$0xff]  ;;  %1700 = vmatpush2.msra.mxu1 %v1289_v46  ;;  %1594 = vmatprep.subr.mxu0 %v1158_v47  ;;  %v1103_v46 = vld [vmem:[%s2523_s24 + $0xb0] sm:$0xff] }
 0x12c   : > { %v1154_v51 = vld [vmem:[%s2523_s24 + $0x248] sm:$0xff]  ;;  %1701 = vmatprep.subr.mxu1 %v1286_v48  ;;  %v1153_v53 = vld [vmem:[%s2523_s24 + $0x240] sm:$0xff]  ;;  %1595 = vmatpush2.msra.mxu0 %v1157_v49  ;;  %v1100_v48 = vld [vmem:[%s2523_s24 + $0x98] sm:$0xff] }
 0x12d   : > { %v1282_v52 = vld [vmem:[%s2523_s24 + $0x648] sm:$0xff]  ;;  %v1281_v54 = vld [vmem:[%s2523_s24 + $0x640] sm:$0xff]  ;;  %1702 = vmatpush2.msra.mxu1 %v1285_v50  ;;  %1596 = vmatprep.subr.mxu0 %v1154_v51  ;;  %v1099_v50 = vld [vmem:[%s2523_s24 + $0x90] sm:$0xff] }
 0x12e   : > { %v1150_v55 = vld [vmem:[%s2523_s24 + $0x228] sm:$0xff]  ;;  %1703 = vmatprep.subr.mxu1 %v1282_v52  ;;  %v1149_v57 = vld [vmem:[%s2523_s24 + $0x220] sm:$0xff]  ;;  %1597 = vmatpush2.msra.mxu0 %v1153_v53  ;;  %v1096_v52 = vld [vmem:[%s2523_s24 + $0x78] sm:$0xff] }
 0x12f   : > { %v1278_v56 = vld [vmem:[%s2523_s24 + $0x628] sm:$0xff]  ;;  %v1277_v58 = vld [vmem:[%s2523_s24 + $0x620] sm:$0xff]  ;;  %1704 = vmatpush2.msra.mxu1 %v1281_v54  ;;  %1598 = vmatprep.subr.mxu0 %v1150_v55  ;;  %v1095_v54 = vld [vmem:[%s2523_s24 + $0x70] sm:$0xff] }
 0x130   : > { %v1146_v59 = vld [vmem:[%s2523_s24 + $0x208] sm:$0xff]  ;;  %1705 = vmatprep.subr.mxu1 %v1278_v56  ;;  %v1145_v61 = vld [vmem:[%s2523_s24 + $0x200] sm:$0xff]  ;;  %1599 = vmatpush2.msra.mxu0 %v1149_v57  ;;  %v1092_v56 = vld [vmem:[%s2523_s24 + $0x58] sm:$0xff] }
 0x131   : > { %v1274_v60 = vld [vmem:[%s2523_s24 + $0x608] sm:$0xff]  ;;  %1706 = vmatpush2.msra.mxu1 %v1277_v58  ;;  %v1273_v63 = vld [vmem:[%s2523_s24 + $0x600] sm:$0xff]  ;;  %1600 = vmatprep.subr.mxu0 %v1146_v59  ;;  %v1091_v58 = vld [vmem:[%s2523_s24 + $0x50] sm:$0xff] }
 0x132   : > { %v1471_v1 = vld [vmem:[%s3071_s13 + $0x18] sm:$0xff]  ;;  %1707 = vmatprep.subr.mxu1 %v1274_v60  ;;  %v1470_v3 = vld [vmem:[%s3071_s13 + $0x10] sm:$0xff]  ;;  %1601 = vmatpush2.msra.mxu0 %v1145_v61  ;;  %v1088_v60 = vld [vmem:[%s2523_s24 + $0x38] sm:$0xff] }
 0x133   : > { %1602 = vmatprep.mubr.f32.mxu0 %v3074_v62  ;;  %v1398_v4 = vld [vmem:[%s2523_s24 + $0x9e8] sm:$0xff]  ;;  %1708 = vmatpush2.msra.mxu1 %v1273_v63  ;;  %v1397_v6 = vld [vmem:[%s2523_s24 + $0x9e0] sm:$0xff]  ;;  %v1087_v63 = vld [vmem:[%s2523_s24 + $0x30] sm:$0xff] }
 0x134   : > { %1709 = vmatprep.mubr.f32.mxu1 %v1471_v1  ;;  %1603 = vmatmul.mubr.f32.vlgmr.msra.gmra.mxu0 %v3079_v2  ;;  %v1394_v8 = vld [vmem:[%s2523_s24 + $0x9c8] sm:$0xff]  ;;  %v1393_v10 = vld [vmem:[%s2523_s24 + $0x9c0] sm:$0xff] }
 0x135   : > { %1710 = vmatmul.mubr.f32.vlgmr.msra.gmra.mxu1 %v1470_v3  ;;  %1752 = vmatprep.subr.mxu0 %v1398_v4  ;;  %v1390_v12 = vld [vmem:[%s2523_s24 + $0x9a8] sm:$0xff]  ;;  %v1389_v14 = vld [vmem:[%s2523_s24 + $0x9a0] sm:$0xff]  ;;  %v1084_v3 = vld [vmem:[%s2523_s24 + $0x18] sm:$0xff] }
 0x136   : > { %1859 = vmatprep.subr.mxu1 %v1144_v5  ;;  %1753 = vmatpush1.msra.mxu0 %v1397_v6  ;;  %v1386_v16 = vld [vmem:[%s2523_s24 + $0x988] sm:$0xff]  ;;  %v1385_v18 = vld [vmem:[%s2523_s24 + $0x980] sm:$0xff]  ;;  %v1083_v5 = vld [vmem:[%s2523_s24 + $0x10] sm:$0xff] }
 0x137   : > { %1860 = vmatpush1.msra.mxu1 %v1143_v7  ;;  %1754 = vmatprep.subr.mxu0 %v1394_v8  ;;  %v1382_v20 = vld [vmem:[%s2523_s24 + $0x968] sm:$0xff]  ;;  %v1381_v0 = vld [vmem:[%s2523_s24 + $0x960] sm:$0xff]  ;;  %v1208_v7 = vld [vmem:[%s2523_s24 + $0x3f8] sm:$0xff] }
 0x138   : > { %1861 = vmatprep.subr.mxu1 %v1140_v9  ;;  %1755 = vmatpush1.msra.mxu0 %v1393_v10  ;;  %v1378_v23 = vld [vmem:[%s2523_s24 + $0x948] sm:$0xff]  ;;  %v1377_v25 = vld [vmem:[%s2523_s24 + $0x940] sm:$0xff]  ;;  %v1207_v9 = vld [vmem:[%s2523_s24 + $0x3f0] sm:$0xff] }
 0x139   : > { %1862 = vmatpush1.msra.mxu1 %v1139_v11  ;;  %1756 = vmatprep.subr.mxu0 %v1390_v12  ;;  %v1374_v27 = vld [vmem:[%s2523_s24 + $0x928] sm:$0xff]  ;;  %v1373_v29 = vld [vmem:[%s2523_s24 + $0x920] sm:$0xff]  ;;  %v1204_v11 = vld [vmem:[%s2523_s24 + $0x3d8] sm:$0xff] }
 0x13a   : > { %1863 = vmatprep.subr.mxu1 %v1136_v13  ;;  %1757 = vmatpush1.msra.mxu0 %v1389_v14  ;;  %v1370_v31 = vld [vmem:[%s2523_s24 + $0x908] sm:$0xff]  ;;  %v1369_v33 = vld [vmem:[%s2523_s24 + $0x900] sm:$0xff]  ;;  %v1203_v13 = vld [vmem:[%s2523_s24 + $0x3d0] sm:$0xff] }
 0x13b   : > { %1864 = vmatpush1.msra.mxu1 %v1135_v15  ;;  %1758 = vmatprep.subr.mxu0 %v1386_v16  ;;  %v1366_v35 = vld [vmem:[%s2523_s24 + $0x8e8] sm:$0xff]  ;;  %v1365_v37 = vld [vmem:[%s2523_s24 + $0x8e0] sm:$0xff]  ;;  %v1200_v15 = vld [vmem:[%s2523_s24 + $0x3b8] sm:$0xff] }
 0x13c   : > { %1865 = vmatprep.subr.mxu1 %v1132_v17  ;;  %1759 = vmatpush1.msra.mxu0 %v1385_v18  ;;  %v1362_v39 = vld [vmem:[%s2523_s24 + $0x8c8] sm:$0xff]  ;;  %v1361_v41 = vld [vmem:[%s2523_s24 + $0x8c0] sm:$0xff]  ;;  %v1199_v17 = vld [vmem:[%s2523_s24 + $0x3b0] sm:$0xff] }
 0x13d   : > { %1866 = vmatpush1.msra.mxu1 %v1131_v19  ;;  %1760 = vmatprep.subr.mxu0 %v1382_v20  ;;  %v1358_v43 = vld [vmem:[%s2523_s24 + $0x8a8] sm:$0xff]  ;;  %v1357_v45 = vld [vmem:[%s2523_s24 + $0x8a0] sm:$0xff]  ;;  %v3164_v19 = vld [vmem:[%s3071_s13 + $0x48] sm:$0xff] }
 0x13e   : > { %1867 = vmatprep.subr.mxu1 %v1128_v21  ;;  %1761 = vmatpush1.msra.mxu0 %v1381_v0  ;;  %v1354_v47 = vld [vmem:[%s2523_s24 + $0x888] sm:$0xff]  ;;  %v1353_v49 = vld [vmem:[%s2523_s24 + $0x880] sm:$0xff]  ;;  %v1196_v21 = vld [vmem:[%s2523_s24 + $0x398] sm:$0xff] }
 0x13f   : > { %1868 = vmatpush1.msra.mxu1 %v1127_v22  ;;  %1762 = vmatprep.subr.mxu0 %v1378_v23  ;;  %v1350_v51 = vld [vmem:[%s2523_s24 + $0x868] sm:$0xff]  ;;  %v1349_v53 = vld [vmem:[%s2523_s24 + $0x860] sm:$0xff]  ;;  %v3172_v22 = vld [vmem:[%s3071_s13 + $0x40] sm:$0xff] }
 0x140   : > { %1869 = vmatprep.subr.mxu1 %v1124_v24  ;;  %1763 = vmatpush1.msra.mxu0 %v1377_v25  ;;  %v1346_v55 = vld [vmem:[%s2523_s24 + $0x848] sm:$0xff]  ;;  %v1345_v57 = vld [vmem:[%s2523_s24 + $0x840] sm:$0xff]  ;;  %v1195_v24 = vld [vmem:[%s2523_s24 + $0x390] sm:$0xff] }
 0x141   : > { %1870 = vmatpush1.msra.mxu1 %v1123_v26  ;;  %1764 = vmatprep.subr.mxu0 %v1374_v27  ;;  %v1342_v59 = vld [vmem:[%s2523_s24 + $0x828] sm:$0xff]  ;;  %v1341_v61 = vld [vmem:[%s2523_s24 + $0x820] sm:$0xff]  ;;  %v1192_v26 = vld [vmem:[%s2523_s24 + $0x378] sm:$0xff] }
 0x142   : > { %1871 = vmatprep.subr.mxu1 %v1120_v28  ;;  %1765 = vmatpush1.msra.mxu0 %v1373_v29  ;;  %v1338_v1 = vld [vmem:[%s2523_s24 + $0x808] sm:$0xff]  ;;  %v1337_v4 = vld [vmem:[%s2523_s24 + $0x800] sm:$0xff]  ;;  %v1191_v28 = vld [vmem:[%s2523_s24 + $0x370] sm:$0xff] }
 0x143   : > { %1872 = vmatpush1.msra.mxu1 %v1119_v30  ;;  %1766 = vmatprep.subr.mxu0 %v1370_v31  ;;  %v1462_v6 = vld [vmem:[%s2523_s24 + $0xbe8] sm:$0xff]  ;;  %v1461_v8 = vld [vmem:[%s2523_s24 + $0xbe0] sm:$0xff]  ;;  %v3185_v29 = vld [vmem:[%s3071_s13 + $0x68] sm:$0xff] }
 0x144   : > { %1873 = vmatprep.subr.mxu1 %v1116_v32  ;;  %1767 = vmatpush1.msra.mxu0 %v1369_v33  ;;  %v1458_v10 = vld [vmem:[%s2523_s24 + $0xbc8] sm:$0xff]  ;;  %v1457_v12 = vld [vmem:[%s2523_s24 + $0xbc0] sm:$0xff]  ;;  %v1188_v32 = vld [vmem:[%s2523_s24 + $0x358] sm:$0xff] }
 0x145   : > { %1874 = vmatpush1.msra.mxu1 %v1115_v34  ;;  %1768 = vmatprep.subr.mxu0 %v1366_v35  ;;  %v1454_v14 = vld [vmem:[%s2523_s24 + $0xba8] sm:$0xff]  ;;  %v1453_v16 = vld [vmem:[%s2523_s24 + $0xba0] sm:$0xff]  ;;  %v3193_v33 = vld [vmem:[%s3071_s13 + $0x60] sm:$0xff] }
 0x146   : > { %1875 = vmatprep.subr.mxu1 %v1112_v36  ;;  %1769 = vmatpush1.msra.mxu0 %v1365_v37  ;;  %v3161_v18 = vld [vmem:[%s3071_s13 + $0x38] sm:$0xff]  ;;  %v3169_v0 = vld [vmem:[%s3071_s13 + $0x30] sm:$0xff]  ;;  %v1187_v36 = vld [vmem:[%s2523_s24 + $0x350] sm:$0xff] }
 0x147   : > { %1876 = vmatpush1.msra.mxu1 %v1111_v38  ;;  %1770 = vmatprep.subr.mxu0 %v1362_v39  ;;  %v1450_v20 = vld [vmem:[%s2523_s24 + $0xb88] sm:$0xff]  ;;  %v1449_v23 = vld [vmem:[%s2523_s24 + $0xb80] sm:$0xff]  ;;  %v1184_v38 = vld [vmem:[%s2523_s24 + $0x338] sm:$0xff] }
 0x148   : > { %1877 = vmatprep.subr.mxu1 %v1108_v40  ;;  %1771 = vmatpush1.msra.mxu0 %v1361_v41  ;;  %v1446_v25 = vld [vmem:[%s2523_s24 + $0xb68] sm:$0xff]  ;;  %v1445_v27 = vld [vmem:[%s2523_s24 + $0xb60] sm:$0xff]  ;;  %v1183_v40 = vld [vmem:[%s2523_s24 + $0x330] sm:$0xff] }
 0x149   : > { %1878 = vmatpush1.msra.mxu1 %v1107_v42  ;;  %1772 = vmatprep.subr.mxu0 %v1358_v43  ;;  %v3188_v30 = vld [vmem:[%s3071_s13 + $0x78] sm:$0xff]  ;;  %v3196_v34 = vld [vmem:[%s3071_s13 + $0x70] sm:$0xff]  ;;  %v3212_v42 = vld [vmem:[%s3071_s13 + $0xa8] sm:$0xff] }
 0x14a   : > { %1879 = vmatprep.subr.mxu1 %v1104_v44  ;;  %1773 = vmatpush1.msra.mxu0 %v1357_v45  ;;  %v1442_v31 = vld [vmem:[%s2523_s24 + $0xb48] sm:$0xff]  ;;  %v1441_v35 = vld [vmem:[%s2523_s24 + $0xb40] sm:$0xff]  ;;  %v1180_v44 = vld [vmem:[%s2523_s24 + $0x318] sm:$0xff] }
 0x14b   : > { %1880 = vmatpush1.msra.mxu1 %v1103_v46  ;;  %1774 = vmatprep.subr.mxu0 %v1354_v47  ;;  %v1438_v37 = vld [vmem:[%s2523_s24 + $0xb28] sm:$0xff]  ;;  %v1437_v39 = vld [vmem:[%s2523_s24 + $0xb20] sm:$0xff]  ;;  %v3220_v46 = vld [vmem:[%s3071_s13 + $0xa0] sm:$0xff] }
 0x14c   : > { %1881 = vmatprep.subr.mxu1 %v1100_v48  ;;  %1775 = vmatpush1.msra.mxu0 %v1353_v49  ;;  %v3209_v41 = vld [vmem:[%s3071_s13 + $0x98] sm:$0xff]  ;;  %v3217_v45 = vld [vmem:[%s3071_s13 + $0x90] sm:$0xff]  ;;  %v1179_v48 = vld [vmem:[%s2523_s24 + $0x310] sm:$0xff] }
 0x14d   : > { %1882 = vmatpush1.msra.mxu1 %v1099_v50  ;;  %1776 = vmatprep.subr.mxu0 %v1350_v51  ;;  %v1434_v43 = vld [vmem:[%s2523_s24 + $0xb08] sm:$0xff]  ;;  %v1433_v47 = vld [vmem:[%s2523_s24 + $0xb00] sm:$0xff]  ;;  %v1176_v50 = vld [vmem:[%s2523_s24 + $0x2f8] sm:$0xff] }
 0x14e   : > { %1883 = vmatprep.subr.mxu1 %v1096_v52  ;;  %1777 = vmatpush1.msra.mxu0 %v1349_v53  ;;  %v1430_v49 = vld [vmem:[%s2523_s24 + $0xae8] sm:$0xff]  ;;  %v1429_v51 = vld [vmem:[%s2523_s24 + $0xae0] sm:$0xff]  ;;  %v1175_v52 = vld [vmem:[%s2523_s24 + $0x2f0] sm:$0xff] }
 0x14f   : > { %1884 = vmatpush1.msra.mxu1 %v1095_v54  ;;  %1778 = vmatprep.subr.mxu0 %v1346_v55  ;;  %v3233_v53 = vld [vmem:[%s3071_s13 + $0xc8] sm:$0xff]  ;;  %v3236_v54 = vld [vmem:[%s3071_s13 + $0xd8] sm:$0xff] }
 0x150   : > { %1885 = vmatprep.subr.mxu1 %v1092_v56  ;;  %1779 = vmatpush1.msra.mxu0 %v1345_v57  ;;  %v1426_v55 = vld [vmem:[%s2523_s24 + $0xac8] sm:$0xff]  ;;  %v1172_v56 = vld [vmem:[%s2523_s24 + $0x2d8] sm:$0xff]  ;;  %v3241_v57 = vld [vmem:[%s3071_s13 + $0xc0] sm:$0xff] }
 0x151   : > { %1886 = vmatpush1.msra.mxu1 %v1091_v58  ;;  %1780 = vmatprep.subr.mxu0 %v1342_v59  ;;  %v3244_v58 = vld [vmem:[%s3071_s13 + $0xd0] sm:$0xff] }
 0x152   : > { %1887 = vmatprep.subr.mxu1 %v1088_v60  ;;  %1781 = vmatpush1.msra.mxu0 %v1341_v61  ;;  %v1425_v59 = vld [vmem:[%s2523_s24 + $0xac0] sm:$0xff]  ;;  %v1171_v60 = vld [vmem:[%s2523_s24 + $0x2d0] sm:$0xff]  ;;  %v1422_v61 = vld [vmem:[%s2523_s24 + $0xaa8] sm:$0xff] }
 0x153   : > { %1888 = vmatpush1.msra.mxu1 %v1087_v63  ;;  %1782 = vmatprep.subr.mxu0 %v1338_v1  ;;  %v1168_v63 = vld [vmem:[%s2523_s24 + $0x2b8] sm:$0xff]  ;;  %v1421_v1 = vld [vmem:[%s2523_s24 + $0xaa0] sm:$0xff] }
 0x154   : > { %1889 = vmatprep.subr.mxu1 %v1084_v3  ;;  %1783 = vmatpush1.msra.mxu0 %v1337_v4  ;;  %v1167_v3 = vld [vmem:[%s2523_s24 + $0x2b0] sm:$0xff]  ;;  %v3257_v4 = vld [vmem:[%s3071_s13 + $0xf8] sm:$0xff] }
 0x155   : > { %1890 = vmatpush1.msra.mxu1 %v1083_v5  ;;  %1784 = vmatprep.subr.mxu0 %v1462_v6  ;;  %v3260_v5 = vld [vmem:[%s3071_s13 + $0x108] sm:$0xff]  ;;  %v1418_v6 = vld [vmem:[%s2523_s24 + $0xa88] sm:$0xff] }
 0x156   : > { %1891 = vmatprep.subr.mxu1 %v1208_v7  ;;  %1785 = vmatpush2.msra.mxu0 %v1461_v8  ;;  %v1164_v7 = vld [vmem:[%s2523_s24 + $0x298] sm:$0xff]  ;;  %v3265_v8 = vld [vmem:[%s3071_s13 + $0xf0] sm:$0xff] }
 0x157   : > { %1892 = vmatpush2.msra.mxu1 %v1207_v9  ;;  %1786 = vmatprep.subr.mxu0 %v1458_v10  ;;  %v3268_v9 = vld [vmem:[%s3071_s13 + $0x100] sm:$0xff]  ;;  %v1417_v10 = vld [vmem:[%s2523_s24 + $0xa80] sm:$0xff] }
 0x158   : > { %1893 = vmatprep.subr.mxu1 %v1204_v11  ;;  %1787 = vmatpush2.msra.mxu0 %v1457_v12  ;;  %v1163_v11 = vld [vmem:[%s2523_s24 + $0x290] sm:$0xff]  ;;  %v1414_v12 = vld [vmem:[%s2523_s24 + $0xa68] sm:$0xff] }
 0x159   : > { %1894 = vmatpush2.msra.mxu1 %v1203_v13  ;;  %1788 = vmatprep.subr.mxu0 %v1454_v14  ;;  %v1160_v13 = vld [vmem:[%s2523_s24 + $0x278] sm:$0xff]  ;;  %v1413_v14 = vld [vmem:[%s2523_s24 + $0xa60] sm:$0xff] }
 0x15a   : > { %1895 = vmatprep.subr.mxu1 %v1200_v15  ;;  %1789 = vmatpush2.msra.mxu0 %v1453_v16  ;;  %v1159_v15 = vld [vmem:[%s2523_s24 + $0x270] sm:$0xff]  ;;  %v3281_v16 = vld [vmem:[%s3071_s13 + $0x128] sm:$0xff] }
 0x15b   : > { %1896 = vmatpush2.msra.mxu1 %v1199_v17  ;;  %1608 = vmatprep.mubr.f32.mxu0 %v3161_v18  ;;  %v3284_v17 = vld [vmem:[%s3071_s13 + $0x138] sm:$0xff] }
 0x15c   : > { %1715 = vmatprep.mubr.f32.mxu1 %v3164_v19  ;;  %1790 = vmatprep.subr.mxu0 %v1450_v20  ;;  %v1410_v20 = vld [vmem:[%s2523_s24 + $0xa48] sm:$0xff] }
 0x15d   : > { %1897 = vmatprep.subr.mxu1 %v1196_v21  ;;  %1609 = vmatmul.mubr.f32.gmra.mxu0 %v3169_v0  ;;  %v1156_v21 = vld [vmem:[%s2523_s24 + $0x258] sm:$0xff] }
 0x15e   : > { %1716 = vmatmul.mubr.f32.gmra.mxu1 %v3172_v22  ;;  %1791 = vmatpush2.msra.mxu0 %v1449_v23  ;;  %v3289_v23 = vld [vmem:[%s3071_s13 + $0x120] sm:$0xff] }
 0x15f   : > { %1898 = vmatpush2.msra.mxu1 %v1195_v24  ;;  %1792 = vmatprep.subr.mxu0 %v1446_v25  ;;  %v3292_v24 = vld [vmem:[%s3071_s13 + $0x130] sm:$0xff] }
 0x160   : > { %1899 = vmatprep.subr.mxu1 %v1192_v26  ;;  %1793 = vmatpush2.msra.mxu0 %v1445_v27  ;;  %v1409_v25 = vld [vmem:[%s2523_s24 + $0xa40] sm:$0xff]  ;;  %v1155_v26 = vld [vmem:[%s2523_s24 + $0x250] sm:$0xff]  ;;  %v1406_v27 = vld [vmem:[%s2523_s24 + $0xa28] sm:$0xff] }
 0x161   : > { %1900 = vmatpush2.msra.mxu1 %v1191_v28  ;;  %1614 = vmatprep.mubr.f32.mxu0 %v3185_v29  ;;  %v1152_v28 = vld [vmem:[%s2523_s24 + $0x238] sm:$0xff] }
 0x162   : > { %1721 = vmatprep.mubr.f32.mxu1 %v3188_v30  ;;  %1794 = vmatprep.subr.mxu0 %v1442_v31  ;;  %v1405_v31 = vld [vmem:[%s2523_s24 + $0xa20] sm:$0xff] }
 0x163   : > { %1901 = vmatprep.subr.mxu1 %v1188_v32  ;;  %1615 = vmatmul.mubr.f32.gmra.mxu0 %v3193_v33  ;;  %v1151_v32 = vld [vmem:[%s2523_s24 + $0x230] sm:$0xff] }
 0x164   : > { %1722 = vmatmul.mubr.f32.gmra.mxu1 %v3196_v34  ;;  %1795 = vmatpush2.msra.mxu0 %v1441_v35  ;;  %v1402_v35 = vld [vmem:[%s2523_s24 + $0xa08] sm:$0xff] }
 0x165   : > { %1902 = vmatpush2.msra.mxu1 %v1187_v36  ;;  %1796 = vmatprep.subr.mxu0 %v1438_v37  ;;  %v1148_v36 = vld [vmem:[%s2523_s24 + $0x218] sm:$0xff]  ;;  %v1401_v37 = vld [vmem:[%s2523_s24 + $0xa00] sm:$0xff] }
 0x166   : > { %1903 = vmatprep.subr.mxu1 %v1184_v38  ;;  %1797 = vmatpush2.msra.mxu0 %v1437_v39  ;;  %v3308_v38 = vld [vmem:[%s3071_s13 + $0x28] sm:$0xff]  ;;  %v1147_v39 = vld [vmem:[%s2523_s24 + $0x210] sm:$0xff] }
 0x167   : > { %1904 = vmatpush2.msra.mxu1 %v1183_v40  ;;  %1620 = vmatprep.mubr.f32.mxu0 %v3209_v41  ;;  %v3312_v40 = vld [vmem:[%s3071_s13 + $0x20] sm:$0xff] }
 0x168   : > { %1727 = vmatprep.mubr.f32.mxu1 %v3212_v42  ;;  %1798 = vmatprep.subr.mxu0 %v1434_v43  ;;  %v1272_v43 = vld [vmem:[%s2523_s24 + $0x5f8] sm:$0xff] }
 0x169   : > { %1905 = vmatprep.subr.mxu1 %v1180_v44  ;;  %1621 = vmatmul.mubr.f32.gmra.mxu0 %v3217_v45  ;;  %v1400_v44 = vld [vmem:[%s2523_s24 + $0x9f8] sm:$0xff] }
 0x16a   : > { %1728 = vmatmul.mubr.f32.gmra.mxu1 %v3220_v46  ;;  %1799 = vmatpush2.msra.mxu0 %v1433_v47  ;;  %v1271_v47 = vld [vmem:[%s2523_s24 + $0x5f0] sm:$0xff] }
 0x16b   : > { %1906 = vmatpush2.msra.mxu1 %v1179_v48  ;;  %1800 = vmatprep.subr.mxu0 %v1430_v49  ;;  %v1399_v48 = vld [vmem:[%s2523_s24 + $0x9f0] sm:$0xff]  ;;  %v1268_v49 = vld [vmem:[%s2523_s24 + $0x5d8] sm:$0xff] }
 0x16c   : > { %1907 = vmatprep.subr.mxu1 %v1176_v50  ;;  %1801 = vmatpush2.msra.mxu0 %v1429_v51  ;;  %v1396_v50 = vld [vmem:[%s2523_s24 + $0x9d8] sm:$0xff]  ;;  %v3325_v51 = vld [vmem:[%s3071_s13 + $0x58] sm:$0xff] }
 0x16d   : > { %1908 = vmatpush2.msra.mxu1 %v1175_v52  ;;  %1626 = vmatprep.mubr.f32.mxu0 %v3233_v53  ;;  %v1267_v52 = vld [vmem:[%s2523_s24 + $0x5d0] sm:$0xff] }
 0x16e   : > { %1733 = vmatprep.mubr.f32.mxu1 %v3236_v54  ;;  %1802 = vmatprep.subr.mxu0 %v1426_v55  ;;  %v1395_v55 = vld [vmem:[%s2523_s24 + $0x9d0] sm:$0xff] }
 0x16f   : > { %1909 = vmatprep.subr.mxu1 %v1172_v56  ;;  %1627 = vmatmul.mubr.f32.gmra.mxu0 %v3241_v57  ;;  %v3330_v56 = vld [vmem:[%s3071_s13 + $0x50] sm:$0xff] }
 0x170   : > { %1734 = vmatmul.mubr.f32.gmra.mxu1 %v3244_v58  ;;  %1803 = vmatpush2.msra.mxu0 %v1425_v59  ;;  %v1392_v59 = vld [vmem:[%s2523_s24 + $0x9b8] sm:$0xff] }
 0x171   : > { %1910 = vmatpush2.msra.mxu1 %v1171_v60  ;;  %1804 = vmatprep.subr.mxu0 %v1422_v61  ;;  %v1391_v60 = vld [vmem:[%s2523_s24 + $0x9b0] sm:$0xff]  ;;  %v1260_v61 = vld [vmem:[%s2523_s24 + $0x598] sm:$0xff] }
 0x172   : > { %1911 = vmatprep.subr.mxu1 %v1168_v63  ;;  %1805 = vmatpush2.msra.mxu0 %v1421_v1  ;;  %v1388_v63 = vld [vmem:[%s2523_s24 + $0x998] sm:$0xff] }
 0x173   : > { %1912 = vmatpush2.msra.mxu1 %v1167_v3  ;;  %1632 = vmatprep.mubr.f32.mxu0 %v3257_v4  ;;  %v3341_v1 = vld [vmem:[%s3071_s13 + $0x88] sm:$0xff]  ;;  %v1259_v3 = vld [vmem:[%s2523_s24 + $0x590] sm:$0xff] }
 0x174   : > { %1739 = vmatprep.mubr.f32.mxu1 %v3260_v5  ;;  %1806 = vmatprep.subr.mxu0 %v1418_v6  ;;  %v1387_v6 = vld [vmem:[%s2523_s24 + $0x990] sm:$0xff] }
 0x175   : > { %1913 = vmatprep.subr.mxu1 %v1164_v7  ;;  %1633 = vmatmul.mubr.f32.gmra.mxu0 %v3265_v8  ;;  %v3346_v7 = vld [vmem:[%s3071_s13 + $0x80] sm:$0xff] }
 0x176   : > { %1740 = vmatmul.mubr.f32.gmra.mxu1 %v3268_v9  ;;  %1807 = vmatpush2.msra.mxu0 %v1417_v10  ;;  %v1256_v10 = vld [vmem:[%s2523_s24 + $0x578] sm:$0xff] }
 0x177   : > { %1914 = vmatpush2.msra.mxu1 %v1163_v11  ;;  %1808 = vmatprep.subr.mxu0 %v1414_v12  ;;  %v1384_v11 = vld [vmem:[%s2523_s24 + $0x978] sm:$0xff]  ;;  %v1255_v12 = vld [vmem:[%s2523_s24 + $0x570] sm:$0xff] }
 0x178   : > { %1915 = vmatprep.subr.mxu1 %v1160_v13  ;;  %1809 = vmatpush2.msra.mxu0 %v1413_v14  ;;  %v1383_v13 = vld [vmem:[%s2523_s24 + $0x970] sm:$0xff]  ;;  %v1252_v14 = vld [vmem:[%s2523_s24 + $0x558] sm:$0xff] }
 0x179   : > { %1916 = vmatpush2.msra.mxu1 %v1159_v15  ;;  %1638 = vmatprep.mubr.f32.mxu0 %v3281_v16  ;;  %v1380_v15 = vld [vmem:[%s2523_s24 + $0x958] sm:$0xff] }
 0x17a   : > { %1745 = vmatprep.mubr.f32.mxu1 %v3284_v17  ;;  %1810 = vmatprep.subr.mxu0 %v1410_v20  ;;  %v3357_v20 = vld [vmem:[%s3071_s13 + $0xb8] sm:$0xff] }
 0x17b   : > { %1917 = vmatprep.subr.mxu1 %v1156_v21  ;;  %1639 = vmatmul.mubr.f32.gmra.mxu0 %v3289_v23  ;;  %v1251_v21 = vld [vmem:[%s2523_s24 + $0x550] sm:$0xff] }
 0x17c   : > { %1746 = vmatmul.mubr.f32.gmra.mxu1 %v3292_v24  ;;  %1811 = vmatpush2.msra.mxu0 %v1409_v25  ;;  %v1379_v25 = vld [vmem:[%s2523_s24 + $0x950] sm:$0xff] }
 0x17d   : > { %1918 = vmatpush2.msra.mxu1 %v1155_v26  ;;  %1812 = vmatprep.subr.mxu0 %v1406_v27  ;;  %v3362_v26 = vld [vmem:[%s3071_s13 + $0xb0] sm:$0xff]  ;;  %v1248_v27 = vld [vmem:[%s2523_s24 + $0x538] sm:$0xff] }
 0x17e   : > { %1919 = vmatprep.subr.mxu1 %v1152_v28  ;;  %1813 = vmatpush2.msra.mxu0 %v1405_v31  ;;  %v1376_v28 = vld [vmem:[%s2523_s24 + $0x938] sm:$0xff]  ;;  %v1247_v31 = vld [vmem:[%s2523_s24 + $0x530] sm:$0xff] }
 0x17f   : > { %1920 = vmatpush2.msra.mxu1 %v1151_v32  ;;  %1814 = vmatprep.subr.mxu0 %v1402_v35  ;;  %v1375_v32 = vld [vmem:[%s2523_s24 + $0x930] sm:$0xff]  ;;  %v1244_v35 = vld [vmem:[%s2523_s24 + $0x518] sm:$0xff] }
 0x180   : > { %1921 = vmatprep.subr.mxu1 %v1148_v36  ;;  %1815 = vmatpush2.msra.mxu0 %v1401_v37  ;;  %v1372_v36 = vld [vmem:[%s2523_s24 + $0x918] sm:$0xff] }
 0x181   : > { %1816 = vmatprep.mubr.f32.mxu0 %v3308_v38  ;;  %1922 = vmatpush2.msra.mxu1 %v1147_v39  ;;  %v3373_v37 = vld [vmem:[%s3071_s13 + $0xe8] sm:$0xff]  ;;  %v1243_v39 = vld [vmem:[%s2523_s24 + $0x510] sm:$0xff] }
 0x182   : > { %1817 = vmatmul.mubr.f32.vlgmr.msra.gmra.mxu0 %v3312_v40  ;;  %1923 = vmatprep.mubr.f32.mxu1 %v3074_v62  ;;  %v1264_v62 = vld [vmem:[%s2523_s24 + $0x5b8] sm:$0xff] }
 0x183   : > { %1966 = vmatprep.subr.mxu0 %v1272_v43  ;;  %2073 = vmatprep.subr.mxu1 %v1400_v44  ;;  %v1371_v43 = vld [vmem:[%s2523_s24 + $0x910] sm:$0xff] }
 0x184   : > { %1924 = vmatmul.mubr.f32.vlgmr.msra.gmra.mxu1 %v3079_v2  ;;  %1967 = vmatpush1.msra.mxu0 %v1271_v47  ;;  %v1263_v2 = vld [vmem:[%s2523_s24 + $0x5b0] sm:$0xff]  ;;  %v1240_v47 = vld [vmem:[%s2523_s24 + $0x4f8] sm:$0xff] }
 0x185   : > { %2074 = vmatpush1.msra.mxu1 %v1399_v48  ;;  %1968 = vmatprep.subr.mxu0 %v1268_v49  ;;  %v3378_v44 = vld [vmem:[%s3071_s13 + $0xe0] sm:$0xff]  ;;  %v1368_v48 = vld [vmem:[%s2523_s24 + $0x8f8] sm:$0xff] }
 0x186   : > { %2075 = vmatprep.subr.mxu1 %v1396_v50  ;;  %1822 = vmatprep.mubr.f32.mxu0 %v3325_v51  ;;  %v1239_v49 = vld [vmem:[%s2523_s24 + $0x4f0] sm:$0xff] }
 0x187   : > { %1969 = vmatpush1.msra.mxu0 %v1267_v52  ;;  %2076 = vmatpush1.msra.mxu1 %v1395_v55  ;;  %v1367_v50 = vld [vmem:[%s2523_s24 + $0x8f0] sm:$0xff]  ;;  %v1236_v52 = vld [vmem:[%s2523_s24 + $0x4d8] sm:$0xff] }
 0x188   : > { %1823 = vmatmul.mubr.f32.gmra.mxu0 %v3330_v56  ;;  %1970 = vmatprep.subr.mxu0 %v1264_v62  ;;  %v1364_v55 = vld [vmem:[%s2523_s24 + $0x8d8] sm:$0xff]  ;;  %v3389_v62 = vld [vmem:[%s3071_s13 + $0x118] sm:$0xff] }
 0x189   : > { %2077 = vmatprep.subr.mxu1 %v1392_v59  ;;  %1971 = vmatpush1.msra.mxu0 %v1263_v2  ;;  %v1235_v59 = vld [vmem:[%s2523_s24 + $0x4d0] sm:$0xff] }
 0x18a   : > { %2078 = vmatpush1.msra.mxu1 %v1391_v60  ;;  %1972 = vmatprep.subr.mxu0 %v1260_v61  ;;  %v1363_v2 = vld [vmem:[%s2523_s24 + $0x8d0] sm:$0xff]  ;;  %v3394_v60 = vld [vmem:[%s3071_s13 + $0x110] sm:$0xff]  ;;  %v1232_v61 = vld [vmem:[%s2523_s24 + $0x4b8] sm:$0xff] }
 0x18b   : > { %2079 = vmatprep.subr.mxu1 %v1388_v63  ;;  %1828 = vmatprep.mubr.f32.mxu0 %v3341_v1  ;;  %v1360_v63 = vld [vmem:[%s2523_s24 + $0x8b8] sm:$0xff] }
 0x18c   : > { %1973 = vmatpush1.msra.mxu0 %v1259_v3  ;;  %2080 = vmatpush1.msra.mxu1 %v1387_v6  ;;  %v1231_v3 = vld [vmem:[%s2523_s24 + $0x4b0] sm:$0xff] }
 0x18d   : > { %1829 = vmatmul.mubr.f32.gmra.mxu0 %v3346_v7  ;;  %1974 = vmatprep.subr.mxu0 %v1256_v10  ;;  %v1359_v6 = vld [vmem:[%s2523_s24 + $0x8b0] sm:$0xff]  ;;  %v1228_v10 = vld [vmem:[%s2523_s24 + $0x498] sm:$0xff] }
 0x18e   : > { %2081 = vmatprep.subr.mxu1 %v1384_v11  ;;  %1975 = vmatpush1.msra.mxu0 %v1255_v12  ;;  %v1356_v11 = vld [vmem:[%s2523_s24 + $0x898] sm:$0xff] }
 0x18f   : > { %2082 = vmatpush1.msra.mxu1 %v1383_v13  ;;  %1976 = vmatprep.subr.mxu0 %v1252_v14  ;;  %v3405_v12 = vld [vmem:[%s3071_s13 + $0x148] sm:$0xff]  ;;  %v1227_v13 = vld [vmem:[%s2523_s24 + $0x490] sm:$0xff] }
 0x190   : > { %2083 = vmatprep.subr.mxu1 %v1380_v15  ;;  %1834 = vmatprep.mubr.f32.mxu0 %v3357_v20  ;;  %v1355_v14 = vld [vmem:[%s2523_s24 + $0x890] sm:$0xff] }
 0x191   : > { %1977 = vmatpush1.msra.mxu0 %v1251_v21  ;;  %2084 = vmatpush1.msra.mxu1 %v1379_v25  ;;  %v3410_v15 = vld [vmem:[%s3071_s13 + $0x140] sm:$0xff]  ;;  %v1224_v21 = vld [vmem:[%s2523_s24 + $0x478] sm:$0xff] }
 0x192   : > { %1835 = vmatmul.mubr.f32.gmra.mxu0 %v3362_v26  ;;  %1978 = vmatprep.subr.mxu0 %v1248_v27  ;;  %v1352_v25 = vld [vmem:[%s2523_s24 + $0x878] sm:$0xff]  ;;  %v1223_v27 = vld [vmem:[%s2523_s24 + $0x470] sm:$0xff] }
 0x193   : > { %2085 = vmatprep.subr.mxu1 %v1376_v28  ;;  %1979 = vmatpush1.msra.mxu0 %v1247_v31  ;;  %v1351_v28 = vld [vmem:[%s2523_s24 + $0x870] sm:$0xff]  ;;  %v1220_v31 = vld [vmem:[%s2523_s24 + $0x458] sm:$0xff] }
 0x194   : > { %2086 = vmatpush1.msra.mxu1 %v1375_v32  ;;  %1980 = vmatprep.subr.mxu0 %v1244_v35  ;;  %v1348_v32 = vld [vmem:[%s2523_s24 + $0x858] sm:$0xff]  ;;  %v1219_v35 = vld [vmem:[%s2523_s24 + $0x450] sm:$0xff] }
 0x195   : > { %2087 = vmatprep.subr.mxu1 %v1372_v36  ;;  %1840 = vmatprep.mubr.f32.mxu0 %v3373_v37  ;;  %v1347_v36 = vld [vmem:[%s2523_s24 + $0x850] sm:$0xff] }
 0x196   : > { %1981 = vmatpush1.msra.mxu0 %v1243_v39  ;;  %2088 = vmatpush1.msra.mxu1 %v1371_v43  ;;  %v1216_v39 = vld [vmem:[%s2523_s24 + $0x438] sm:$0xff] }
 0x197   : > { %1841 = vmatmul.mubr.f32.gmra.mxu0 %v3378_v44  ;;  %1982 = vmatprep.subr.mxu0 %v1240_v47  ;;  %v1344_v43 = vld [vmem:[%s2523_s24 + $0x838] sm:$0xff]  ;;  %v1215_v47 = vld [vmem:[%s2523_s24 + $0x430] sm:$0xff] }
 0x198   : > { %2089 = vmatprep.subr.mxu1 %v1368_v48  ;;  %1983 = vmatpush1.msra.mxu0 %v1239_v49  ;;  %v1343_v48 = vld [vmem:[%s2523_s24 + $0x830] sm:$0xff]  ;;  %v1212_v49 = vld [vmem:[%s2523_s24 + $0x418] sm:$0xff] }
 0x199   : > { %2090 = vmatpush1.msra.mxu1 %v1367_v50  ;;  %1984 = vmatprep.subr.mxu0 %v1236_v52  ;;  %v1340_v50 = vld [vmem:[%s2523_s24 + $0x818] sm:$0xff]  ;;  %v1211_v52 = vld [vmem:[%s2523_s24 + $0x410] sm:$0xff] }
 0x19a   : > { %2091 = vmatprep.subr.mxu1 %v1364_v55  ;;  %1846 = vmatprep.mubr.f32.mxu0 %v3389_v62  ;;  %v1339_v55 = vld [vmem:[%s2523_s24 + $0x810] sm:$0xff] }
 0x19b   : > { %1985 = vmatpush1.msra.mxu0 %v1235_v59  ;;  %2092 = vmatpush1.msra.mxu1 %v1363_v2  ;;  %v1336_v59 = vld [vmem:[%s2523_s24 + $0x7f8] sm:$0xff] }
 0x19c   : > { %1847 = vmatmul.mubr.f32.gmra.mxu0 %v3394_v60  ;;  %1986 = vmatprep.subr.mxu0 %v1232_v61  ;;  %v1464_v2 = vld [vmem:[%s2523_s24 + $0xbf8] sm:$0xff]  ;;  %v1335_v61 = vld [vmem:[%s2523_s24 + $0x7f0] sm:$0xff] }
 0x19d   : > { %2093 = vmatprep.subr.mxu1 %v1360_v63  ;;  %1987 = vmatpush1.msra.mxu0 %v1231_v3  ;;  %v1463_v63 = vld [vmem:[%s2523_s24 + $0xbf0] sm:$0xff]  ;;  %v1332_v3 = vld [vmem:[%s2523_s24 + $0x7d8] sm:$0xff] }
 0x19e   : > { %2094 = vmatpush1.msra.mxu1 %v1359_v6  ;;  %1988 = vmatprep.subr.mxu0 %v1228_v10  ;;  %v1460_v6 = vld [vmem:[%s2523_s24 + $0xbd8] sm:$0xff]  ;;  %v1331_v10 = vld [vmem:[%s2523_s24 + $0x7d0] sm:$0xff] }
 0x19f   : > { %2095 = vmatprep.subr.mxu1 %v1356_v11  ;;  %1852 = vmatprep.mubr.f32.mxu0 %v3405_v12  ;;  %v1459_v11 = vld [vmem:[%s2523_s24 + $0xbd0] sm:$0xff] }
 0x1a0   : > { %1989 = vmatpush1.msra.mxu0 %v1227_v13  ;;  %2096 = vmatpush1.msra.mxu1 %v1355_v14  ;;  %v1328_v13 = vld [vmem:[%s2523_s24 + $0x7b8] sm:$0xff] }
 0x1a1   : > { %1853 = vmatmul.mubr.f32.gmra.mxu0 %v3410_v15  ;;  %1990 = vmatprep.subr.mxu0 %v1224_v21  ;;  %v1456_v14 = vld [vmem:[%s2523_s24 + $0xbb8] sm:$0xff]  ;;  %v1327_v21 = vld [vmem:[%s2523_s24 + $0x7b0] sm:$0xff] }
 0x1a2   : > { %2097 = vmatprep.subr.mxu1 %v1352_v25  ;;  %1991 = vmatpush1.msra.mxu0 %v1223_v27  ;;  %v1455_v25 = vld [vmem:[%s2523_s24 + $0xbb0] sm:$0xff]  ;;  %v1324_v27 = vld [vmem:[%s2523_s24 + $0x798] sm:$0xff] }
 0x1a3   : > { %2098 = vmatpush1.msra.mxu1 %v1351_v28  ;;  %1992 = vmatprep.subr.mxu0 %v1220_v31  ;;  %v1452_v28 = vld [vmem:[%s2523_s24 + $0xb98] sm:$0xff]  ;;  %v1323_v31 = vld [vmem:[%s2523_s24 + $0x790] sm:$0xff] }
 0x1a4   : > { %2099 = vmatprep.subr.mxu1 %v1348_v32  ;;  %1993 = vmatpush1.msra.mxu0 %v1219_v35  ;;  %v1451_v32 = vld [vmem:[%s2523_s24 + $0xb90] sm:$0xff]  ;;  %v1320_v35 = vld [vmem:[%s2523_s24 + $0x778] sm:$0xff] }
 0x1a5   : > { %2100 = vmatpush1.msra.mxu1 %v1347_v36  ;;  %1994 = vmatprep.subr.mxu0 %v1216_v39  ;;  %v1448_v36 = vld [vmem:[%s2523_s24 + $0xb78] sm:$0xff]  ;;  %v1319_v39 = vld [vmem:[%s2523_s24 + $0x770] sm:$0xff] }
 0x1a6   : > { %2101 = vmatprep.subr.mxu1 %v1344_v43  ;;  %1995 = vmatpush1.msra.mxu0 %v1215_v47  ;;  %v1447_v43 = vld [vmem:[%s2523_s24 + $0xb70] sm:$0xff]  ;;  %v1316_v47 = vld [vmem:[%s2523_s24 + $0x758] sm:$0xff] }
 0x1a7   : > { %2102 = vmatpush1.msra.mxu1 %v1343_v48  ;;  %1996 = vmatprep.subr.mxu0 %v1212_v49  ;;  %v1444_v48 = vld [vmem:[%s2523_s24 + $0xb58] sm:$0xff]  ;;  %v1315_v49 = vld [vmem:[%s2523_s24 + $0x750] sm:$0xff] }
 0x1a8   : > { %2103 = vmatprep.subr.mxu1 %v1340_v50  ;;  %1997 = vmatpush1.msra.mxu0 %v1211_v52  ;;  %v1312_v50 = vld [vmem:[%s2523_s24 + $0x738] sm:$0xff] }
 0x1a9   : > { %2104 = vmatpush1.msra.mxu1 %v1339_v55  ;;  %1998 = vmatprep.subr.mxu0 %v1336_v59  ;;  %v1440_v52 = vld [vmem:[%s2523_s24 + $0xb38] sm:$0xff]  ;;  %v1311_v55 = vld [vmem:[%s2523_s24 + $0x730] sm:$0xff] }
 0x1aa   : > { %2105 = vmatprep.subr.mxu1 %v1464_v2  ;;  %1999 = vmatpush2.msra.mxu0 %v1335_v61  ;;  %v1308_v59 = vld [vmem:[%s2523_s24 + $0x718] sm:$0xff]  ;;  %v1307_v61 = vld [vmem:[%s2523_s24 + $0x710] sm:$0xff] }
 0x1ab   : > { %2106 = vmatpush2.msra.mxu1 %v1463_v63  ;;  %2000 = vmatprep.subr.mxu0 %v1332_v3  ;;  %v1436_v2 = vld [vmem:[%s2523_s24 + $0xb18] sm:$0xff] }
 0x1ac   : > { %2107 = vmatprep.subr.mxu1 %v1460_v6  ;;  %2001 = vmatpush2.msra.mxu0 %v1331_v10  ;;  %v1304_v63 = vld [vmem:[%s2523_s24 + $0x6f8] sm:$0xff]  ;;  %v1303_v6 = vld [vmem:[%s2523_s24 + $0x6f0] sm:$0xff] }
 0x1ad   : > { %2108 = vmatpush2.msra.mxu1 %v1459_v11  ;;  %2002 = vmatprep.subr.mxu0 %v1328_v13  ;;  %v1432_v3 = vld [vmem:[%s2523_s24 + $0xaf8] sm:$0xff]  ;;  %v1299_v13 = vld [vmem:[%s2523_s24 + $0x6d0] sm:$0xff] }
 0x1ae   : > { %2109 = vmatprep.subr.mxu1 %v1456_v14  ;;  %2003 = vmatpush2.msra.mxu0 %v1327_v21  ;;  %v1300_v10 = vld [vmem:[%s2523_s24 + $0x6d8] sm:$0xff] }
 0x1af   : > { %2110 = vmatpush2.msra.mxu1 %v1455_v25  ;;  %2004 = vmatprep.subr.mxu0 %v1324_v27  ;;  %v1428_v11 = vld [vmem:[%s2523_s24 + $0xad8] sm:$0xff]  ;;  %v1295_v25 = vld [vmem:[%s2523_s24 + $0x6b0] sm:$0xff] }
 0x1b0   : > { %2111 = vmatprep.subr.mxu1 %v1452_v28  ;;  %1929 = vmatprep.mubr.f32.mxu1 %v3161_v18  ;;  %v1443_v18 = vld [vmem:[%s2523_s24 + $0xb50] sm:$0xff]  ;;  %v1296_v14 = vld [vmem:[%s2523_s24 + $0x6b8] sm:$0xff] }
 0x1b1   : > { %2005 = vmatpush2.msra.mxu0 %v1323_v31  ;;  %2112 = vmatpush2.msra.mxu1 %v1451_v32  ;;  %v1424_v21 = vld [vmem:[%s2523_s24 + $0xab8] sm:$0xff]  ;;  %v1291_v31 = vld [vmem:[%s2523_s24 + $0x690] sm:$0xff] }
 0x1b2   : > { %2006 = vmatprep.subr.mxu0 %v1320_v35  ;;  %1930 = vmatmul.mubr.f32.gmra.mxu1 %v3169_v0  ;;  %v1439_v0 = vld [vmem:[%s2523_s24 + $0xb30] sm:$0xff]  ;;  %v1292_v27 = vld [vmem:[%s2523_s24 + $0x698] sm:$0xff] }
 0x1b3   : > { %2113 = vmatprep.subr.mxu1 %v1448_v36  ;;  %2007 = vmatpush2.msra.mxu0 %v1319_v39  ;;  %v1420_v28 = vld [vmem:[%s2523_s24 + $0xa98] sm:$0xff]  ;;  %v1287_v36 = vld [vmem:[%s2523_s24 + $0x670] sm:$0xff] }
 0x1b4   : > { %2114 = vmatpush2.msra.mxu1 %v1447_v43  ;;  %2008 = vmatprep.subr.mxu0 %v1316_v47  ;;  %v1288_v32 = vld [vmem:[%s2523_s24 + $0x678] sm:$0xff]  ;;  %v1283_v47 = vld [vmem:[%s2523_s24 + $0x650] sm:$0xff] }
 0x1b5   : > { %2115 = vmatprep.subr.mxu1 %v1444_v48  ;;  %1935 = vmatprep.mubr.f32.mxu1 %v3185_v29  ;;  %v1435_v29 = vld [vmem:[%s2523_s24 + $0xb10] sm:$0xff]  ;;  %v1416_v35 = vld [vmem:[%s2523_s24 + $0xa78] sm:$0xff] }
 0x1b6   : > { %2009 = vmatpush2.msra.mxu0 %v1315_v49  ;;  %2116 = vmatpush2.msra.mxu1 %v1443_v18  ;;  %v1284_v39 = vld [vmem:[%s2523_s24 + $0x658] sm:$0xff]  ;;  %v1279_v18 = vld [vmem:[%s2523_s24 + $0x630] sm:$0xff] }
 0x1b7   : > { %2010 = vmatprep.subr.mxu0 %v1312_v50  ;;  %1936 = vmatmul.mubr.f32.gmra.mxu1 %v3193_v33  ;;  %v1431_v33 = vld [vmem:[%s2523_s24 + $0xaf0] sm:$0xff]  ;;  %v1412_v43 = vld [vmem:[%s2523_s24 + $0xa58] sm:$0xff] }
 0x1b8   : > { %2117 = vmatprep.subr.mxu1 %v1440_v52  ;;  %2011 = vmatpush2.msra.mxu0 %v1311_v55  ;;  %v1280_v48 = vld [vmem:[%s2523_s24 + $0x638] sm:$0xff]  ;;  %v1407_v50 = vld [vmem:[%s2523_s24 + $0xa30] sm:$0xff] }
 0x1b9   : > { %2118 = vmatpush2.msra.mxu1 %v1439_v0  ;;  %2012 = vmatprep.subr.mxu0 %v1308_v59  ;;  %v1408_v49 = vld [vmem:[%s2523_s24 + $0xa38] sm:$0xff]  ;;  %v1275_v55 = vld [vmem:[%s2523_s24 + $0x610] sm:$0xff]  ;;  %v2360_v59 = vld [vmem:[%s3071_s13 + $0x10] sm:$0xff] }
 0x1ba   : > { %2119 = vmatprep.subr.mxu1 %v1436_v2  ;;  %1941 = vmatprep.mubr.f32.mxu1 %v3209_v41  ;;  %v1427_v41 = vld [vmem:[%s2523_s24 + $0xad0] sm:$0xff]  ;;  %v1404_v52 = vld [vmem:[%s2523_s24 + $0xa18] sm:$0xff] }
 0x1bb   : > { %2013 = vmatpush2.msra.mxu0 %v1307_v61  ;;  %2120 = vmatpush2.msra.mxu1 %v1435_v29  ;;  %v1403_v0 = vld [vmem:[%s2523_s24 + $0xa10] sm:$0xff] }
 0x1bc   : > { %2014 = vmatprep.subr.mxu0 %v1304_v63  ;;  %1942 = vmatmul.mubr.f32.gmra.mxu1 %v3217_v45  ;;  %v1423_v45 = vld [vmem:[%s2523_s24 + $0xab0] sm:$0xff] }
 0x1bd   : > { %2121 = vmatprep.subr.mxu1 %v1432_v3  ;;  %2015 = vmatpush2.msra.mxu0 %v1303_v6 }
 0x1be   : > { %2122 = vmatpush2.msra.mxu1 %v1431_v33  ;;  %2016 = vmatprep.subr.mxu0 %v1300_v10  ;;  %v1514_v33 = vld [vmem:[%s3747_s2 + $0x20] sm:$0xff] }
 0x1bf   : > { %2123 = vmatprep.subr.mxu1 %v1428_v11  ;;  %1947 = vmatprep.mubr.f32.mxu1 %v3233_v53  ;;  %v1419_v53 = vld [vmem:[%s2523_s24 + $0xa90] sm:$0xff] }
 0x1c0   : > { %2017 = vmatpush2.msra.mxu0 %v1299_v13  ;;  %2124 = vmatpush2.msra.mxu1 %v1427_v41  ;;  %v1515_v41 = vld [vmem:[%s3747_s2 + $0x28] sm:$0xff] }
 0x1c1   : > { %2018 = vmatprep.subr.mxu0 %v1296_v14  ;;  %1948 = vmatmul.mubr.f32.gmra.mxu1 %v3241_v57  ;;  %v1415_v57 = vld [vmem:[%s2523_s24 + $0xa70] sm:$0xff] }
 0x1c2   : > { %2125 = vmatprep.subr.mxu1 %v1424_v21  ;;  %2019 = vmatpush2.msra.mxu0 %v1295_v25 }
 0x1c3   : > { %2126 = vmatpush2.msra.mxu1 %v1423_v45  ;;  %2020 = vmatprep.subr.mxu0 %v1292_v27 }
 0x1c4   : > { %2127 = vmatprep.subr.mxu1 %v1420_v28  ;;  %1953 = vmatprep.mubr.f32.mxu1 %v3257_v4  ;;  %v1411_v4 = vld [vmem:[%s2523_s24 + $0xa50] sm:$0xff] }
 0x1c5   : > { %2021 = vmatpush2.msra.mxu0 %v1291_v31  ;;  %2128 = vmatpush2.msra.mxu1 %v1419_v53  ;;  %v1518_v31 = vld [vmem:[%s3747_s2 + $0x40] sm:$0xff] }
 0x1c6   : > { %2022 = vmatprep.subr.mxu0 %v1288_v32  ;;  %1954 = vmatmul.mubr.f32.gmra.mxu1 %v3265_v8  ;;  %v1276_v8 = vld [vmem:[%s2523_s24 + $0x618] sm:$0xff] }
 0x1c7   : > { %2129 = vmatprep.subr.mxu1 %v1416_v35  ;;  %2023 = vmatpush2.msra.mxu0 %v1287_v36 }
 0x1c8   : > { %2130 = vmatpush2.msra.mxu1 %v1415_v57  ;;  %2024 = vmatprep.subr.mxu0 %v1284_v39  ;;  %v1519_v57 = vld [vmem:[%s3747_s2 + $0x48] sm:$0xff] }
 0x1c9   : > { %2131 = vmatprep.subr.mxu1 %v1412_v43  ;;  %1959 = vmatprep.mubr.f32.mxu1 %v3281_v16  ;;  %v2359_v16 = vld [vmem:[%s3071_s13 + $0x18] sm:$0xff] }
 0x1ca   : > { %2025 = vmatpush2.msra.mxu0 %v1283_v47  ;;  %2132 = vmatpush2.msra.mxu1 %v1411_v4 }
 0x1cb   : > { %2026 = vmatprep.subr.mxu0 %v1280_v48  ;;  %1960 = vmatmul.mubr.f32.gmra.mxu1 %v3289_v23 }
 0x1cc   : > { %2133 = vmatprep.subr.mxu1 %v1408_v49  ;;  %2027 = vmatpush2.msra.mxu0 %v1279_v18  ;;  %v1522_v49 = vld [vmem:[%s3747_s2 + $0x60] sm:$0xff] }
 0x1cd   : > { %2134 = vmatpush2.msra.mxu1 %v1407_v50  ;;  %2028 = vmatprep.subr.mxu0 %v1276_v8 }
 0x1ce   : > { %2135 = vmatprep.subr.mxu1 %v1404_v52  ;;  %2029 = vmatpush2.msra.mxu0 %v1275_v55  ;;  %v1523_v55 = vld [vmem:[%s3747_s2 + $0x68] sm:$0xff] }
 0x1cf   : > { %2030 = vmatprep.mubr.f32.mxu0 %v2359_v16  ;;  %2136 = vmatpush2.msra.mxu1 %v1403_v0 }
 0x1d0   : > { %2137 = vmatprep.mubr.f32.mxu1 %v3308_v38  ;;  %2031 = vmatmul.mubr.f32.vlgmr.msra.gmra.mxu0 %v2360_v59 }
 0x1d1   : > { %2138 = vmatmul.mubr.f32.vlgmr.msra.gmra.mxu1 %v3312_v40  ;;  %2036 = vmatprep.mubr.f32.mxu0 %v3164_v19 }
 0x1d2   : > { %2143 = vmatprep.mubr.f32.mxu1 %v3325_v51 }
 0x1d4   : > { %2037 = vmatmul.mubr.f32.gmra.mxu0 %v3172_v22 }
 0x1d5   : > { %2144 = vmatmul.mubr.f32.gmra.mxu1 %v3330_v56  ;;  %2042 = vmatprep.mubr.f32.mxu0 %v3188_v30 }
 0x1d6   : > { %2149 = vmatprep.mubr.f32.mxu1 %v3341_v1 }
 0x1d8   : > { %2043 = vmatmul.mubr.f32.gmra.mxu0 %v3196_v34 }
 0x1d9   : > { %2150 = vmatmul.mubr.f32.gmra.mxu1 %v3346_v7  ;;  %2048 = vmatprep.mubr.f32.mxu0 %v3212_v42 }
 0x1da   : > { %2155 = vmatprep.mubr.f32.mxu1 %v3357_v20 }
 0x1dc   : > { %2049 = vmatmul.mubr.f32.gmra.mxu0 %v3220_v46 }
 0x1dd   : > { %2156 = vmatmul.mubr.f32.gmra.mxu1 %v3362_v26  ;;  %2054 = vmatprep.mubr.f32.mxu0 %v3236_v54 }
 0x1de   : > { %2161 = vmatprep.mubr.f32.mxu1 %v3373_v37  ;;  %v1510_v37 = vld [vmem:[%s3747_s2] sm:$0xff] }
 0x1e0   : > { %2055 = vmatmul.mubr.f32.gmra.mxu0 %v3244_v58 }
 0x1e1   : > { %2162 = vmatmul.mubr.f32.gmra.mxu1 %v3378_v44  ;;  %2060 = vmatprep.mubr.f32.mxu0 %v3260_v5 }
 0x1e2   : > { %2167 = vmatprep.mubr.f32.mxu1 %v3389_v62 }
 0x1e4   : > { %2061 = vmatmul.mubr.f32.gmra.mxu0 %v3268_v9 }
 0x1e5   : > { %2168 = vmatmul.mubr.f32.gmra.mxu1 %v3394_v60  ;;  %2066 = vmatprep.mubr.f32.mxu0 %v3284_v17 }
 0x1e6   : > { %2173 = vmatprep.mubr.f32.mxu1 %v3405_v12 }
 0x1e8   : > { %2067 = vmatmul.mubr.f32.gmra.mxu0 %v3292_v24 }
 0x1e9   : > { %2174 = vmatmul.mubr.f32.gmra.mxu1 %v3410_v15  ;;  %v1511_v15 = vld [vmem:[%s3747_s2 + $0x8] sm:$0xff] }
 0x1f4   : > { %v1604_v19 = vpop.f32.mrf.mxu0 }
 0x1f5   : > { %v1711_v5 = vpop.f32.mrf.mxu1 }
 0x1f6   : > { %v1606_v22 = vpop.f32.mrf.mxu0  ;;  %v1712_v26 = vadd.f32 %v1711_v5, %v1604_v19 }
 0x1f7   : > { %v1713_v23 = vpop.f32.mrf.mxu1 }
 0x1f8   : > { %v1714_v62 = vadd.f32 %v1713_v23, %v1606_v22 }
 0x21d   : > { %v1610_v30 = vpop.f32.mrf.mxu0 }
 0x21e   : > { %v1717_v17 = vpop.f32.mrf.mxu1 }
 0x21f   : > { %v1612_v34 = vpop.f32.mrf.mxu0  ;;  %v1718_v63 = vadd.f32 %v1717_v17, %v1610_v30 }
 0x220   : > { %v1719_v51 = vpop.f32.mrf.mxu1 }
 0x221   : > { %v1720_v11 = vadd.f32 %v1719_v51, %v1612_v34  ;;  %v1526_v34 = vld [vmem:[%s3747_s2 + $0x80] sm:$0xff] }
 0x223   : > { %v1616_v42 = vpop.f32.mrf.mxu0 }
 0x224   : > { %v1723_v56 = vpop.f32.mrf.mxu1 }
 0x225   : > { %v1618_v46 = vpop.f32.mrf.mxu0  ;;  %v1724_v27 = vadd.f32 %v1723_v56, %v1616_v42  ;;  %v1530_v56 = vld [vmem:[%s3747_s2 + $0xa0] sm:$0xff] }
 0x226   : > { %v1725_v20 = vpop.f32.mrf.mxu1 }
 0x227   : > { %v1726_v32 = vadd.f32 %v1725_v20, %v1618_v46 }
 0x229   : > { %v1622_v54 = vpop.f32.mrf.mxu0 }
 0x22a   : > { %v1729_v60 = vpop.f32.mrf.mxu1 }
 0x22b   : > { %v1624_v58 = vpop.f32.mrf.mxu0  ;;  %v1730_v4 = vadd.f32 %v1729_v60, %v1622_v54 }
 0x22c   : > { %v1731_v3 = vpop.f32.mrf.mxu1 }
 0x22d   : > { %v1732_v50 = vadd.f32 %v1731_v3, %v1624_v58  ;;  %v1527_v58 = vld [vmem:[%s3747_s2 + $0x88] sm:$0xff] }
 0x22f   : > { %v1628_v9 = vpop.f32.mrf.mxu0 }
 0x230   : > { %v1735_v21 = vpop.f32.mrf.mxu1 }
 0x231   : > { %v3534_v38 = vpop.f32.mrf.mxu0  ;;  %v1736_v19 = vadd.f32 %v1735_v21, %v1628_v9 }
 0x232   : > { %v1737_v36 = vpop.f32.mrf.mxu1 }
 0x233   : > { %v1738_v46 = vadd.f32 %v1737_v36, %v3534_v38 }
 0x235   : > { %v3536_v40 = vpop.f32.mrf.mxu0 }
 0x236   : > { %v1741_v8 = vpop.f32.mrf.mxu1 }
 0x237   : > { %v3538_v24 = vpop.f32.mrf.mxu0  ;;  %v1742_v17 = vadd.f32 %v1741_v8, %v3536_v40  ;;  %v1531_v40 = vld [vmem:[%s3747_s2 + $0xa8] sm:$0xff] }
 0x238   : > { %v1743_v22 = vpop.f32.mrf.mxu1 }
 0x23b   : > { %v3540_v1 = vpop.f32.mrf.mxu0 }
 0x23c   : > { %v1747_v51 = vpop.f32.mrf.mxu1 }
 0x23d   : > { %v3542_v7 = vpop.f32.mrf.mxu0 }
 0x242   : > { %v1818_v44 = vpop.f32.mrf.mxu0 }
 0x243   : > { %v1819_v12 = vadd.f32 %v1818_v44, %v1712_v26  ;;  %v1744_v26 = vadd.f32 %v1743_v22, %v3538_v24 }
 0x244   : > { %v1820_v2 = vpop.f32.mrf.mxu0 }
 0x245   : > { %v2180_v61 = vadd.f32 %v1819_v12, %v1510_v37  ;;  %v1821_v29 = vadd.f32 %v1820_v2, %v1714_v62  ;;  %v1749_v62 = vpop.f32.mrf.mxu1  ;;  %v1534_v2 = vld [vmem:[%s3747_s2 + $0xc0] sm:$0xff] }
 0x247   : > { %2208 = vst [vmem:[%s3747_s2] sm:$0xff] %v2180_v61  ;;  %v2181_v6 = vadd.f32 %v1821_v29, %v1511_v15  ;;  %v1748_v15 = vadd.f32 %v1747_v51, %v3540_v1  ;;  %v1750_v29 = vadd.f32 %v1749_v62, %v3542_v7  ;;  %v1535_v1 = vld [vmem:[%s3747_s2 + $0xc8] sm:$0xff]  ;;  %v1925_v7 = vpop.f32.mrf.mxu1 }
 0x248   : > { %v1824_v10 = vpop.f32.mrf.mxu0 }
 0x249   : > { %2209 = vst [vmem:[%s3747_s2 + $0x8] sm:$0xff] %v2181_v6  ;;  %v1825_v13 = vadd.f32 %v1824_v10, %v1718_v63 }
 0x24a   : > { %v1826_v14 = vpop.f32.mrf.mxu0 }
 0x24b   : > { %v2184_v25 = vadd.f32 %v1825_v13, %v1514_v33  ;;  %v1827_v45 = vadd.f32 %v1826_v14, %v1720_v11  ;;  %v1927_v11 = vpop.f32.mrf.mxu1 }
 0x24d   : > { %2212 = vst [vmem:[%s3747_s2 + $0x20] sm:$0xff] %v2184_v25  ;;  %v2185_v28 = vadd.f32 %v1827_v45, %v1515_v41  ;;  %v1830_v53 = vpop.f32.mrf.mxu0 }
 0x24e   : > { %v1831_v35 = vadd.f32 %v1830_v53, %v1724_v27 }
 0x24f   : > { %2213 = vst [vmem:[%s3747_s2 + $0x28] sm:$0xff] %v2185_v28  ;;  %v1832_v39 = vpop.f32.mrf.mxu0 }
 0x250   : > { %v2188_v43 = vadd.f32 %v1831_v35, %v1518_v31  ;;  %v1833_v47 = vadd.f32 %v1832_v39, %v1726_v32 }
 0x252   : > { %2216 = vst [vmem:[%s3747_s2 + $0x40] sm:$0xff] %v2188_v43  ;;  %v2189_v48 = vadd.f32 %v1833_v47, %v1519_v57  ;;  %v1836_v18 = vpop.f32.mrf.mxu0  ;;  %v1512_v43 = vld [vmem:[%s3747_s2 + $0x10] sm:$0xff] }
 0x253   : > { %v1837_v52 = vadd.f32 %v1836_v18, %v1730_v4  ;;  %v1513_v18 = vld [vmem:[%s3747_s2 + $0x18] sm:$0xff] }
 0x254   : > { %2217 = vst [vmem:[%s3747_s2 + $0x48] sm:$0xff] %v2189_v48  ;;  %v1838_v0 = vpop.f32.mrf.mxu0 }
 0x255   : > { %v2192_v16 = vadd.f32 %v1837_v52, %v1522_v49  ;;  %v1839_v59 = vadd.f32 %v1838_v0, %v1732_v50 }
 0x257   : > { %2220 = vst [vmem:[%s3747_s2 + $0x60] sm:$0xff] %v2192_v16  ;;  %v2193_v30 = vadd.f32 %v1839_v59, %v1523_v55  ;;  %v1842_v42 = vpop.f32.mrf.mxu0  ;;  %v1516_v16 = vld [vmem:[%s3747_s2 + $0x30] sm:$0xff] }
 0x258   : > { %v1843_v54 = vadd.f32 %v1842_v42, %v1736_v19  ;;  %v1517_v42 = vld [vmem:[%s3747_s2 + $0x38] sm:$0xff] }
 0x259   : > { %2221 = vst [vmem:[%s3747_s2 + $0x68] sm:$0xff] %v2193_v30  ;;  %v1844_v5 = vpop.f32.mrf.mxu0 }
 0x25a   : > { %v2196_v9 = vadd.f32 %v1843_v54, %v1526_v34  ;;  %v1845_v23 = vadd.f32 %v1844_v5, %v1738_v46 }
 0x25c   : > { %2224 = vst [vmem:[%s3747_s2 + $0x80] sm:$0xff] %v2196_v9  ;;  %v2197_v38 = vadd.f32 %v1845_v23, %v1527_v58  ;;  %v1848_v20 = vpop.f32.mrf.mxu0  ;;  %v1520_v23 = vld [vmem:[%s3747_s2 + $0x50] sm:$0xff] }
 0x25d   : > { %v1849_v37 = vadd.f32 %v1848_v20, %v1742_v17 }
 0x25e   : > { %2225 = vst [vmem:[%s3747_s2 + $0x88] sm:$0xff] %v2197_v38  ;;  %v1850_v44 = vpop.f32.mrf.mxu0 }
 0x25f   : > { %v2200_v60 = vadd.f32 %v1849_v37, %v1530_v56  ;;  %v1851_v12 = vadd.f32 %v1850_v44, %v1744_v26  ;;  %v1521_v26 = vld [vmem:[%s3747_s2 + $0x58] sm:$0xff] }
 0x261   : > { %2228 = vst [vmem:[%s3747_s2 + $0xa0] sm:$0xff] %v2200_v60  ;;  %v2201_v24 = vadd.f32 %v1851_v12, %v1531_v40  ;;  %v1854_v61 = vpop.f32.mrf.mxu0  ;;  %v1524_v12 = vld [vmem:[%s3747_s2 + $0x70] sm:$0xff] }
 0x262   : > { %v1855_v63 = vadd.f32 %v1854_v61, %v1748_v15 }
 0x263   : > { %2229 = vst [vmem:[%s3747_s2 + $0xa8] sm:$0xff] %v2201_v24  ;;  %v1856_v3 = vpop.f32.mrf.mxu0 }
 0x264   : > { %v2204_v6 = vadd.f32 %v1855_v63, %v1534_v2  ;;  %v1857_v33 = vadd.f32 %v1856_v3, %v1750_v29  ;;  %v1525_v63 = vld [vmem:[%s3747_s2 + $0x78] sm:$0xff] }
 0x266   : > { %2232 = vst [vmem:[%s3747_s2 + $0xc0] sm:$0xff] %v2204_v6  ;;  %v2205_v10 = vadd.f32 %v1857_v33, %v1535_v1 }
 0x268   : > { %2233 = vst [vmem:[%s3747_s2 + $0xc8] sm:$0xff] %v2205_v10 }
 0x272   : > { %v1931_v13 = vpop.f32.mrf.mxu1 }
 0x274   : > { %v1933_v41 = vpop.f32.mrf.mxu1 }
 0x277   : > { %v1937_v14 = vpop.f32.mrf.mxu1 }
 0x279   : > { %v1939_v21 = vpop.f32.mrf.mxu1 }
 0x27c   : > { %v1943_v25 = vpop.f32.mrf.mxu1 }
 0x27e   : > { %v1945_v45 = vpop.f32.mrf.mxu1 }
 0x281   : > { %v1949_v27 = vpop.f32.mrf.mxu1 }
 0x283   : > { %v3633_v28 = vpop.f32.mrf.mxu1 }
 0x286   : > { %v3635_v31 = vpop.f32.mrf.mxu1 }
 0x288   : > { %v3637_v53 = vpop.f32.mrf.mxu1 }
 0x28b   : > { %v3639_v32 = vpop.f32.mrf.mxu1 }
 0x28d   : > { %v3641_v35 = vpop.f32.mrf.mxu1 }
 0x290   : > { %v2032_v36 = vpop.f32.mrf.mxu0 }
 0x291   : > { %v2139_v57 = vpop.f32.mrf.mxu1  ;;  %v2033_v39 = vadd.f32 %v2032_v36, %v1925_v7  ;;  %v1528_v7 = vld [vmem:[%s3747_s2 + $0x90] sm:$0xff] }
 0x292   : > { %v2034_v47 = vpop.f32.mrf.mxu0 }
 0x293   : > { %v2141_v4 = vpop.f32.mrf.mxu1  ;;  %v2140_v48 = vadd.f32 %v2139_v57, %v2033_v39  ;;  %v2035_v49 = vadd.f32 %v2034_v47, %v1927_v11 }
 0x294   : > { %v2038_v50 = vpop.f32.mrf.mxu0 }
 0x295   : > { %v2145_v8 = vpop.f32.mrf.mxu1  ;;  %v2182_v52 = vadd.f32 %v2140_v48, %v1512_v43  ;;  %v2142_v55 = vadd.f32 %v2141_v4, %v2035_v49  ;;  %v2039_v0 = vadd.f32 %v2038_v50, %v1931_v13  ;;  %v1532_v43 = vld [vmem:[%s3747_s2 + $0xb0] sm:$0xff] }
 0x296   : > { %v2040_v59 = vpop.f32.mrf.mxu0 }
 0x297   : > { %v2147_v19 = vpop.f32.mrf.mxu1  ;;  %2210 = vst [vmem:[%s3747_s2 + $0x10] sm:$0xff] %v2182_v52  ;;  %v2183_v22 = vadd.f32 %v2142_v55, %v1513_v18  ;;  %v2146_v30 = vadd.f32 %v2145_v8, %v2039_v0  ;;  %v2041_v34 = vadd.f32 %v2040_v59, %v1933_v41  ;;  %v1533_v18 = vld [vmem:[%s3747_s2 + $0xb8] sm:$0xff]  ;;  %v1536_v0 = vld [vmem:[%s3747_s2 + $0xd0] sm:$0xff] }
 0x298   : > { %v2044_v46 = vpop.f32.mrf.mxu0 }
 0x299   : > { %v2151_v54 = vpop.f32.mrf.mxu1  ;;  %2211 = vst [vmem:[%s3747_s2 + $0x18] sm:$0xff] %v2183_v22  ;;  %v2186_v58 = vadd.f32 %v2146_v30, %v1516_v16  ;;  %v2148_v5 = vadd.f32 %v2147_v19, %v2041_v34  ;;  %v2045_v9 = vadd.f32 %v2044_v46, %v1937_v14  ;;  %v1537_v22 = vld [vmem:[%s3747_s2 + $0xd8] sm:$0xff] }
 0x29a   : > { %v2046_v17 = vpop.f32.mrf.mxu0 }
 0x29b   : > { %v2153_v51 = vpop.f32.mrf.mxu1  ;;  %2214 = vst [vmem:[%s3747_s2 + $0x30] sm:$0xff] %v2186_v58  ;;  %v2187_v38 = vadd.f32 %v2148_v5, %v1517_v42  ;;  %v2152_v56 = vadd.f32 %v2151_v54, %v2045_v9  ;;  %v2047_v20 = vadd.f32 %v2046_v17, %v1939_v21 }
 0x29c   : > { %v2050_v37 = vpop.f32.mrf.mxu0 }
 0x29d   : > { %v2157_v40 = vpop.f32.mrf.mxu1  ;;  %2215 = vst [vmem:[%s3747_s2 + $0x38] sm:$0xff] %v2187_v38  ;;  %v2190_v44 = vadd.f32 %v2152_v56, %v1520_v23  ;;  %v2154_v62 = vadd.f32 %v2153_v51, %v2047_v20  ;;  %v2051_v60 = vadd.f32 %v2050_v37, %v1943_v25  ;;  %v1529_v25 = vld [vmem:[%s3747_s2 + $0x98] sm:$0xff] }
 0x29e   : > { %v2052_v15 = vpop.f32.mrf.mxu0 }
 0x29f   : > { %v2159_v24 = vpop.f32.mrf.mxu1  ;;  %2218 = vst [vmem:[%s3747_s2 + $0x50] sm:$0xff] %v2190_v44  ;;  %v2191_v2 = vadd.f32 %v2154_v62, %v1521_v26  ;;  %v2158_v61 = vadd.f32 %v2157_v40, %v2051_v60  ;;  %v2053_v29 = vadd.f32 %v2052_v15, %v1945_v45 }
 0x2a0   : > { %v2056_v1 = vpop.f32.mrf.mxu0 }
 0x2a1   : > { %v2163_v3 = vpop.f32.mrf.mxu1  ;;  %2219 = vst [vmem:[%s3747_s2 + $0x58] sm:$0xff] %v2191_v2  ;;  %v2194_v6 = vadd.f32 %v2158_v61, %v1524_v12  ;;  %v2160_v33 = vadd.f32 %v2159_v24, %v2053_v29  ;;  %v2057_v10 = vadd.f32 %v2056_v1, %v1949_v27 }
 0x2a2   : > { %v2058_v11 = vpop.f32.mrf.mxu0 }
 0x2a3   : > { %v2165_v13 = vpop.f32.mrf.mxu1  ;;  %2222 = vst [vmem:[%s3747_s2 + $0x70] sm:$0xff] %v2194_v6  ;;  %v2195_v41 = vadd.f32 %v2160_v33, %v1525_v63  ;;  %v2164_v14 = vadd.f32 %v2163_v3, %v2057_v10  ;;  %v2059_v21 = vadd.f32 %v2058_v11, %v3633_v28 }
 0x2a4   : > { %v2062_v45 = vpop.f32.mrf.mxu0 }
 0x2a5   : > { %v2169_v27 = vpop.f32.mrf.mxu1  ;;  %2223 = vst [vmem:[%s3747_s2 + $0x78] sm:$0xff] %v2195_v41  ;;  %v2198_v36 = vadd.f32 %v2164_v14, %v1528_v7  ;;  %v2166_v57 = vadd.f32 %v2165_v13, %v2059_v21  ;;  %v2063_v39 = vadd.f32 %v2062_v45, %v3635_v31 }
 0x2a6   : > { %v2064_v47 = vpop.f32.mrf.mxu0 }
 0x2a7   : > { %v2171_v28 = vpop.f32.mrf.mxu1  ;;  %2226 = vst [vmem:[%s3747_s2 + $0x90] sm:$0xff] %v2198_v36  ;;  %v2199_v4 = vadd.f32 %v2166_v57, %v1529_v25  ;;  %v2170_v48 = vadd.f32 %v2169_v27, %v2063_v39  ;;  %v2065_v49 = vadd.f32 %v2064_v47, %v3637_v53 }
 0x2a8   : > { %v2068_v50 = vpop.f32.mrf.mxu0 }
 0x2a9   : > { %v2175_v31 = vpop.f32.mrf.mxu1  ;;  %2227 = vst [vmem:[%s3747_s2 + $0x98] sm:$0xff] %v2199_v4  ;;  %v2202_v8 = vadd.f32 %v2170_v48, %v1532_v43  ;;  %v2172_v52 = vadd.f32 %v2171_v28, %v2065_v49  ;;  %v2069_v55 = vadd.f32 %v2068_v50, %v3639_v32 }
 0x2aa   : > { %v2070_v16 = vpop.f32.mrf.mxu0 }
 0x2ab   : > { %2230 = vst [vmem:[%s3747_s2 + $0xb0] sm:$0xff] %v2202_v8  ;;  %v2203_v53 = vadd.f32 %v2172_v52, %v1533_v18  ;;  %v2176_v59 = vadd.f32 %v2175_v31, %v2069_v55  ;;  %v2071_v19 = vadd.f32 %v2070_v16, %v3641_v35  ;;  %v2177_v30 = vpop.f32.mrf.mxu1 }
 0x2ad   : > { %2231 = vst [vmem:[%s3747_s2 + $0xb8] sm:$0xff] %v2203_v53  ;;  %v2206_v32 = vadd.f32 %v2176_v59, %v1536_v0  ;;  %v2178_v34 = vadd.f32 %v2177_v30, %v2071_v19 }
 0x2af   : > { %2234 = vst [vmem:[%s3747_s2 + $0xd0] sm:$0xff] %v2206_v32  ;;  %v2207_v42 = vadd.f32 %v2178_v34, %v1537_v22 }
 0x2b1   : > { %2235 = vst [vmem:[%s3747_s2 + $0xd8] sm:$0xff] %v2207_v42 }
 0x2b2 PF: > { %p12_p8 = scmp.ge.s32.totalorder %s2466_s14, 5   ;;  %s3757_s9 = smov %s2415_s10 }
 0x2b3   : > { %s3758_s10 = smov %s2419_s11  ;;  %s3759_s11 = smov %s2476_s17 }
 0x2b4   : > { %s3760_s12 = smov %s2466_s14  ;;  %14 = sbr.rel (!%p12_p8) target bundleno = 3 (0x3), region = 138 }
 0x2b9   :  { %2247 = vsyncpa [#allocation5], 1 }
 0x2ba   :  { %2249 = vsyncpa [#allocation5 + $0x1], 1 }

</bundles_post_ra>
